<compile_context>
chip_gen: v7x
topology: tpu7x:2x2x1
jax: 0.10.0
libtpu: 0.0.40
codegen_flags: <defaults>
</compile_context>

<pallas_src>
import functools
import math

import jax
import jax.numpy as jnp
from jax import lax
from jax.experimental import pallas as pl
from jax.experimental.pallas import tpu as pltpu

EPSILON = 0.1
MAX_ITER = 200
_FLAG_SHAPE = (8, 128)   # minimal well-tiled f32 slab for the per-block flag


# ------------------------------ helpers -------------------------------------


def _round_up(x, k):
    return ((x + k - 1) // k) * k


def _cdiv(a, b):
    return (a + b - 1) // b


def _unrolled_fori(n_iter, step, init, unroll):
    """fori_loop whose body is manually unrolled `unroll` times (Pallas-safe)."""
    unroll = max(1, int(unroll))
    n_main, n_rem = divmod(n_iter, unroll)

    def body(_, carry):
        for _ in range(unroll):
            carry = step(carry)
        return carry

    carry = lax.fori_loop(0, n_main, body, init) if n_main > 0 else init
    for _ in range(n_rem):
        carry = step(carry)
    return carry


def _plan_batch_tiling(bs, n, m, *, budget_bytes=12 << 20, live_slabs=14):
    """Pick the lane-block size for the batch-in-lanes layout.

    Returns (b_lane, n_blocks, b_pad).  `b_lane` is a multiple of 128 sized so
    that ~`live_slabs` live (n, round_up(m, 8), b_lane) f32 slabs (input/output
    double buffers + loop intermediates) stay under `budget_bytes`, which keeps
    the kernel comfortably inside v5e's 16 MiB scoped-VMEM default and v7x's
    64 MiB physical VMEM.  Whenever the batch spans >= 2 lane-groups the grid
    has >= 2 steps so dimension_semantics=("parallel",) can shard across both
    v7x TensorCores; among feasible block sizes we pick the one with minimal
    lane padding (ties -> larger block, fewer grid steps).
    """
    lane_groups = _cdiv(max(1, bs), 128)
    slab128 = n * _round_up(m, 8) * 128 * 4          # padded bytes per 128-lane slab
    k_vmem = max(1, budget_bytes // (live_slabs * slab128))
    if lane_groups <= 1:
        k = 1
    else:
        k_hi = max(1, min(k_vmem, lane_groups - 1))  # keep >= 2 grid steps
        best_pad, k = None, 1
        for cand in range(1, k_hi + 1):
            padded = cand * _cdiv(lane_groups, cand)
            if best_pad is None or padded <= best_pad:
                best_pad, k = padded, cand
    b_lane = 128 * k
    n_blocks = _cdiv(lane_groups, k)
    return b_lane, n_blocks, n_blocks * b_lane


# ----------------------------- Pallas kernels -------------------------------
# Kernel-side layout: C block is (n, m, B) with m on sublanes and the batch B
# on lanes, i.e. B independent (n, m) Sinkhorn problems packed lane-dense.


def _naive_sinkhorn_kernel(c_ref, out_ref, flag_ref, *, epsilon, max_iter, unroll):
    """Exp-domain Sinkhorn on a (n, m, B) batch-in-lanes slab."""
    C = c_ref[...]                                  # (n, m, B) float32
    n, m, B = C.shape
    mu = 1.0 / n                                    # uniform marginals (scalars)
    nu = 1.0 / m

    G = jnp.exp(C * (-1.0 / epsilon))
    u0 = jnp.zeros((n, 1, B), jnp.float32)          # dummy; overwritten in iter 0
    v0 = jnp.full((1, m, B), 1.0 / m, dtype=jnp.float32)

    def recip(x):
        # EUP approximate reciprocal + one Newton step; the denominators are
        # tiny ((n,1,B)/(1,m,B)) so this is nearly free and near-exact.
        r = pl.reciprocal(x, approx=True)
        return r * (2.0 - x * r)

    def step(carry):
        u, v = carry
        u = mu * recip(jnp.sum(G * v, axis=1, keepdims=True))   # sublane reduce (m)
        v = nu * recip(jnp.sum(G * u, axis=0, keepdims=True))   # VALU adds (n)
        return (u, v)

    u, v = _unrolled_fori(max_iter, step, (u0, v0), unroll)
    Gamma = u * G * v
    out_ref[...] = Gamma

    # Fallback flag computed in-kernel (no extra HBM pass).  Use "non-finite"
    # rather than NaN-only: the approximate reciprocal can map an underflowed
    # denominator to inf instead of the NaN exact division would produce.
    bad = jnp.max(jnp.logical_not(jnp.isfinite(Gamma)).astype(jnp.float32))
    flag_ref[...] = jnp.full(flag_ref.shape, bad, dtype=jnp.float32)


def _stabilized_sinkhorn_kernel(c_ref, out_ref, flag_ref, *, epsilon, max_iter, unroll):
    """Log-domain Sinkhorn in eps-scaled space on a (n, m, B) slab."""
    C = c_ref[...]                                  # (n, m, B) float32
    n, m, B = C.shape
    Ce = C * (1.0 / epsilon)                        # hoisted out of the loop
    log_mu = -math.log(n)                           # log(1/n)
    log_nu = -math.log(m)                           # log(1/m)

    # Hoisted extrema: zmax_bound = max(potential) - min(Ce) is an upper bound
    # on max(potential - Ce), so exp never overflows, while avoiding two
    # full-(n,m,B) max reductions per iteration.
    ce_min_m = jnp.min(Ce, axis=1, keepdims=True)   # (n, 1, B)
    ce_min_n = jnp.min(Ce, axis=0, keepdims=True)   # (1, m, B)

    f0 = jnp.zeros((n, 1, B), jnp.float32)          # f / eps
    g0 = jnp.zeros((1, m, B), jnp.float32)          # g / eps

    def step(carry):
        f, g = carry
        zmax = jnp.max(g, axis=1, keepdims=True) - ce_min_m            # (n,1,B)
        s = jnp.sum(jnp.exp((g - Ce) - zmax), axis=1, keepdims=True)
        f = -(zmax + jnp.log(s)) + log_mu                              # (orig f)/eps
        zmax = jnp.max(f, axis=0, keepdims=True) - ce_min_n            # (1,m,B)
        s = jnp.sum(jnp.exp((f - Ce) - zmax), axis=0, keepdims=True)
        g = -(zmax + jnp.log(s)) + log_nu                              # (orig g)/eps
        return (f, g)

    f, g = _unrolled_fori(max_iter, step, (f0, g0), unroll)
    out_ref[...] = jnp.exp(f + g - Ce)
    flag_ref[...] = jnp.zeros(flag_ref.shape, jnp.float32)


def _run_sinkhorn_kernel(kernel, Ct, *, epsilon, max_iter, b_lane, n_blocks,
                         unroll, alias_input=False):
    n, m, b_pad = Ct.shape
    assert b_pad == n_blocks * b_lane
    block_bytes = n * _round_up(m, 8) * b_lane * 4
    # Explicit scoped-VMEM request derived from the padded footprint
    # (double-buffered in/out blocks + loop intermediates), clamped to a range
    # that is safe on v5e (128 MiB phys), v6e (128 MiB) and v7x (64 MiB).
    vmem_limit = int(min(48 << 20, max(32 << 20, 20 * block_bytes)))

    extra = {"input_output_aliases": {0: 0}} if alias_input else {}
    return pl.pallas_call(
        functools.partial(kernel, epsilon=epsilon, max_iter=max_iter, unroll=unroll),
        out_shape=(
            jax.ShapeDtypeStruct((n, m, b_pad), jnp.float32),
            jax.ShapeDtypeStruct((n_blocks,) + _FLAG_SHAPE, jnp.float32),
        ),
        grid_spec=pltpu.PrefetchScalarGridSpec(
            num_scalar_prefetch=0,
            grid=(n_blocks,),
            in_specs=[pl.BlockSpec((n, m, b_lane), lambda b: (0, 0, b))],
            out_specs=(
                pl.BlockSpec((n, m, b_lane), lambda b: (0, 0, b)),
                pl.BlockSpec((1,) + _FLAG_SHAPE, lambda b: (b, 0, 0)),
            ),
        ),
        compiler_params=pltpu.CompilerParams(
            dimension_semantics=("parallel",),
            vmem_limit_bytes=vmem_limit,
        ),
        **extra,
    )(Ct)


# ------------------------------ module wrapper ------------------------------


def sinkhorn_custom_forward(C, *, method="manual", epsilon=EPSILON,
                            max_iter=MAX_ITER):
    """JAX/Pallas equivalent of Sinkhorn_custom.forward(C)."""
    C = jnp.asarray(C, jnp.float32)
    if C.ndim == 2:
        C = C[None]
    bs, n, m = C.shape

    b_lane, n_blocks, b_pad = _plan_batch_tiling(bs, n, m)
    unroll = 4 if b_lane <= 256 else 2

    # Batch-in-lanes layout: (bs, n, m) -> (n, m, b_pad).  Padded lanes get a
    # benign constant cost (finite Gamma, never triggers the fallback flag).
    Ct = jnp.transpose(C, (1, 2, 0))
    if b_pad != bs:
        Ct = jnp.pad(Ct, ((0, 0), (0, 0), (0, b_pad - bs)), constant_values=1.0)

    run = functools.partial(_run_sinkhorn_kernel, epsilon=epsilon,
                            max_iter=max_iter, b_lane=b_lane,
                            n_blocks=n_blocks, unroll=unroll)

    if method == "naive":
        Gamma_t, _ = run(_naive_sinkhorn_kernel, Ct, alias_input=True)
    elif method == "stablized":
        Gamma_t, _ = run(_stabilized_sinkhorn_kernel, Ct, alias_input=True)
    elif method == "manual":
        # NOTE: like the original PyTorch module, the epsilon/C.max() test and
        # the non-finite fallback are evaluated over the whole call.
        def naive_with_fallback(x):
            G, flags = run(_naive_sinkhorn_kernel, x)
            bad = jnp.max(flags) > 0.0
            return lax.cond(bad,
                            lambda xx: run(_stabilized_sinkhorn_kernel, xx)[0],
                            lambda _: G, x)

        Gamma_t = lax.cond(epsilon / jnp.max(C) > 0.01,
                           naive_with_fallback,
                           lambda x: run(_stabilized_sinkhorn_kernel, x)[0],
                           Ct)
    else:
        # TODO(synk): method='robust' not implemented (data-dependent scalar
        # branching per iteration in robust_sinkhorn_forward).
        raise NotImplementedError(f"method={method!r} not supported")

    Gamma = jnp.transpose(Gamma_t[:, :, :bs], (2, 0, 1))
    return Gamma * min(m, n)


# ------------------------------ references (JAX) ----------------------------


def _reference_naive(C, epsilon, max_iter):
    bs, n, m = C.shape
    mu = jnp.ones((1, n, 1), jnp.float32) / n
    nu = jnp.ones((1, 1, m), jnp.float32) / m
    G = jnp.exp(-C / epsilon)
    u = jnp.zeros((bs, n, 1), jnp.float32)
    v = jnp.ones((bs, 1, m), jnp.float32) / m

    def body(_, carry):
        u, v = carry
        u = mu / jnp.sum(G * v, axis=-1, keepdims=True)
        v = nu / jnp.sum(G * u, axis=-2, keepdims=True)
        return (u, v)

    u, v = lax.fori_loop(0, max_iter, body, (u, v))
    return u * G * v


def _reference_stabilized(C, epsilon, max_iter):
    bs, n, m = C.shape
    f = jnp.zeros((bs, n, 1), jnp.float32)
    g = jnp.zeros((bs, 1, m), jnp.float32)
    eps_log_mu = epsilon * jnp.log(1.0 / n)
    eps_log_nu = epsilon * jnp.log(1.0 / m)

    def lse(Z, axis):
        zmax = jnp.max(Z, axis=axis, keepdims=True)
        return zmax + jnp.log(jnp.sum(jnp.exp(Z - zmax), axis=axis, keepdims=True))

    def body(_, carry):
        f, g = carry
        f = -epsilon * lse(-(C - g) / epsilon, -1) + eps_log_mu
        g = -epsilon * lse(-(C - f) / epsilon, -2) + eps_log_nu
        return (f, g)

    f, g = lax.fori_loop(0, max_iter, body, (f, g))
    return jnp.exp((-C + f + g) / epsilon)


if __name__ == "__main__":
    key = jax.random.PRNGKey(0)
    bs, n, m = 2, 8, 16
    # Non-negative cost matrix (like a distance/cost in deepMOT).
    C = jax.random.uniform(key, (bs, n, m), jnp.float32, minval=0.0, maxval=2.0)

    # method='manual': eps / C.max() ~ 0.05 > 0.01 -> naive (exp-domain) path.
    fwd_manual = jax.jit(functools.partial(sinkhorn_custom_forward, method="manual"))
    out = fwd_manual(C)
    jax.block_until_ready(out)
    assert out.shape == (bs, n, m) and out.dtype == jnp.float32

    ref_naive = _reference_naive(C, EPSILON, MAX_ITER) * min(m, n)
    assert jnp.allclose(out, ref_naive, atol=5e-3, rtol=5e-3), \
        float(jnp.max(jnp.abs(out - ref_naive)))

    # Stabilized kernel (eps-scaled log-space, hoisted lse shift) vs reference.
    fwd_stab = jax.jit(functools.partial(sinkhorn_custom_forward, method="stablized"))
    out_s = fwd_stab(C)
    jax.block_until_ready(out_s)
    ref_stab = _reference_stabilized(C, EPSILON, MAX_ITER) * min(m, n)
    assert jnp.allclose(out_s, ref_stab, atol=1e-3, rtol=1e-3), \
        float(jnp.max(jnp.abs(out_s - ref_stab)))

    # A batch that spans two lane-blocks (exercises padding + 2-step grid).
    key2 = jax.random.PRNGKey(1)
    bs2 = 130
    C2 = jax.random.uniform(key2, (bs2, n, m), jnp.float32, minval=0.0, maxval=2.0)
    out2 = jax.jit(functools.partial(sinkhorn_custom_forward, method="manual"))(C2)
    jax.block_until_ready(out2)
    ref2 = _reference_naive(C2, EPSILON, MAX_ITER) * min(m, n)
    assert out2.shape == (bs2, n, m)
    assert jnp.allclose(out2, ref2, atol=5e-3, rtol=5e-3), \
        float(jnp.max(jnp.abs(out2 - ref2)))

    print("KERNEL_OK")
</pallas_src>

<mosaic_0001>
module attributes {stable_mosaic.version = 11 : i64} {
  func.func @_stabilized_sinkhorn_kernel(%arg0: i32, %arg1: memref<8x16x128xf32, #tpu.memory_space<vmem>>, %arg2: memref<8x16x128xf32, #tpu.memory_space<vmem>>, %arg3: memref<1x8x128xf32, #tpu.memory_space<vmem>>) attributes {dimension_semantics = [#tpu.dimension_semantics<parallel>], iteration_bounds = array<i64: 1>, scalar_prefetch = 0 : i64, scratch_operands = 0 : i64, tpu.core_type = #tpu.core_type<tc>, window_params = [{transform_indices = @transform_0, window_bounds = array<i64: 8, 16, 128>}, {transform_indices = @transform_1, window_bounds = array<i64: 8, 16, 128>}, {transform_indices = @transform_2, window_bounds = array<i64: 1, 8, 128>}]} {
    %c0 = arith.constant 0 : index
    %c0_0 = arith.constant 0 : index
    %c0_1 = arith.constant 0 : index
    %0 = vector.load %arg1[%c0, %c0_0, %c0_1] : memref<8x16x128xf32, #tpu.memory_space<vmem>>, vector<8x16x128xf32>
    %cst = arith.constant 1.000000e+01 : f32
    %1 = vector.broadcast %cst : f32 to vector<8x16x128xf32>
    %2 = arith.mulf %0, %1 : vector<8x16x128xf32>
    %cst_2 = arith.constant dense<0x7F800000> : vector<8x128xf32>
    %3 = vector.multi_reduction <minimumf>, %2, %cst_2 [1] : vector<8x16x128xf32> to vector<8x128xf32>
    %4 = vector.shape_cast %3 : vector<8x128xf32> to vector<8x1x128xf32>
    %cst_3 = arith.constant dense<0x7F800000> : vector<16x128xf32>
    %5 = vector.multi_reduction <minimumf>, %2, %cst_3 [0] : vector<8x16x128xf32> to vector<16x128xf32>
    %6 = vector.shape_cast %5 : vector<16x128xf32> to vector<1x16x128xf32>
    %cst_4 = arith.constant 0.000000e+00 : f32
    %7 = vector.broadcast %cst_4 : f32 to vector<8x1x128xf32>
    %cst_5 = arith.constant 0.000000e+00 : f32
    %8 = vector.broadcast %cst_5 : f32 to vector<1x16x128xf32>
    %c0_i32 = arith.constant 0 : i32
    %c50_i32 = arith.constant 50 : i32
    %9 = arith.addi %c0_i32, %c50_i32 : i32
    %c1_i32 = arith.constant 1 : i32
    %10:2 = scf.for %arg4 = %c0_i32 to %9 step %c1_i32 iter_args(%arg5 = %7, %arg6 = %8) -> (vector<8x1x128xf32>, vector<1x16x128xf32>)  : i32 {
      %cst_13 = arith.constant dense<0xFF800000> : vector<1x128xf32>
      %19 = vector.multi_reduction <maximumf>, %arg6, %cst_13 [1] : vector<1x16x128xf32> to vector<1x128xf32>
      %20 = vector.shape_cast %19 : vector<1x128xf32> to vector<1x1x128xf32>
      %21 = vector.broadcast %20 : vector<1x1x128xf32> to vector<8x1x128xf32>
      %22 = arith.subf %21, %4 : vector<8x1x128xf32>
      %23 = vector.broadcast %arg6 : vector<1x16x128xf32> to vector<8x16x128xf32>
      %24 = arith.subf %23, %2 : vector<8x16x128xf32>
      %25 = vector.broadcast %22 : vector<8x1x128xf32> to vector<8x16x128xf32>
      %26 = arith.subf %24, %25 : vector<8x16x128xf32>
      %27 = math.exp %26 : vector<8x16x128xf32>
      %cst_14 = arith.constant dense<0.000000e+00> : vector<8x128xf32>
      %28 = vector.multi_reduction <add>, %27, %cst_14 [1] : vector<8x16x128xf32> to vector<8x128xf32>
      %29 = vector.shape_cast %28 : vector<8x128xf32> to vector<8x1x128xf32>
      %30 = math.log %29 : vector<8x1x128xf32>
      %31 = arith.addf %22, %30 : vector<8x1x128xf32>
      %cst_15 = arith.constant 0.000000e+00 : f32
      %32 = vector.broadcast %cst_15 : f32 to vector<8x1x128xf32>
      %33 = arith.subf %32, %31 : vector<8x1x128xf32>
      %cst_16 = arith.constant -2.07944155 : f32
      %34 = vector.broadcast %cst_16 : f32 to vector<8x1x128xf32>
      %35 = arith.addf %33, %34 : vector<8x1x128xf32>
      %cst_17 = arith.constant dense<0xFF800000> : vector<1x128xf32>
      %36 = vector.multi_reduction <maximumf>, %35, %cst_17 [0] : vector<8x1x128xf32> to vector<1x128xf32>
      %37 = vector.shape_cast %36 : vector<1x128xf32> to vector<1x1x128xf32>
      %38 = vector.broadcast %37 : vector<1x1x128xf32> to vector<1x16x128xf32>
      %39 = arith.subf %38, %6 : vector<1x16x128xf32>
      %40 = vector.broadcast %35 : vector<8x1x128xf32> to vector<8x16x128xf32>
      %41 = arith.subf %40, %2 : vector<8x16x128xf32>
      %42 = vector.broadcast %39 : vector<1x16x128xf32> to vector<8x16x128xf32>
      %43 = arith.subf %41, %42 : vector<8x16x128xf32>
      %44 = math.exp %43 : vector<8x16x128xf32>
      %cst_18 = arith.constant dense<0.000000e+00> : vector<16x128xf32>
      %45 = vector.multi_reduction <add>, %44, %cst_18 [0] : vector<8x16x128xf32> to vector<16x128xf32>
      %46 = vector.shape_cast %45 : vector<16x128xf32> to vector<1x16x128xf32>
      %47 = math.log %46 : vector<1x16x128xf32>
      %48 = arith.addf %39, %47 : vector<1x16x128xf32>
      %cst_19 = arith.constant 0.000000e+00 : f32
      %49 = vector.broadcast %cst_19 : f32 to vector<1x16x128xf32>
      %50 = arith.subf %49, %48 : vector<1x16x128xf32>
      %cst_20 = arith.constant -2.77258873 : f32
      %51 = vector.broadcast %cst_20 : f32 to vector<1x16x128xf32>
      %52 = arith.addf %50, %51 : vector<1x16x128xf32>
      %cst_21 = arith.constant dense<0xFF800000> : vector<1x128xf32>
      %53 = vector.multi_reduction <maximumf>, %52, %cst_21 [1] : vector<1x16x128xf32> to vector<1x128xf32>
      %54 = vector.shape_cast %53 : vector<1x128xf32> to vector<1x1x128xf32>
      %55 = vector.broadcast %54 : vector<1x1x128xf32> to vector<8x1x128xf32>
      %56 = arith.subf %55, %4 : vector<8x1x128xf32>
      %57 = vector.broadcast %52 : vector<1x16x128xf32> to vector<8x16x128xf32>
      %58 = arith.subf %57, %2 : vector<8x16x128xf32>
      %59 = vector.broadcast %56 : vector<8x1x128xf32> to vector<8x16x128xf32>
      %60 = arith.subf %58, %59 : vector<8x16x128xf32>
      %61 = math.exp %60 : vector<8x16x128xf32>
      %cst_22 = arith.constant dense<0.000000e+00> : vector<8x128xf32>
      %62 = vector.multi_reduction <add>, %61, %cst_22 [1] : vector<8x16x128xf32> to vector<8x128xf32>
      %63 = vector.shape_cast %62 : vector<8x128xf32> to vector<8x1x128xf32>
      %64 = math.log %63 : vector<8x1x128xf32>
      %65 = arith.addf %56, %64 : vector<8x1x128xf32>
      %cst_23 = arith.constant 0.000000e+00 : f32
      %66 = vector.broadcast %cst_23 : f32 to vector<8x1x128xf32>
      %67 = arith.subf %66, %65 : vector<8x1x128xf32>
      %cst_24 = arith.constant -2.07944155 : f32
      %68 = vector.broadcast %cst_24 : f32 to vector<8x1x128xf32>
      %69 = arith.addf %67, %68 : vector<8x1x128xf32>
      %cst_25 = arith.constant dense<0xFF800000> : vector<1x128xf32>
      %70 = vector.multi_reduction <maximumf>, %69, %cst_25 [0] : vector<8x1x128xf32> to vector<1x128xf32>
      %71 = vector.shape_cast %70 : vector<1x128xf32> to vector<1x1x128xf32>
      %72 = vector.broadcast %71 : vector<1x1x128xf32> to vector<1x16x128xf32>
      %73 = arith.subf %72, %6 : vector<1x16x128xf32>
      %74 = vector.broadcast %69 : vector<8x1x128xf32> to vector<8x16x128xf32>
      %75 = arith.subf %74, %2 : vector<8x16x128xf32>
      %76 = vector.broadcast %73 : vector<1x16x128xf32> to vector<8x16x128xf32>
      %77 = arith.subf %75, %76 : vector<8x16x128xf32>
      %78 = math.exp %77 : vector<8x16x128xf32>
      %cst_26 = arith.constant dense<0.000000e+00> : vector<16x128xf32>
      %79 = vector.multi_reduction <add>, %78, %cst_26 [0] : vector<8x16x128xf32> to vector<16x128xf32>
      %80 = vector.shape_cast %79 : vector<16x128xf32> to vector<1x16x128xf32>
      %81 = math.log %80 : vector<1x16x128xf32>
      %82 = arith.addf %73, %81 : vector<1x16x128xf32>
      %cst_27 = arith.constant 0.000000e+00 : f32
      %83 = vector.broadcast %cst_27 : f32 to vector<1x16x128xf32>
      %84 = arith.subf %83, %82 : vector<1x16x128xf32>
      %cst_28 = arith.constant -2.77258873 : f32
      %85 = vector.broadcast %cst_28 : f32 to vector<1x16x128xf32>
      %86 = arith.addf %84, %85 : vector<1x16x128xf32>
      %cst_29 = arith.constant dense<0xFF800000> : vector<1x128xf32>
      %87 = vector.multi_reduction <maximumf>, %86, %cst_29 [1] : vector<1x16x128xf32> to vector<1x128xf32>
      %88 = vector.shape_cast %87 : vector<1x128xf32> to vector<1x1x128xf32>
      %89 = vector.broadcast %88 : vector<1x1x128xf32> to vector<8x1x128xf32>
      %90 = arith.subf %89, %4 : vector<8x1x128xf32>
      %91 = vector.broadcast %86 : vector<1x16x128xf32> to vector<8x16x128xf32>
      %92 = arith.subf %91, %2 : vector<8x16x128xf32>
      %93 = vector.broadcast %90 : vector<8x1x128xf32> to vector<8x16x128xf32>
      %94 = arith.subf %92, %93 : vector<8x16x128xf32>
      %95 = math.exp %94 : vector<8x16x128xf32>
      %cst_30 = arith.constant dense<0.000000e+00> : vector<8x128xf32>
      %96 = vector.multi_reduction <add>, %95, %cst_30 [1] : vector<8x16x128xf32> to vector<8x128xf32>
      %97 = vector.shape_cast %96 : vector<8x128xf32> to vector<8x1x128xf32>
      %98 = math.log %97 : vector<8x1x128xf32>
      %99 = arith.addf %90, %98 : vector<8x1x128xf32>
      %cst_31 = arith.constant 0.000000e+00 : f32
      %100 = vector.broadcast %cst_31 : f32 to vector<8x1x128xf32>
      %101 = arith.subf %100, %99 : vector<8x1x128xf32>
      %cst_32 = arith.constant -2.07944155 : f32
      %102 = vector.broadcast %cst_32 : f32 to vector<8x1x128xf32>
      %103 = arith.addf %101, %102 : vector<8x1x128xf32>
      %cst_33 = arith.constant dense<0xFF800000> : vector<1x128xf32>
      %104 = vector.multi_reduction <maximumf>, %103, %cst_33 [0] : vector<8x1x128xf32> to vector<1x128xf32>
      %105 = vector.shape_cast %104 : vector<1x128xf32> to vector<1x1x128xf32>
      %106 = vector.broadcast %105 : vector<1x1x128xf32> to vector<1x16x128xf32>
      %107 = arith.subf %106, %6 : vector<1x16x128xf32>
      %108 = vector.broadcast %103 : vector<8x1x128xf32> to vector<8x16x128xf32>
      %109 = arith.subf %108, %2 : vector<8x16x128xf32>
      %110 = vector.broadcast %107 : vector<1x16x128xf32> to vector<8x16x128xf32>
      %111 = arith.subf %109, %110 : vector<8x16x128xf32>
      %112 = math.exp %111 : vector<8x16x128xf32>
      %cst_34 = arith.constant dense<0.000000e+00> : vector<16x128xf32>
      %113 = vector.multi_reduction <add>, %112, %cst_34 [0] : vector<8x16x128xf32> to vector<16x128xf32>
      %114 = vector.shape_cast %113 : vector<16x128xf32> to vector<1x16x128xf32>
      %115 = math.log %114 : vector<1x16x128xf32>
      %116 = arith.addf %107, %115 : vector<1x16x128xf32>
      %cst_35 = arith.constant 0.000000e+00 : f32
      %117 = vector.broadcast %cst_35 : f32 to vector<1x16x128xf32>
      %118 = arith.subf %117, %116 : vector<1x16x128xf32>
      %cst_36 = arith.constant -2.77258873 : f32
      %119 = vector.broadcast %cst_36 : f32 to vector<1x16x128xf32>
      %120 = arith.addf %118, %119 : vector<1x16x128xf32>
      %cst_37 = arith.constant dense<0xFF800000> : vector<1x128xf32>
      %121 = vector.multi_reduction <maximumf>, %120, %cst_37 [1] : vector<1x16x128xf32> to vector<1x128xf32>
      %122 = vector.shape_cast %121 : vector<1x128xf32> to vector<1x1x128xf32>
      %123 = vector.broadcast %122 : vector<1x1x128xf32> to vector<8x1x128xf32>
      %124 = arith.subf %123, %4 : vector<8x1x128xf32>
      %125 = vector.broadcast %120 : vector<1x16x128xf32> to vector<8x16x128xf32>
      %126 = arith.subf %125, %2 : vector<8x16x128xf32>
      %127 = vector.broadcast %124 : vector<8x1x128xf32> to vector<8x16x128xf32>
      %128 = arith.subf %126, %127 : vector<8x16x128xf32>
      %129 = math.exp %128 : vector<8x16x128xf32>
      %cst_38 = arith.constant dense<0.000000e+00> : vector<8x128xf32>
      %130 = vector.multi_reduction <add>, %129, %cst_38 [1] : vector<8x16x128xf32> to vector<8x128xf32>
      %131 = vector.shape_cast %130 : vector<8x128xf32> to vector<8x1x128xf32>
      %132 = math.log %131 : vector<8x1x128xf32>
      %133 = arith.addf %124, %132 : vector<8x1x128xf32>
      %cst_39 = arith.constant 0.000000e+00 : f32
      %134 = vector.broadcast %cst_39 : f32 to vector<8x1x128xf32>
      %135 = arith.subf %134, %133 : vector<8x1x128xf32>
      %cst_40 = arith.constant -2.07944155 : f32
      %136 = vector.broadcast %cst_40 : f32 to vector<8x1x128xf32>
      %137 = arith.addf %135, %136 : vector<8x1x128xf32>
      %cst_41 = arith.constant dense<0xFF800000> : vector<1x128xf32>
      %138 = vector.multi_reduction <maximumf>, %137, %cst_41 [0] : vector<8x1x128xf32> to vector<1x128xf32>
      %139 = vector.shape_cast %138 : vector<1x128xf32> to vector<1x1x128xf32>
      %140 = vector.broadcast %139 : vector<1x1x128xf32> to vector<1x16x128xf32>
      %141 = arith.subf %140, %6 : vector<1x16x128xf32>
      %142 = vector.broadcast %137 : vector<8x1x128xf32> to vector<8x16x128xf32>
      %143 = arith.subf %142, %2 : vector<8x16x128xf32>
      %144 = vector.broadcast %141 : vector<1x16x128xf32> to vector<8x16x128xf32>
      %145 = arith.subf %143, %144 : vector<8x16x128xf32>
      %146 = math.exp %145 : vector<8x16x128xf32>
      %cst_42 = arith.constant dense<0.000000e+00> : vector<16x128xf32>
      %147 = vector.multi_reduction <add>, %146, %cst_42 [0] : vector<8x16x128xf32> to vector<16x128xf32>
      %148 = vector.shape_cast %147 : vector<16x128xf32> to vector<1x16x128xf32>
      %149 = math.log %148 : vector<1x16x128xf32>
      %150 = arith.addf %141, %149 : vector<1x16x128xf32>
      %cst_43 = arith.constant 0.000000e+00 : f32
      %151 = vector.broadcast %cst_43 : f32 to vector<1x16x128xf32>
      %152 = arith.subf %151, %150 : vector<1x16x128xf32>
      %cst_44 = arith.constant -2.77258873 : f32
      %153 = vector.broadcast %cst_44 : f32 to vector<1x16x128xf32>
      %154 = arith.addf %152, %153 : vector<1x16x128xf32>
      scf.yield %137, %154 : vector<8x1x128xf32>, vector<1x16x128xf32>
    }
    %11 = vector.broadcast %10#0 : vector<8x1x128xf32> to vector<8x16x128xf32>
    %12 = vector.broadcast %10#1 : vector<1x16x128xf32> to vector<8x16x128xf32>
    %13 = arith.addf %11, %12 : vector<8x16x128xf32>
    %14 = arith.subf %13, %2 : vector<8x16x128xf32>
    %15 = math.exp %14 : vector<8x16x128xf32>
    %c0_6 = arith.constant 0 : index
    %c0_7 = arith.constant 0 : index
    %c0_8 = arith.constant 0 : index
    %16 = vector.load %arg2[%c0_6, %c0_7, %c0_8] : memref<8x16x128xf32, #tpu.memory_space<vmem>>, vector<8x16x128xf32>
    tpu.vector_store %arg2[%c0_6, %c0_7, %c0_8], %15 {strides = array<i32>} : memref<8x16x128xf32, #tpu.memory_space<vmem>>, vector<8x16x128xf32>,
    %cst_9 = arith.constant 0.000000e+00 : f32
    %17 = vector.broadcast %cst_9 : f32 to vector<1x8x128xf32>
    %c0_10 = arith.constant 0 : index
    %c0_11 = arith.constant 0 : index
    %c0_12 = arith.constant 0 : index
    %18 = vector.load %arg3[%c0_10, %c0_11, %c0_12] : memref<1x8x128xf32, #tpu.memory_space<vmem>>, vector<1x8x128xf32>
    tpu.vector_store %arg3[%c0_10, %c0_11, %c0_12], %17 {strides = array<i32>} : memref<1x8x128xf32, #tpu.memory_space<vmem>>, vector<1x8x128xf32>,
    return
  }
  func.func @transform_0(%arg0: i32) -> (i32, i32, i32) {
    %c0_i32 = arith.constant 0 : i32
    %c0_i32_0 = arith.constant 0 : i32
    %c0_i32_1 = arith.constant 0 : i32
    return %c0_i32, %c0_i32_0, %arg0 : i32, i32, i32
  }
  func.func @transform_1(%arg0: i32) -> (i32, i32, i32) {
    %c0_i32 = arith.constant 0 : i32
    %c0_i32_0 = arith.constant 0 : i32
    %c0_i32_1 = arith.constant 0 : i32
    return %c0_i32, %c0_i32_0, %arg0 : i32, i32, i32
  }
  func.func @transform_2(%arg0: i32) -> (i32, i32, i32) {
    %c0_i32 = arith.constant 0 : i32
    %c0_i32_0 = arith.constant 0 : i32
    %c0_i32_1 = arith.constant 0 : i32
    return %arg0, %c0_i32, %c0_i32_0 : i32, i32, i32
  }
}

module attributes {stable_mosaic.version = 11 : i64} {
  func.func @_naive_sinkhorn_kernel(%arg0: i32, %arg1: memref<8x16x128xf32, #tpu.memory_space<vmem>>, %arg2: memref<8x16x128xf32, #tpu.memory_space<vmem>>, %arg3: memref<1x8x128xf32, #tpu.memory_space<vmem>>) attributes {dimension_semantics = [#tpu.dimension_semantics<parallel>], iteration_bounds = array<i64: 1>, scalar_prefetch = 0 : i64, scratch_operands = 0 : i64, tpu.core_type = #tpu.core_type<tc>, window_params = [{transform_indices = @transform_0, window_bounds = array<i64: 8, 16, 128>}, {transform_indices = @transform_1, window_bounds = array<i64: 8, 16, 128>}, {transform_indices = @transform_2, window_bounds = array<i64: 1, 8, 128>}]} {
    %c0 = arith.constant 0 : index
    %c0_0 = arith.constant 0 : index
    %c0_1 = arith.constant 0 : index
    %0 = vector.load %arg1[%c0, %c0_0, %c0_1] : memref<8x16x128xf32, #tpu.memory_space<vmem>>, vector<8x16x128xf32>
    %cst = arith.constant -1.000000e+01 : f32
    %1 = vector.broadcast %cst : f32 to vector<8x16x128xf32>
    %2 = arith.mulf %0, %1 : vector<8x16x128xf32>
    %3 = math.exp %2 : vector<8x16x128xf32>
    %cst_2 = arith.constant 0.000000e+00 : f32
    %4 = vector.broadcast %cst_2 : f32 to vector<8x1x128xf32>
    %cst_3 = arith.constant 6.250000e-02 : f32
    %5 = vector.broadcast %cst_3 : f32 to vector<1x16x128xf32>
    %c0_i32 = arith.constant 0 : i32
    %c50_i32 = arith.constant 50 : i32
    %6 = arith.addi %c0_i32, %c50_i32 : i32
    %c1_i32 = arith.constant 1 : i32
    %7:2 = scf.for %arg4 = %c0_i32 to %6 step %c1_i32 iter_args(%arg5 = %4, %arg6 = %5) -> (vector<8x1x128xf32>, vector<1x16x128xf32>)  : i32 {
      %24 = vector.broadcast %arg6 : vector<1x16x128xf32> to vector<8x16x128xf32>
      %25 = arith.mulf %3, %24 : vector<8x16x128xf32>
      %cst_13 = arith.constant dense<0.000000e+00> : vector<8x128xf32>
      %26 = vector.multi_reduction <add>, %25, %cst_13 [1] : vector<8x16x128xf32> to vector<8x128xf32>
      %27 = vector.shape_cast %26 : vector<8x128xf32> to vector<8x1x128xf32>
      %28 = tpu.reciprocal %27 {approx = true} : vector<8x1x128xf32> -> vector<8x1x128xf32>
      %29 = arith.mulf %27, %28 : vector<8x1x128xf32>
      %cst_14 = arith.constant 2.000000e+00 : f32
      %30 = vector.broadcast %cst_14 : f32 to vector<8x1x128xf32>
      %31 = arith.subf %30, %29 : vector<8x1x128xf32>
      %32 = arith.mulf %28, %31 : vector<8x1x128xf32>
      %cst_15 = arith.constant 1.250000e-01 : f32
      %33 = vector.broadcast %cst_15 : f32 to vector<8x1x128xf32>
      %34 = arith.mulf %33, %32 : vector<8x1x128xf32>
      %35 = vector.broadcast %34 : vector<8x1x128xf32> to vector<8x16x128xf32>
      %36 = arith.mulf %3, %35 : vector<8x16x128xf32>
      %cst_16 = arith.constant dense<0.000000e+00> : vector<16x128xf32>
      %37 = vector.multi_reduction <add>, %36, %cst_16 [0] : vector<8x16x128xf32> to vector<16x128xf32>
      %38 = vector.shape_cast %37 : vector<16x128xf32> to vector<1x16x128xf32>
      %39 = tpu.reciprocal %38 {approx = true} : vector<1x16x128xf32> -> vector<1x16x128xf32>
      %40 = arith.mulf %38, %39 : vector<1x16x128xf32>
      %cst_17 = arith.constant 2.000000e+00 : f32
      %41 = vector.broadcast %cst_17 : f32 to vector<1x16x128xf32>
      %42 = arith.subf %41, %40 : vector<1x16x128xf32>
      %43 = arith.mulf %39, %42 : vector<1x16x128xf32>
      %cst_18 = arith.constant 6.250000e-02 : f32
      %44 = vector.broadcast %cst_18 : f32 to vector<1x16x128xf32>
      %45 = arith.mulf %44, %43 : vector<1x16x128xf32>
      %46 = vector.broadcast %45 : vector<1x16x128xf32> to vector<8x16x128xf32>
      %47 = arith.mulf %3, %46 : vector<8x16x128xf32>
      %cst_19 = arith.constant dense<0.000000e+00> : vector<8x128xf32>
      %48 = vector.multi_reduction <add>, %47, %cst_19 [1] : vector<8x16x128xf32> to vector<8x128xf32>
      %49 = vector.shape_cast %48 : vector<8x128xf32> to vector<8x1x128xf32>
      %50 = tpu.reciprocal %49 {approx = true} : vector<8x1x128xf32> -> vector<8x1x128xf32>
      %51 = arith.mulf %49, %50 : vector<8x1x128xf32>
      %cst_20 = arith.constant 2.000000e+00 : f32
      %52 = vector.broadcast %cst_20 : f32 to vector<8x1x128xf32>
      %53 = arith.subf %52, %51 : vector<8x1x128xf32>
      %54 = arith.mulf %50, %53 : vector<8x1x128xf32>
      %cst_21 = arith.constant 1.250000e-01 : f32
      %55 = vector.broadcast %cst_21 : f32 to vector<8x1x128xf32>
      %56 = arith.mulf %55, %54 : vector<8x1x128xf32>
      %57 = vector.broadcast %56 : vector<8x1x128xf32> to vector<8x16x128xf32>
      %58 = arith.mulf %3, %57 : vector<8x16x128xf32>
      %cst_22 = arith.constant dense<0.000000e+00> : vector<16x128xf32>
      %59 = vector.multi_reduction <add>, %58, %cst_22 [0] : vector<8x16x128xf32> to vector<16x128xf32>
      %60 = vector.shape_cast %59 : vector<16x128xf32> to vector<1x16x128xf32>
      %61 = tpu.reciprocal %60 {approx = true} : vector<1x16x128xf32> -> vector<1x16x128xf32>
      %62 = arith.mulf %60, %61 : vector<1x16x128xf32>
      %cst_23 = arith.constant 2.000000e+00 : f32
      %63 = vector.broadcast %cst_23 : f32 to vector<1x16x128xf32>
      %64 = arith.subf %63, %62 : vector<1x16x128xf32>
      %65 = arith.mulf %61, %64 : vector<1x16x128xf32>
      %cst_24 = arith.constant 6.250000e-02 : f32
      %66 = vector.broadcast %cst_24 : f32 to vector<1x16x128xf32>
      %67 = arith.mulf %66, %65 : vector<1x16x128xf32>
      %68 = vector.broadcast %67 : vector<1x16x128xf32> to vector<8x16x128xf32>
      %69 = arith.mulf %3, %68 : vector<8x16x128xf32>
      %cst_25 = arith.constant dense<0.000000e+00> : vector<8x128xf32>
      %70 = vector.multi_reduction <add>, %69, %cst_25 [1] : vector<8x16x128xf32> to vector<8x128xf32>
      %71 = vector.shape_cast %70 : vector<8x128xf32> to vector<8x1x128xf32>
      %72 = tpu.reciprocal %71 {approx = true} : vector<8x1x128xf32> -> vector<8x1x128xf32>
      %73 = arith.mulf %71, %72 : vector<8x1x128xf32>
      %cst_26 = arith.constant 2.000000e+00 : f32
      %74 = vector.broadcast %cst_26 : f32 to vector<8x1x128xf32>
      %75 = arith.subf %74, %73 : vector<8x1x128xf32>
      %76 = arith.mulf %72, %75 : vector<8x1x128xf32>
      %cst_27 = arith.constant 1.250000e-01 : f32
      %77 = vector.broadcast %cst_27 : f32 to vector<8x1x128xf32>
      %78 = arith.mulf %77, %76 : vector<8x1x128xf32>
      %79 = vector.broadcast %78 : vector<8x1x128xf32> to vector<8x16x128xf32>
      %80 = arith.mulf %3, %79 : vector<8x16x128xf32>
      %cst_28 = arith.constant dense<0.000000e+00> : vector<16x128xf32>
      %81 = vector.multi_reduction <add>, %80, %cst_28 [0] : vector<8x16x128xf32> to vector<16x128xf32>
      %82 = vector.shape_cast %81 : vector<16x128xf32> to vector<1x16x128xf32>
      %83 = tpu.reciprocal %82 {approx = true} : vector<1x16x128xf32> -> vector<1x16x128xf32>
      %84 = arith.mulf %82, %83 : vector<1x16x128xf32>
      %cst_29 = arith.constant 2.000000e+00 : f32
      %85 = vector.broadcast %cst_29 : f32 to vector<1x16x128xf32>
      %86 = arith.subf %85, %84 : vector<1x16x128xf32>
      %87 = arith.mulf %83, %86 : vector<1x16x128xf32>
      %cst_30 = arith.constant 6.250000e-02 : f32
      %88 = vector.broadcast %cst_30 : f32 to vector<1x16x128xf32>
      %89 = arith.mulf %88, %87 : vector<1x16x128xf32>
      %90 = vector.broadcast %89 : vector<1x16x128xf32> to vector<8x16x128xf32>
      %91 = arith.mulf %3, %90 : vector<8x16x128xf32>
      %cst_31 = arith.constant dense<0.000000e+00> : vector<8x128xf32>
      %92 = vector.multi_reduction <add>, %91, %cst_31 [1] : vector<8x16x128xf32> to vector<8x128xf32>
      %93 = vector.shape_cast %92 : vector<8x128xf32> to vector<8x1x128xf32>
      %94 = tpu.reciprocal %93 {approx = true} : vector<8x1x128xf32> -> vector<8x1x128xf32>
      %95 = arith.mulf %93, %94 : vector<8x1x128xf32>
      %cst_32 = arith.constant 2.000000e+00 : f32
      %96 = vector.broadcast %cst_32 : f32 to vector<8x1x128xf32>
      %97 = arith.subf %96, %95 : vector<8x1x128xf32>
      %98 = arith.mulf %94, %97 : vector<8x1x128xf32>
      %cst_33 = arith.constant 1.250000e-01 : f32
      %99 = vector.broadcast %cst_33 : f32 to vector<8x1x128xf32>
      %100 = arith.mulf %99, %98 : vector<8x1x128xf32>
      %101 = vector.broadcast %100 : vector<8x1x128xf32> to vector<8x16x128xf32>
      %102 = arith.mulf %3, %101 : vector<8x16x128xf32>
      %cst_34 = arith.constant dense<0.000000e+00> : vector<16x128xf32>
      %103 = vector.multi_reduction <add>, %102, %cst_34 [0] : vector<8x16x128xf32> to vector<16x128xf32>
      %104 = vector.shape_cast %103 : vector<16x128xf32> to vector<1x16x128xf32>
      %105 = tpu.reciprocal %104 {approx = true} : vector<1x16x128xf32> -> vector<1x16x128xf32>
      %106 = arith.mulf %104, %105 : vector<1x16x128xf32>
      %cst_35 = arith.constant 2.000000e+00 : f32
      %107 = vector.broadcast %cst_35 : f32 to vector<1x16x128xf32>
      %108 = arith.subf %107, %106 : vector<1x16x128xf32>
      %109 = arith.mulf %105, %108 : vector<1x16x128xf32>
      %cst_36 = arith.constant 6.250000e-02 : f32
      %110 = vector.broadcast %cst_36 : f32 to vector<1x16x128xf32>
      %111 = arith.mulf %110, %109 : vector<1x16x128xf32>
      scf.yield %100, %111 : vector<8x1x128xf32>, vector<1x16x128xf32>
    }
    %8 = vector.broadcast %7#0 : vector<8x1x128xf32> to vector<8x16x128xf32>
    %9 = arith.mulf %8, %3 : vector<8x16x128xf32>
    %10 = vector.broadcast %7#1 : vector<1x16x128xf32> to vector<8x16x128xf32>
    %11 = arith.mulf %9, %10 : vector<8x16x128xf32>
    %c0_4 = arith.constant 0 : index
    %c0_5 = arith.constant 0 : index
    %c0_6 = arith.constant 0 : index
    %12 = vector.load %arg2[%c0_4, %c0_5, %c0_6] : memref<8x16x128xf32, #tpu.memory_space<vmem>>, vector<8x16x128xf32>
    tpu.vector_store %arg2[%c0_4, %c0_5, %c0_6], %11 {strides = array<i32>} : memref<8x16x128xf32, #tpu.memory_space<vmem>>, vector<8x16x128xf32>,
    %13 = tpu.weird %11 : vector<8x16x128xf32> -> vector<8x16x128xi1>
    %cst_7 = arith.constant dense<true> : vector<8x16x128xi1>
    %14 = arith.xori %13, %cst_7 : vector<8x16x128xi1>
    %cst_8 = arith.constant dense<true> : vector<8x16x128xi1>
    %15 = arith.xori %14, %cst_8 : vector<8x16x128xi1>
    %16 = arith.extui %15 : vector<8x16x128xi1> to vector<8x16x128xi32>
    %17 = arith.sitofp %16 : vector<8x16x128xi32> to vector<8x16x128xf32>
    %18 = vector.shape_cast %17 : vector<8x16x128xf32> to vector<1x8x16x128xf32>
    %cst_9 = arith.constant dense<0xFF800000> : vector<1xf32>
    %19 = vector.multi_reduction <maximumf>, %18, %cst_9 [1, 2, 3] : vector<1x8x16x128xf32> to vector<1xf32>
    %20 = vector.shape_cast %19 : vector<1xf32> to vector<1x1x1x1xf32>
    %21 = vector.extract %20[0, 0, 0, 0] : f32 from vector<1x1x1x1xf32>
    %22 = vector.broadcast %21 : f32 to vector<1x8x128xf32>
    %c0_10 = arith.constant 0 : index
    %c0_11 = arith.constant 0 : index
    %c0_12 = arith.constant 0 : index
    %23 = vector.load %arg3[%c0_10, %c0_11, %c0_12] : memref<1x8x128xf32, #tpu.memory_space<vmem>>, vector<1x8x128xf32>
    tpu.vector_store %arg3[%c0_10, %c0_11, %c0_12], %22 {strides = array<i32>} : memref<1x8x128xf32, #tpu.memory_space<vmem>>, vector<1x8x128xf32>,
    return
  }
  func.func @transform_0(%arg0: i32) -> (i32, i32, i32) {
    %c0_i32 = arith.constant 0 : i32
    %c0_i32_0 = arith.constant 0 : i32
    %c0_i32_1 = arith.constant 0 : i32
    return %c0_i32, %c0_i32_0, %arg0 : i32, i32, i32
  }
  func.func @transform_1(%arg0: i32) -> (i32, i32, i32) {
    %c0_i32 = arith.constant 0 : i32
    %c0_i32_0 = arith.constant 0 : i32
    %c0_i32_1 = arith.constant 0 : i32
    return %c0_i32, %c0_i32_0, %arg0 : i32, i32, i32
  }
  func.func @transform_2(%arg0: i32) -> (i32, i32, i32) {
    %c0_i32 = arith.constant 0 : i32
    %c0_i32_0 = arith.constant 0 : i32
    %c0_i32_1 = arith.constant 0 : i32
    return %arg0, %c0_i32, %c0_i32_0 : i32, i32, i32
  }
}

</mosaic_0001>

<bundles_post_ra>
// kernel: branch_0_fun.1
= control target key start
LH: loop header
LB: loop body
LE: loop exit
PB: predicated region body
PF: predicated region fallthrough
CT: control target
= control target key end

     0   :  { %8 = vsyncpa [#allocation3], 0  ;;  %s2603_s0 = inlined_call_operand.vmem [shape: f32[8,16,128], index: 0, kind: input, shape index: {}]   ;;  %s2604_s1 = inlined_call_operand.hbm [shape: f32[8,16,128], index: 1, kind: output, shape index: {0}]   ;;  %s2605_s2 = inlined_call_operand.hbm [shape: f32[1,8,128], index: 2, kind: output, shape index: {1}]  }
   0x1   :  { %9 = vsyncpa [#allocation5], 0  ;;  %v12_v0 = vld [vmem:[%s2603_s0] sm:$0xff]  ;;  %v13_v1 = vld [vmem:[%s2603_s0 + $0x8] sm:$0xff] }
   0x2   :  { %v14_v2 = vld [vmem:[%s2603_s0 + $0x10] sm:$0xff]  ;;  %v15_v3 = vld [vmem:[%s2603_s0 + $0x18] sm:$0xff]  ;;  %v16_v4 = vld [vmem:[%s2603_s0 + $0x20] sm:$0xff]  ;;  %v1868_v5 = vmul.f32 10.0, %v12_v0  ;;  %v1870_v6 = vmul.f32 10.0, %v13_v1 }
   0x3   :  { %v17_v7 = vld [vmem:[%s2603_s0 + $0x28] sm:$0xff]  ;;  %v18_v8 = vld [vmem:[%s2603_s0 + $0x30] sm:$0xff]  ;;  %v19_v9 = vld [vmem:[%s2603_s0 + $0x38] sm:$0xff]  ;;  %v1881_v10 = vmul.f32 10.0, %v14_v2  ;;  %v1883_v11 = vmul.f32 10.0, %v15_v3  ;;  %v1885_v12 = vmul.f32 10.0, %v16_v4 }
   0x4   :  { %v20_v13 = vld [vmem:[%s2603_s0 + $0x40] sm:$0xff]  ;;  %v21_v14 = vld [vmem:[%s2603_s0 + $0x48] sm:$0xff]  ;;  %v22_v15 = vld [vmem:[%s2603_s0 + $0x50] sm:$0xff]  ;;  %v1896_v16 = vmul.f32 10.0, %v17_v7  ;;  %v1898_v17 = vmul.f32 10.0, %v18_v8  ;;  %v1900_v18 = vmul.f32 10.0, %v19_v9  ;;  %v44_v19 = vmin.f32 %v1868_v5, %v1870_v6 }
   0x5   :  { %v23_v20 = vld [vmem:[%s2603_s0 + $0x58] sm:$0xff]  ;;  %v24_v21 = vld [vmem:[%s2603_s0 + $0x60] sm:$0xff]  ;;  %v25_v22 = vld [vmem:[%s2603_s0 + $0x68] sm:$0xff]  ;;  %v1913_v23 = vmul.f32 10.0, %v20_v13  ;;  %v1915_v24 = vmul.f32 10.0, %v21_v14  ;;  %v1917_v25 = vmul.f32 10.0, %v22_v15  ;;  %v51_v26 = vmin.f32 %v1881_v10, %v1883_v11 }
   0x6   :  { %v26_v27 = vld [vmem:[%s2603_s0 + $0x70] sm:$0xff]  ;;  %v27_v28 = vld [vmem:[%s2603_s0 + $0x78] sm:$0xff]  ;;  %v1927_v29 = vmul.f32 10.0, %v23_v20  ;;  %v1929_v30 = vmul.f32 10.0, %v24_v21  ;;  %v1931_v31 = vmul.f32 10.0, %v25_v22  ;;  %v45_v32 = vrot.slane %v44_v19, 4 }
   0x7   :  { %v1933_v33 = vmul.f32 10.0, %v26_v27  ;;  %v1935_v34 = vmul.f32 10.0, %v27_v28  ;;  %v52_v35 = vrot.slane %v51_v26, 4  ;;  %v58_v36 = vmin.f32 %v1885_v12, %v1896_v16  ;;  %s1989_s0 = smov 0  }
   0x8   :  { %v46_v37 = vmin.f32 %v44_v19, %v45_v32  ;;  %v65_v38 = vmin.f32 %v1898_v17, %v1900_v18  ;;  %v72_v39 = vmin.f32 %v1913_v23, %v1915_v24  ;;  %v79_v40 = vmin.f32 %v1917_v25, %v1927_v29 }
   0x9   :  { %v53_v41 = vmin.f32 %v51_v26, %v52_v35  ;;  %v59_v42 = vrot.slane %v58_v36, 4  ;;  %v86_v43 = vmin.f32 %v1929_v30, %v1931_v31  ;;  %v93_v44 = vmin.f32 %v1933_v33, %v1935_v34 }
   0xa   :  { %v47_v45 = vrot.slane %v46_v37, 2  ;;  %v66_v46 = vrot.slane %v65_v38, 4  ;;  %v73_v47 = vrot.slane %v72_v39, 4  ;;  %v80_v48 = vrot.slane %v79_v40, 4 }
   0xb   :  { %v54_v49 = vrot.slane %v53_v41, 2  ;;  %v60_v50 = vmin.f32 %v58_v36, %v59_v42  ;;  %v87_v51 = vrot.slane %v86_v43, 4  ;;  %v94_v52 = vrot.slane %v93_v44, 4 }
   0xc   :  { %v48_v53 = vmin.f32 %v46_v37, %v47_v45  ;;  %v67_v54 = vmin.f32 %v65_v38, %v66_v46  ;;  %v74_v55 = vmin.f32 %v72_v39, %v73_v47  ;;  %v81_v56 = vmin.f32 %v79_v40, %v80_v48 }
   0xd   :  { %v55_v57 = vmin.f32 %v53_v41, %v54_v49  ;;  %v61_v58 = vrot.slane %v60_v50, 2  ;;  %v88_v59 = vmin.f32 %v86_v43, %v87_v51  ;;  %v95_v60 = vmin.f32 %v93_v44, %v94_v52 }
   0xe   :  { %v49_v61 = vrot.slane %v48_v53, 1  ;;  %v68_v62 = vrot.slane %v67_v54, 2  ;;  %v75_v63 = vrot.slane %v74_v55, 2  ;;  %v82_v0 = vrot.slane %v81_v56, 2 }
   0xf   :  { %v56_v1 = vrot.slane %v55_v57, 1  ;;  %v62_v2 = vmin.f32 %v60_v50, %v61_v58  ;;  %v89_v3 = vrot.slane %v88_v59, 2  ;;  %v96_v4 = vrot.slane %v95_v60, 2 }
  0x10   :  { %v1949_v7 = vmin.f32 %v48_v53, %v49_v61  ;;  %v69_v8 = vmin.f32 %v67_v54, %v68_v62  ;;  %v76_v9 = vmin.f32 %v74_v55, %v75_v63  ;;  %v83_v13 = vmin.f32 %v81_v56, %v82_v0 }
  0x11   :  { %v1951_v14 = vmin.f32 %v55_v57, %v56_v1  ;;  %v63_v15 = vrot.slane %v62_v2, 1  ;;  %v90_v19 = vmin.f32 %v88_v59, %v89_v3  ;;  %v97_v20 = vmin.f32 %v95_v60, %v96_v4 }
  0x12   :  { %v70_v21 = vrot.slane %v69_v8, 1  ;;  %v77_v22 = vrot.slane %v76_v9, 1  ;;  %v84_v26 = vrot.slane %v83_v13, 1  ;;  %v100_v27 = vmin.f32 %v1868_v5, %v1885_v12 }
  0x13   :  { %v1955_v28 = vmin.f32 %v62_v2, %v63_v15  ;;  %v91_v32 = vrot.slane %v90_v19, 1  ;;  %v98_v35 = vrot.slane %v97_v20, 1  ;;  %v101_v36 = vmin.f32 %v1881_v10, %v1898_v17 }
  0x14   :  { %v1959_v37 = vmin.f32 %v69_v8, %v70_v21  ;;  %v1961_v38 = vmin.f32 %v76_v9, %v77_v22  ;;  %v1963_v39 = vmin.f32 %v83_v13, %v84_v26  ;;  %v102_v40 = vmin.f32 %v100_v27, %v1913_v23 }
  0x15   :  { %v1966_v41 = vmin.f32 %v90_v19, %v91_v32  ;;  %v1968_v42 = vmin.f32 %v97_v20, %v98_v35  ;;  %v103_v43 = vmin.f32 %v101_v36, %v1917_v25  ;;  %v107_v44 = vmin.f32 %v1870_v6, %v1896_v16 }
  0x16   :  { %v104_v45 = vmin.f32 %v102_v40, %v1929_v30  ;;  %v108_v46 = vmin.f32 %v1883_v11, %v1900_v18  ;;  %v1985_v54 = vmov 0.0   ;;  %v1987_v55 = vmov 0.0  }
  0x17   :  { %2607 = vst [vmem:[#allocation8_spill] sm:$0xff] %v1968_v42  ;;  %v105_v47 = vmin.f32 %v103_v43, %v1933_v33  ;;  %v109_v48 = vmin.f32 %v107_v44, %v1915_v24 }
  0x18   :  { %v110_v49 = vmin.f32 %v108_v46, %v1927_v29 }
  0x19   :  { %v1979_v50 = vmin.f32 %v104_v45, %v105_v47  ;;  %v111_v51 = vmin.f32 %v109_v48, %v1931_v31 }
  0x1a   :  { %v112_v52 = vmin.f32 %v110_v49, %v1935_v34 }
  0x1c   :  { %v1983_v53 = vmin.f32 %v111_v51, %v112_v52 }
  0x1d LB: > { %v130_v56 = vmax.f32 %v1827_v55, %v1823_v54  ;;  %v145_v63 = vsub.f32 %v1827_v55, %v1868_v5  ;;  %v146_v0 = vsub.f32 %v1823_v54, %v1870_v6  ;;  %v147_v1 = vsub.f32 %v1827_v55, %v1881_v10  ;;  %s119_s0 = sadd.s32 1, %s1831_s0   ;;  %s1831_s0 = sphi %s1989_s0, %s119_s0   ;;  %v1827_v55 = vphi %v1987_v55, %v2614_v55   ;;  %v1823_v54 = vphi %v1985_v54, %v2613_v54  }
  0x1e   : > { %v148_v2 = vsub.f32 %v1823_v54, %v1883_v11  ;;  %v149_v9 = vsub.f32 %v1827_v55, %v1885_v12  ;;  %v150_v13 = vsub.f32 %v1823_v54, %v1896_v16  ;;  %v151_v15 = vsub.f32 %v1827_v55, %v1898_v17  ;;  %v2608_v42 = vld [vmem:[#allocation8_spill] sm:$0xff]  ;;  %p116_p0 = scmp.ge.s32.totalorder %s119_s0, 50  }
  0x1f   : > { %v131_v57 = vrot.slane %v130_v56, 4  ;;  %v152_v26 = vsub.f32 %v1823_v54, %v1900_v18  ;;  %v153_v35 = vsub.f32 %v1827_v55, %v1913_v23  ;;  %v154_v36 = vsub.f32 %v1823_v54, %v1915_v24  ;;  %s1833_s13 = smov (%p116_p0), [#allocation4]  }
  0x20   : > { %v155_v44 = vsub.f32 %v1827_v55, %v1917_v25  ;;  %v156_v45 = vsub.f32 %v1823_v54, %v1927_v29  ;;  %v157_v52 = vsub.f32 %v1827_v55, %v1929_v30  ;;  %s1317_s14 = sshll.u32 (%p116_p0), %s1833_s13, 4  ;;  %s1318_s14 = int_to_ptr.vmem [resolvable:$true] %s1317_s14 }
  0x21   : > { %v132_v58 = vmax.f32 %v130_v56, %v131_v57  ;;  %v158_v56 = vsub.f32 %v1823_v54, %v1931_v31  ;;  %s1761_s15 = scalar_lea.vmem (%p116_p0), %s1318_s14, 128  ;;  %p1766_p2 = scmp.lt.s32.totalorder (%p116_p0), %s1318_s14, %s1318_s14 }
  0x22   :  { %p1762_p1 = scmp.ne.s32.totalorder (%p116_p0), %s1318_s14, %s1761_s15  ;;  %p1767_p3 = scmp.lt.s32.totalorder (%p116_p0), %s1761_s15, %s1761_s15 }
  0x23   : > { %v133_v59 = vrot.slane %v132_v58, 2 }
  0x24   :  { %p1768_p4 = por (%p116_p0), %p1767_p3, %p1766_p2 }
  0x25   : > { %v134_v60 = vmax.f32 %v132_v58, %v133_v59 }
  0x26   :  { %p1769_p5 = pnand (%p116_p0), %p1768_p4, %p1762_p1 }
  0x27   : > { %v135_v61 = vrot.slane %v134_v60, 1 }
  0x29   : > { %v136_v62 = vmax.f32 %v134_v60, %v135_v61 }
  0x2b   : > { %v2011_v3 = vsub.f32 %v136_v62, %v1949_v7  ;;  %v2014_v4 = vsub.f32 %v136_v62, %v1951_v14  ;;  %v2017_v8 = vsub.f32 %v136_v62, %v1955_v28  ;;  %v2026_v19 = vsub.f32 %v136_v62, %v1959_v37 }
  0x2c   : > { %v2035_v32 = vsub.f32 %v136_v62, %v1961_v38  ;;  %v2043_v43 = vsub.f32 %v136_v62, %v1963_v39  ;;  %v2057_v59 = vsub.f32 %v136_v62, %v1966_v41 }
  0x2d   : > { %v161_v20 = vsub.f32 %v145_v63, %v2011_v3  ;;  %v162_v21 = vsub.f32 %v146_v0, %v2011_v3  ;;  %v163_v22 = vsub.f32 %v147_v1, %v2014_v4  ;;  %v164_v27 = vsub.f32 %v148_v2, %v2014_v4 }
  0x2e   : > { %v165_v40 = vsub.f32 %v149_v9, %v2017_v8  ;;  %v166_v46 = vsub.f32 %v150_v13, %v2017_v8  ;;  %v167_v47 = vsub.f32 %v151_v15, %v2026_v19  ;;  %v168_v57 = vsub.f32 %v152_v26, %v2026_v19 }
  0x2f   : > { %v177_v48 = vmul.f32 1.442695, %v161_v20  ;;  %v179_v49 = vmul.f32 1.442695, %v162_v21  ;;  %v181_v51 = vmul.f32 1.442695, %v163_v22  ;;  %v169_v60 = vsub.f32 %v153_v35, %v2035_v32 }
  0x30   : > { %v183_v58 = vmul.f32 1.442695, %v164_v27  ;;  %v185_v61 = vmul.f32 1.442695, %v165_v40  ;;  %v159_v63 = vsub.f32 %v1827_v55, %v1933_v33  ;;  %v170_v0 = vsub.f32 %v154_v36, %v2035_v32 }
  0x31   : > { %1393 = vpow2.f32 %v177_v48  ;;  %v187_v1 = vmul.f32 1.442695, %v166_v46  ;;  %v2064_v2 = vsub.f32 %v136_v62, %v2608_v42  ;;  %v171_v9 = vsub.f32 %v155_v44, %v2043_v43 }
  0x32   : > { %1395 = vpow2.f32 %v179_v49  ;;  %v189_v13 = vmul.f32 1.442695, %v167_v47  ;;  %v160_v15 = vsub.f32 %v1823_v54, %v1935_v34  ;;  %v172_v20 = vsub.f32 %v156_v45, %v2043_v43 }
  0x33   : > { %1397 = vpow2.f32 %v181_v51  ;;  %v191_v21 = vmul.f32 1.442695, %v168_v57  ;;  %v173_v55 = vsub.f32 %v157_v52, %v2057_v59  ;;  %v193_v22 = vmul.f32 1.442695, %v169_v60 }
  0x34   : > { %1399 = vpow2.f32 %v183_v58  ;;  %v174_v26 = vsub.f32 %v158_v56, %v2057_v59  ;;  %v195_v62 = vmul.f32 1.442695, %v170_v0  ;;  %v175_v27 = vsub.f32 %v159_v63, %v2064_v2 }
  0x35   : > { %1401 = vpow2.f32 %v185_v61  ;;  %v197_v35 = vmul.f32 1.442695, %v171_v9  ;;  %v176_v36 = vsub.f32 %v160_v15, %v2064_v2  ;;  %v199_v54 = vmul.f32 1.442695, %v172_v20 }
  0x36   : > { %1403 = vpow2.f32 %v187_v1  ;;  %v201_v40 = vmul.f32 1.442695, %v173_v55  ;;  %v203_v44 = vmul.f32 1.442695, %v174_v26  ;;  %v205_v46 = vmul.f32 1.442695, %v175_v27 }
  0x37   : > { %1405 = vpow2.f32 %v189_v13  ;;  %v207_v48 = vmul.f32 1.442695, %v176_v36 }
  0x38   : > { %1407 = vpow2.f32 %v191_v21 }
  0x39   : > { %1409 = vpow2.f32 %v193_v22 }
  0x3a   : > { %1411 = vpow2.f32 %v195_v62 }
  0x3b   : > { %v1394_v45 = vpop.eup %1393  ;;  %1413 = vpow2.f32 %v197_v35 }
  0x3c   : > { %v1396_v47 = vpop.eup %1395  ;;  %1415 = vpow2.f32 %v199_v54 }
  0x3d   : > { %v1398_v49 = vpop.eup %1397  ;;  %1417 = vpow2.f32 %v201_v40  ;;  %v209_v51 = vadd.f32 %v1396_v47, %v1394_v45 }
  0x3e   : > { %v1400_v52 = vpop.eup %1399  ;;  %1419 = vpow2.f32 %v203_v44 }
  0x3f   : > { %v1402_v56 = vpop.eup %1401  ;;  %1421 = vpow2.f32 %v205_v46  ;;  %v210_v57 = vrot.slane %v209_v51, 4  ;;  %v216_v58 = vadd.f32 %v1400_v52, %v1398_v49 }
  0x40   : > { %v1404_v60 = vpop.eup %1403  ;;  %1423 = vpow2.f32 %v207_v48 }
  0x41   : > { %v1406_v61 = vpop.eup %1405  ;;  %v211_v63 = vadd.f32 %v210_v57, %v209_v51  ;;  %v217_v0 = vrot.slane %v216_v58, 4  ;;  %v223_v1 = vadd.f32 %v1404_v60, %v1402_v56 }
  0x42   : > { %v1408_v9 = vpop.eup %1407 }
  0x43   : > { %v1410_v13 = vpop.eup %1409  ;;  %v212_v15 = vrot.slane %v211_v63, 2  ;;  %v218_v20 = vadd.f32 %v217_v0, %v216_v58  ;;  %v224_v21 = vrot.slane %v223_v1, 4  ;;  %v230_v55 = vadd.f32 %v1408_v9, %v1406_v61 }
  0x44   : > { %v1412_v22 = vpop.eup %1411 }
  0x45   : > { %v1414_v26 = vpop.eup %1413  ;;  %v213_v62 = vadd.f32 %v212_v15, %v211_v63  ;;  %v219_v27 = vrot.slane %v218_v20, 2  ;;  %v225_v35 = vadd.f32 %v224_v21, %v223_v1  ;;  %v231_v36 = vrot.slane %v230_v55, 4 }
  0x46   : > { %v1416_v54 = vpop.eup %1415  ;;  %v237_v40 = vadd.f32 %v1412_v22, %v1410_v13 }
  0x47   : > { %v1418_v44 = vpop.eup %1417  ;;  %v214_v45 = vrot.slane %v213_v62, 1  ;;  %v220_v46 = vadd.f32 %v219_v27, %v218_v20  ;;  %v226_v47 = vrot.slane %v225_v35, 2  ;;  %v232_v48 = vadd.f32 %v231_v36, %v230_v55 }
  0x48   : > { %v1420_v49 = vpop.eup %1419  ;;  %v238_v51 = vrot.slane %v237_v40, 4  ;;  %v244_v52 = vadd.f32 %v1416_v54, %v1414_v26 }
  0x49   : > { %v1422_v56 = vpop.eup %1421  ;;  %v215_v57 = vadd.f32 %v214_v45, %v213_v62  ;;  %v221_v58 = vrot.slane %v220_v46, 1  ;;  %v227_v60 = vadd.f32 %v226_v47, %v225_v35  ;;  %v233_v61 = vrot.slane %v232_v48, 2 }
  0x4a   : > { %v1424_v0 = vpop.eup %1423  ;;  %v239_v63 = vadd.f32 %v238_v51, %v237_v40  ;;  %v245_v9 = vrot.slane %v244_v52, 4  ;;  %v251_v1 = vadd.f32 %v1420_v49, %v1418_v44 }
  0x4b   : > { %v222_v15 = vadd.f32 %v221_v58, %v220_v46  ;;  %v228_v21 = vrot.slane %v227_v60, 1  ;;  %v234_v13 = vadd.f32 %v233_v61, %v232_v48  ;;  %v258_v22 = vadd.f32 %v1424_v0, %v1422_v56 }
  0x4c   : > { %v240_v42 = vrot.slane %v239_v63, 2  ;;  %v246_v20 = vadd.f32 %v245_v9, %v244_v52  ;;  %v252_v27 = vrot.slane %v251_v1, 4  ;;  %1425 = vlog2.f32 %v215_v57 }
  0x4d   : > { %v229_v55 = vadd.f32 %v228_v21, %v227_v60  ;;  %v235_v36 = vrot.slane %v234_v13, 1  ;;  %v259_v26 = vrot.slane %v258_v22, 4  ;;  %1427 = vlog2.f32 %v222_v15 }
  0x4e   : > { %v241_v62 = vadd.f32 %v240_v42, %v239_v63  ;;  %v247_v54 = vrot.slane %v246_v20, 2  ;;  %v253_v35 = vadd.f32 %v252_v27, %v251_v1 }
  0x4f   : > { %v236_v45 = vadd.f32 %v235_v36, %v234_v13  ;;  %v260_v47 = vadd.f32 %v259_v26, %v258_v22  ;;  %1429 = vlog2.f32 %v229_v55 }
  0x50   : > { %v242_v40 = vrot.slane %v241_v62, 1  ;;  %v248_v44 = vadd.f32 %v247_v54, %v246_v20  ;;  %v254_v46 = vrot.slane %v253_v35, 2 }
  0x51   : > { %v261_v49 = vrot.slane %v260_v47, 2  ;;  %1431 = vlog2.f32 %v236_v45 }
  0x52   : > { %v243_v48 = vadd.f32 %v242_v40, %v241_v62  ;;  %v249_v51 = vrot.slane %v248_v44, 1  ;;  %v255_v52 = vadd.f32 %v254_v46, %v253_v35 }
  0x53   : > { %v262_v56 = vadd.f32 %v261_v49, %v260_v47 }
  0x54   : > { %v250_v57 = vadd.f32 %v249_v51, %v248_v44  ;;  %v256_v58 = vrot.slane %v255_v52, 1  ;;  %1433 = vlog2.f32 %v243_v48 }
  0x55   : > { %v263_v60 = vrot.slane %v262_v56, 1 }
  0x56   : > { %v1426_v61 = vpop.eup %1425  ;;  %v257_v42 = vadd.f32 %v256_v58, %v255_v52  ;;  %1435 = vlog2.f32 %v250_v57 }
  0x57   : > { %v1428_v0 = vpop.eup %1427  ;;  %v264_v63 = vadd.f32 %v263_v60, %v262_v56  ;;  %v266_v9 = vmul.f32 0.6931472, %v1426_v61 }
  0x58   : > { %1437 = vlog2.f32 %v257_v42  ;;  %v268_v15 = vmul.f32 0.6931472, %v1428_v0 }
  0x59   : > { %v1430_v1 = vpop.eup %1429  ;;  %1439 = vlog2.f32 %v264_v63  ;;  %v281_v20 = vadd.f32 %v266_v9, %v2011_v3 }
  0x5a   : > { %v270_v13 = vmul.f32 0.6931472, %v1430_v1  ;;  %v282_v27 = vadd.f32 %v268_v15, %v2014_v4 }
  0x5b   : > { %v1432_v21 = vpop.eup %1431  ;;  %v289_v35 = vsub.f32 0.0, %v281_v20 }
  0x5c   : > { %v272_v22 = vmul.f32 0.6931472, %v1432_v21  ;;  %v283_v26 = vadd.f32 %v270_v13, %v2017_v8  ;;  %v290_v40 = vsub.f32 0.0, %v282_v27 }
  0x5d   : > { %v297_v56 = vadd.f32 -2.0794415, %v289_v35 }
  0x5e   : > { %v1434_v55 = vpop.eup %1433  ;;  %v284_v54 = vadd.f32 %v272_v22, %v2026_v19  ;;  %v291_v3 = vsub.f32 0.0, %v283_v26  ;;  %v298_v58 = vadd.f32 -2.0794415, %v290_v40 }
  0x5f   : > { %v274_v36 = vmul.f32 0.6931472, %v1434_v55  ;;  %v315_v55 = vsub.f32 %v297_v56, %v1870_v6 }
  0x60   : > { %v1436_v62 = vpop.eup %1435  ;;  %v292_v52 = vsub.f32 0.0, %v284_v54 }
  0x61   : > { %v276_v45 = vmul.f32 0.6931472, %v1436_v62  ;;  %v285_v47 = vadd.f32 %v274_v36, %v2035_v32  ;;  %v299_v32 = vadd.f32 -2.0794415, %v291_v3  ;;  %v317_v36 = vsub.f32 %v298_v58, %v1883_v11 }
  0x62   : > { %v1438_v44 = vpop.eup %1437  ;;  %v300_v63 = vadd.f32 -2.0794415, %v292_v52 }
  0x63   : > { %v1440_v46 = vpop.eup %1439  ;;  %v278_v49 = vmul.f32 0.6931472, %v1438_v44  ;;  %v286_v48 = vadd.f32 %v276_v45, %v2043_v43  ;;  %v293_v51 = vsub.f32 0.0, %v285_v47  ;;  %v318_v54 = vsub.f32 %v299_v32, %v1885_v12 }
  0x64   : > { %v280_v4 = vmul.f32 0.6931472, %v1440_v46  ;;  %v319_v35 = vsub.f32 %v299_v32, %v1896_v16  ;;  %v320_v45 = vsub.f32 %v300_v63, %v1898_v17  ;;  %v321_v46 = vsub.f32 %v300_v63, %v1900_v18 }
  0x65   : > { %v287_v8 = vadd.f32 %v278_v49, %v2057_v59  ;;  %v294_v57 = vsub.f32 0.0, %v286_v48  ;;  %v301_v19 = vadd.f32 -2.0794415, %v293_v51  ;;  %v314_v59 = vsub.f32 %v297_v56, %v1868_v5 }
  0x66   : > { %v288_v60 = vadd.f32 %v280_v4, %v2064_v2  ;;  %v316_v2 = vsub.f32 %v298_v58, %v1881_v10 }
  0x67   : > { %v295_v61 = vsub.f32 0.0, %v287_v8  ;;  %v302_v42 = vadd.f32 -2.0794415, %v294_v57  ;;  %v305_v9 = vmax.f32 %v297_v56, %v301_v19  ;;  %v322_v48 = vsub.f32 %v301_v19, %v1913_v23 }
  0x68   : > { %v296_v0 = vsub.f32 0.0, %v288_v60  ;;  %v323_v51 = vsub.f32 %v301_v19, %v1915_v24 }
  0x69   : > { %v303_v1 = vadd.f32 -2.0794415, %v295_v61  ;;  %v306_v43 = vmax.f32 %v298_v58, %v302_v42  ;;  %v324_v4 = vsub.f32 %v302_v42, %v1917_v25  ;;  %v325_v60 = vsub.f32 %v302_v42, %v1927_v29 }
  0x6a   : > { %v304_v15 = vadd.f32 -2.0794415, %v296_v0 }
  0x6b   : > { %v307_v21 = vmax.f32 %v299_v32, %v303_v1  ;;  %v309_v22 = vmax.f32 %v305_v9, %v306_v43  ;;  %v326_v0 = vsub.f32 %v303_v1, %v1929_v30  ;;  %v327_v9 = vsub.f32 %v303_v1, %v1931_v31 }
  0x6c   : > { %v308_v13 = vmax.f32 %v300_v63, %v304_v15 }
  0x6e   : > { %v310_v20 = vmax.f32 %v307_v21, %v308_v13  ;;  %v328_v13 = vsub.f32 %v304_v15, %v1933_v33 }
  0x70   : > { %v311_v27 = vmax.f32 %v309_v22, %v310_v20  ;;  %v329_v20 = vsub.f32 %v304_v15, %v1935_v34 }
  0x72   : > { %v2087_v26 = vsub.f32 %v311_v27, %v1979_v50  ;;  %v2090_v62 = vsub.f32 %v311_v27, %v1983_v53 }
  0x74   : > { %v330_v47 = vsub.f32 %v314_v59, %v2087_v26  ;;  %v331_v40 = vsub.f32 %v315_v55, %v2090_v62  ;;  %v332_v44 = vsub.f32 %v316_v2, %v2087_v26  ;;  %v333_v49 = vsub.f32 %v317_v36, %v2090_v62 }
  0x75   : > { %v334_v3 = vsub.f32 %v318_v54, %v2087_v26  ;;  %v335_v52 = vsub.f32 %v319_v35, %v2090_v62  ;;  %v336_v56 = vsub.f32 %v320_v45, %v2087_v26  ;;  %v337_v61 = vsub.f32 %v321_v46, %v2090_v62 }
  0x76   : > { %v346_v8 = vmul.f32 1.442695, %v330_v47  ;;  %v348_v57 = vmul.f32 1.442695, %v331_v40  ;;  %v350_v58 = vmul.f32 1.442695, %v332_v44  ;;  %v338_v63 = vsub.f32 %v322_v48, %v2087_v26 }
  0x77   : > { %v352_v32 = vmul.f32 1.442695, %v333_v49  ;;  %v354_v19 = vmul.f32 1.442695, %v334_v3  ;;  %v339_v43 = vsub.f32 %v323_v51, %v2090_v62  ;;  %v356_v21 = vmul.f32 1.442695, %v335_v52 }
  0x78   : > { %1441 = vpow2.f32 %v346_v8  ;;  %v340_v22 = vsub.f32 %v324_v4, %v2087_v26  ;;  %v358_v42 = vmul.f32 1.442695, %v336_v56  ;;  %v341_v27 = vsub.f32 %v325_v60, %v2090_v62 }
  0x79   : > { %1443 = vpow2.f32 %v348_v57  ;;  %v360_v59 = vmul.f32 1.442695, %v337_v61  ;;  %v342_v55 = vsub.f32 %v326_v0, %v2087_v26  ;;  %v362_v1 = vmul.f32 1.442695, %v338_v63 }
  0x7a   : > { %1445 = vpow2.f32 %v350_v58  ;;  %v343_v2 = vsub.f32 %v327_v9, %v2090_v62  ;;  %v364_v36 = vmul.f32 1.442695, %v339_v43  ;;  %v344_v54 = vsub.f32 %v328_v13, %v2087_v26 }
  0x7b   : > { %1447 = vpow2.f32 %v352_v32  ;;  %v366_v35 = vmul.f32 1.442695, %v340_v22  ;;  %v345_v45 = vsub.f32 %v329_v20, %v2090_v62  ;;  %v368_v15 = vmul.f32 1.442695, %v341_v27 }
  0x7c   : > { %1449 = vpow2.f32 %v354_v19  ;;  %v370_v47 = vmul.f32 1.442695, %v342_v55  ;;  %v372_v40 = vmul.f32 1.442695, %v343_v2  ;;  %v374_v46 = vmul.f32 1.442695, %v344_v54 }
  0x7d   : > { %1451 = vpow2.f32 %v356_v21  ;;  %v376_v48 = vmul.f32 1.442695, %v345_v45 }
  0x7e   : > { %1453 = vpow2.f32 %v358_v42 }
  0x7f   : > { %1455 = vpow2.f32 %v360_v59 }
  0x80   : > { %1457 = vpow2.f32 %v362_v1 }
  0x81   : > { %1459 = vpow2.f32 %v364_v36 }
  0x82   : > { %v1442_v44 = vpop.eup %1441  ;;  %1461 = vpow2.f32 %v366_v35 }
  0x83   : > { %v1444_v49 = vpop.eup %1443  ;;  %1463 = vpow2.f32 %v368_v15 }
  0x84   : > { %v1446_v3 = vpop.eup %1445  ;;  %1465 = vpow2.f32 %v370_v47 }
  0x85   : > { %v1448_v51 = vpop.eup %1447  ;;  %1467 = vpow2.f32 %v372_v40  ;;  %v378_v4 = vadd.f32 %v1446_v3, %v1442_v44 }
  0x86   : > { %v1450_v52 = vpop.eup %1449  ;;  %1469 = vpow2.f32 %v374_v46  ;;  %v385_v56 = vadd.f32 %v1448_v51, %v1444_v49 }
  0x87   : > { %v1452_v8 = vpop.eup %1451  ;;  %1471 = vpow2.f32 %v376_v48  ;;  %v379_v57 = vadd.f32 %v1450_v52, %v378_v4 }
  0x88   : > { %v1454_v58 = vpop.eup %1453  ;;  %v386_v60 = vadd.f32 %v1452_v8, %v385_v56 }
  0x89   : > { %v1456_v61 = vpop.eup %1455  ;;  %v380_v32 = vadd.f32 %v1454_v58, %v379_v57 }
  0x8a   : > { %v1458_v0 = vpop.eup %1457  ;;  %v387_v63 = vadd.f32 %v1456_v61, %v386_v60 }
  0x8b   : > { %v1460_v19 = vpop.eup %1459  ;;  %v381_v9 = vadd.f32 %v1458_v0, %v380_v32 }
  0x8c   : > { %v1462_v43 = vpop.eup %1461  ;;  %v388_v21 = vadd.f32 %v1460_v19, %v387_v63 }
  0x8d   : > { %v1464_v13 = vpop.eup %1463  ;;  %v382_v22 = vadd.f32 %v1462_v43, %v381_v9 }
  0x8e   : > { %v1466_v42 = vpop.eup %1465  ;;  %v389_v20 = vadd.f32 %v1464_v13, %v388_v21 }
  0x8f   : > { %v1468_v27 = vpop.eup %1467  ;;  %v383_v59 = vadd.f32 %v1466_v42, %v382_v22 }
  0x90   : > { %v1470_v55 = vpop.eup %1469  ;;  %v390_v1 = vadd.f32 %v1468_v27, %v389_v20 }
  0x91   : > { %v1472_v2 = vpop.eup %1471  ;;  %v384_v36 = vadd.f32 %v1470_v55, %v383_v59 }
  0x92   : > { %v391_v54 = vadd.f32 %v1472_v2, %v390_v1 }
  0x93   : > { %1473 = vlog2.f32 %v384_v36 }
  0x94   : > { %1475 = vlog2.f32 %v391_v54 }
  0x9d   : > { %v1474_v35 = vpop.eup %1473 }
  0x9e   : > { %v1476_v45 = vpop.eup %1475  ;;  %v393_v15 = vmul.f32 0.6931472, %v1474_v35 }
  0x9f   : > { %v395_v47 = vmul.f32 0.6931472, %v1476_v45 }
  0xa0   : > { %v396_v40 = vadd.f32 %v393_v15, %v2087_v26 }
  0xa1   : > { %v397_v44 = vadd.f32 %v395_v47, %v2090_v62 }
  0xa2   : > { %v398_v46 = vsub.f32 0.0, %v396_v40 }
  0xa3   : > { %v399_v49 = vsub.f32 0.0, %v397_v44 }
  0xa4   : > { %v2122_v48 = vadd.f32 -2.7725887, %v398_v46 }
  0xa5   : > { %v2124_v3 = vadd.f32 -2.7725887, %v399_v49 }
  0xa6   : > { %v417_v26 = vsub.f32 %v2122_v48, %v1868_v5  ;;  %v419_v60 = vsub.f32 %v2122_v48, %v1881_v10  ;;  %v421_v19 = vsub.f32 %v2122_v48, %v1885_v12  ;;  %v423_v43 = vsub.f32 %v2122_v48, %v1898_v17 }
  0xa7   : > { %v402_v51 = vmax.f32 %v2122_v48, %v2124_v3  ;;  %v418_v62 = vsub.f32 %v2124_v3, %v1870_v6  ;;  %v420_v61 = vsub.f32 %v2124_v3, %v1883_v11  ;;  %v422_v9 = vsub.f32 %v2124_v3, %v1896_v16 }
  0xa8   : > { %v424_v20 = vsub.f32 %v2124_v3, %v1900_v18  ;;  %v425_v55 = vsub.f32 %v2122_v48, %v1913_v23  ;;  %v426_v1 = vsub.f32 %v2124_v3, %v1915_v24  ;;  %v427_v54 = vsub.f32 %v2122_v48, %v1917_v25 }
  0xa9   : > { %v403_v4 = vrot.slane %v402_v51, 4  ;;  %v428_v35 = vsub.f32 %v2124_v3, %v1927_v29  ;;  %v429_v46 = vsub.f32 %v2122_v48, %v1929_v30  ;;  %v430_v49 = vsub.f32 %v2124_v3, %v1931_v31 }
  0xab   : > { %v404_v52 = vmax.f32 %v402_v51, %v403_v4 }
  0xad   : > { %v405_v56 = vrot.slane %v404_v52, 2 }
  0xaf   : > { %v406_v8 = vmax.f32 %v404_v52, %v405_v56 }
  0xb1   : > { %v407_v57 = vrot.slane %v406_v8, 1 }
  0xb3   : > { %v408_v58 = vmax.f32 %v406_v8, %v407_v57  ;;  %v431_v57 = vsub.f32 %v2122_v48, %v1933_v33 }
  0xb5   : > { %v2137_v32 = vsub.f32 %v408_v58, %v1949_v7  ;;  %v2140_v0 = vsub.f32 %v408_v58, %v1951_v14  ;;  %v2143_v63 = vsub.f32 %v408_v58, %v1955_v28  ;;  %v2152_v21 = vsub.f32 %v408_v58, %v1959_v37 }
  0xb6   : > { %v2161_v59 = vsub.f32 %v408_v58, %v1961_v38  ;;  %v2169_v36 = vsub.f32 %v408_v58, %v1963_v39  ;;  %v2183_v52 = vsub.f32 %v408_v58, %v1966_v41 }
  0xb7   : > { %v433_v13 = vsub.f32 %v417_v26, %v2137_v32  ;;  %v434_v22 = vsub.f32 %v418_v62, %v2137_v32  ;;  %v435_v42 = vsub.f32 %v419_v60, %v2140_v0  ;;  %v436_v27 = vsub.f32 %v420_v61, %v2140_v0  ;;  %v2609_v60 = vld [vmem:[#allocation8_spill] sm:$0xff] }
  0xb8   : > { %v437_v2 = vsub.f32 %v421_v19, %v2143_v63  ;;  %v438_v45 = vsub.f32 %v422_v9, %v2143_v63  ;;  %v439_v15 = vsub.f32 %v423_v43, %v2152_v21  ;;  %v440_v51 = vsub.f32 %v424_v20, %v2152_v21 }
  0xb9   : > { %v449_v47 = vmul.f32 1.442695, %v433_v13  ;;  %v451_v40 = vmul.f32 1.442695, %v434_v22  ;;  %v453_v44 = vmul.f32 1.442695, %v435_v42  ;;  %v441_v56 = vsub.f32 %v425_v55, %v2161_v59 }
  0xba   : > { %v455_v4 = vmul.f32 1.442695, %v436_v27  ;;  %v457_v8 = vmul.f32 1.442695, %v437_v2  ;;  %v442_v26 = vsub.f32 %v426_v1, %v2161_v59  ;;  %v459_v62 = vmul.f32 1.442695, %v438_v45 }
  0xbb   : > { %1477 = vpow2.f32 %v449_v47  ;;  %v2190_v61 = vsub.f32 %v408_v58, %v2609_v60  ;;  %v443_v19 = vsub.f32 %v427_v54, %v2169_v36  ;;  %v461_v9 = vmul.f32 1.442695, %v439_v15 }
  0xbc   : > { %1479 = vpow2.f32 %v451_v40  ;;  %v432_v43 = vsub.f32 %v2124_v3, %v1935_v34  ;;  %v444_v13 = vsub.f32 %v428_v35, %v2169_v36  ;;  %v463_v22 = vmul.f32 1.442695, %v440_v51 }
  0xbd   : > { %1481 = vpow2.f32 %v453_v44  ;;  %v445_v48 = vsub.f32 %v429_v46, %v2183_v52  ;;  %v465_v42 = vmul.f32 1.442695, %v441_v56  ;;  %v446_v20 = vsub.f32 %v430_v49, %v2183_v52 }
  0xbe   : > { %1483 = vpow2.f32 %v455_v4  ;;  %v467_v58 = vmul.f32 1.442695, %v442_v26  ;;  %v447_v27 = vsub.f32 %v431_v57, %v2190_v61  ;;  %v469_v55 = vmul.f32 1.442695, %v443_v19 }
  0xbf   : > { %1485 = vpow2.f32 %v457_v8  ;;  %v448_v1 = vsub.f32 %v432_v43, %v2190_v61  ;;  %v471_v3 = vmul.f32 1.442695, %v444_v13  ;;  %v473_v2 = vmul.f32 1.442695, %v445_v48 }
  0xc0   : > { %1487 = vpow2.f32 %v459_v62  ;;  %v475_v54 = vmul.f32 1.442695, %v446_v20  ;;  %v477_v45 = vmul.f32 1.442695, %v447_v27 }
  0xc1   : > { %1489 = vpow2.f32 %v461_v9  ;;  %v479_v47 = vmul.f32 1.442695, %v448_v1 }
  0xc2   : > { %1491 = vpow2.f32 %v463_v22 }
  0xc3   : > { %1493 = vpow2.f32 %v465_v42 }
  0xc4   : > { %1495 = vpow2.f32 %v467_v58 }
  0xc5   : > { %v1478_v35 = vpop.eup %1477  ;;  %1497 = vpow2.f32 %v469_v55 }
  0xc6   : > { %v1480_v15 = vpop.eup %1479  ;;  %1499 = vpow2.f32 %v471_v3 }
  0xc7   : > { %v1482_v40 = vpop.eup %1481  ;;  %1501 = vpow2.f32 %v473_v2  ;;  %v481_v44 = vadd.f32 %v1480_v15, %v1478_v35 }
  0xc8   : > { %v1484_v46 = vpop.eup %1483  ;;  %1503 = vpow2.f32 %v475_v54 }
  0xc9   : > { %v1486_v49 = vpop.eup %1485  ;;  %1505 = vpow2.f32 %v477_v45  ;;  %v482_v51 = vrot.slane %v481_v44, 4  ;;  %v488_v4 = vadd.f32 %v1484_v46, %v1482_v40 }
  0xca   : > { %v1488_v56 = vpop.eup %1487  ;;  %1507 = vpow2.f32 %v479_v47 }
  0xcb   : > { %v1490_v8 = vpop.eup %1489  ;;  %v483_v57 = vadd.f32 %v482_v51, %v481_v44  ;;  %v489_v26 = vrot.slane %v488_v4, 4  ;;  %v495_v62 = vadd.f32 %v1488_v56, %v1486_v49 }
  0xcc   : > { %v1492_v19 = vpop.eup %1491 }
  0xcd   : > { %v1494_v9 = vpop.eup %1493  ;;  %v484_v43 = vrot.slane %v483_v57, 2  ;;  %v490_v13 = vadd.f32 %v489_v26, %v488_v4  ;;  %v496_v22 = vrot.slane %v495_v62, 4  ;;  %v502_v48 = vadd.f32 %v1492_v19, %v1490_v8 }
  0xce   : > { %v1496_v42 = vpop.eup %1495 }
  0xcf   : > { %v1498_v20 = vpop.eup %1497  ;;  %v485_v58 = vadd.f32 %v484_v43, %v483_v57  ;;  %v491_v27 = vrot.slane %v490_v13, 2  ;;  %v497_v55 = vadd.f32 %v496_v22, %v495_v62  ;;  %v503_v1 = vrot.slane %v502_v48, 4 }
  0xd0   : > { %v1500_v3 = vpop.eup %1499  ;;  %v509_v2 = vadd.f32 %v1496_v42, %v1494_v9 }
  0xd1   : > { %v1502_v54 = vpop.eup %1501  ;;  %v486_v35 = vrot.slane %v485_v58, 1  ;;  %v492_v45 = vadd.f32 %v491_v27, %v490_v13  ;;  %v498_v15 = vrot.slane %v497_v55, 2  ;;  %v504_v47 = vadd.f32 %v503_v1, %v502_v48 }
  0xd2   : > { %v1504_v40 = vpop.eup %1503  ;;  %v510_v44 = vrot.slane %v509_v2, 4  ;;  %v516_v46 = vadd.f32 %v1500_v3, %v1498_v20 }
  0xd3   : > { %v1506_v49 = vpop.eup %1505  ;;  %v487_v51 = vadd.f32 %v486_v35, %v485_v58  ;;  %v493_v4 = vrot.slane %v492_v45, 1  ;;  %v499_v56 = vadd.f32 %v498_v15, %v497_v55  ;;  %v505_v8 = vrot.slane %v504_v47, 2 }
  0xd4   : > { %v1508_v26 = vpop.eup %1507  ;;  %v511_v57 = vadd.f32 %v510_v44, %v509_v2  ;;  %v517_v19 = vrot.slane %v516_v46, 4  ;;  %v523_v62 = vadd.f32 %v1504_v40, %v1502_v54 }
  0xd5   : > { %v494_v43 = vadd.f32 %v493_v4, %v492_v45  ;;  %v500_v22 = vrot.slane %v499_v56, 1  ;;  %v506_v9 = vadd.f32 %v505_v8, %v504_v47  ;;  %v530_v42 = vadd.f32 %v1508_v26, %v1506_v49 }
  0xd6   : > { %v512_v60 = vrot.slane %v511_v57, 2  ;;  %v518_v13 = vadd.f32 %v517_v19, %v516_v46  ;;  %v524_v27 = vrot.slane %v523_v62, 4  ;;  %1509 = vlog2.f32 %v487_v51 }
  0xd7   : > { %v501_v48 = vadd.f32 %v500_v22, %v499_v56  ;;  %v507_v1 = vrot.slane %v506_v9, 1  ;;  %v531_v20 = vrot.slane %v530_v42, 4  ;;  %1511 = vlog2.f32 %v494_v43 }
  0xd8   : > { %v513_v58 = vadd.f32 %v512_v60, %v511_v57  ;;  %v519_v3 = vrot.slane %v518_v13, 2  ;;  %v525_v55 = vadd.f32 %v524_v27, %v523_v62 }
  0xd9   : > { %v508_v35 = vadd.f32 %v507_v1, %v506_v9  ;;  %v532_v15 = vadd.f32 %v531_v20, %v530_v42  ;;  %1513 = vlog2.f32 %v501_v48 }
  0xda   : > { %v514_v2 = vrot.slane %v513_v58, 1  ;;  %v520_v54 = vadd.f32 %v519_v3, %v518_v13  ;;  %v526_v45 = vrot.slane %v525_v55, 2 }
  0xdb   : > { %v533_v40 = vrot.slane %v532_v15, 2  ;;  %1515 = vlog2.f32 %v508_v35 }
  0xdc   : > { %v515_v47 = vadd.f32 %v514_v2, %v513_v58  ;;  %v521_v44 = vrot.slane %v520_v54, 1  ;;  %v527_v46 = vadd.f32 %v526_v45, %v525_v55 }
  0xdd   : > { %v534_v49 = vadd.f32 %v533_v40, %v532_v15 }
  0xde   : > { %v522_v51 = vadd.f32 %v521_v44, %v520_v54  ;;  %v528_v4 = vrot.slane %v527_v46, 1  ;;  %1517 = vlog2.f32 %v515_v47 }
  0xdf   : > { %v535_v56 = vrot.slane %v534_v49, 1 }
  0xe0   : > { %v1510_v8 = vpop.eup %1509  ;;  %v529_v60 = vadd.f32 %v528_v4, %v527_v46  ;;  %1519 = vlog2.f32 %v522_v51 }
  0xe1   : > { %v1512_v26 = vpop.eup %1511  ;;  %v536_v57 = vadd.f32 %v535_v56, %v534_v49  ;;  %v538_v19 = vmul.f32 0.6931472, %v1510_v8 }
  0xe2   : > { %1521 = vlog2.f32 %v529_v60  ;;  %v540_v43 = vmul.f32 0.6931472, %v1512_v26 }
  0xe3   : > { %v1514_v62 = vpop.eup %1513  ;;  %1523 = vlog2.f32 %v536_v57  ;;  %v553_v13 = vadd.f32 %v538_v19, %v2137_v32 }
  0xe4   : > { %v542_v9 = vmul.f32 0.6931472, %v1514_v62  ;;  %v554_v27 = vadd.f32 %v540_v43, %v2140_v0 }
  0xe5   : > { %v1516_v22 = vpop.eup %1515  ;;  %v561_v55 = vsub.f32 0.0, %v553_v13 }
  0xe6   : > { %v544_v42 = vmul.f32 0.6931472, %v1516_v22  ;;  %v555_v20 = vadd.f32 %v542_v9, %v2143_v63  ;;  %v562_v2 = vsub.f32 0.0, %v554_v27 }
  0xe7   : > { %v569_v49 = vadd.f32 -2.0794415, %v561_v55 }
  0xe8   : > { %v1518_v48 = vpop.eup %1517  ;;  %v556_v3 = vadd.f32 %v544_v42, %v2152_v21  ;;  %v563_v32 = vsub.f32 0.0, %v555_v20  ;;  %v570_v4 = vadd.f32 -2.0794415, %v562_v2 }
  0xe9   : > { %v546_v1 = vmul.f32 0.6931472, %v1518_v48  ;;  %v587_v48 = vsub.f32 %v569_v49, %v1870_v6 }
  0xea   : > { %v1520_v58 = vpop.eup %1519  ;;  %v564_v46 = vsub.f32 0.0, %v556_v3 }
  0xeb   : > { %v548_v35 = vmul.f32 0.6931472, %v1520_v58  ;;  %v557_v15 = vadd.f32 %v546_v1, %v2161_v59  ;;  %v571_v59 = vadd.f32 -2.0794415, %v563_v32  ;;  %v589_v1 = vsub.f32 %v570_v4, %v1883_v11 }
  0xec   : > { %v1522_v54 = vpop.eup %1521  ;;  %v572_v57 = vadd.f32 -2.0794415, %v564_v46 }
  0xed   : > { %v1524_v45 = vpop.eup %1523  ;;  %v550_v40 = vmul.f32 0.6931472, %v1522_v54  ;;  %v558_v47 = vadd.f32 %v548_v35, %v2169_v36  ;;  %v565_v44 = vsub.f32 0.0, %v557_v15  ;;  %v590_v3 = vsub.f32 %v571_v59, %v1885_v12 }
  0xee   : > { %v552_v0 = vmul.f32 0.6931472, %v1524_v45  ;;  %v591_v55 = vsub.f32 %v571_v59, %v1896_v16  ;;  %v592_v35 = vsub.f32 %v572_v57, %v1898_v17  ;;  %v593_v45 = vsub.f32 %v572_v57, %v1900_v18 }
  0xef   : > { %v559_v63 = vadd.f32 %v550_v40, %v2183_v52  ;;  %v566_v51 = vsub.f32 0.0, %v558_v47  ;;  %v573_v21 = vadd.f32 -2.0794415, %v565_v44  ;;  %v586_v52 = vsub.f32 %v569_v49, %v1868_v5 }
  0xf0   : > { %v560_v56 = vadd.f32 %v552_v0, %v2190_v61  ;;  %v588_v61 = vsub.f32 %v570_v4, %v1881_v10 }
  0xf1   : > { %v567_v8 = vsub.f32 0.0, %v559_v63  ;;  %v574_v60 = vadd.f32 -2.0794415, %v566_v51  ;;  %v577_v19 = vmax.f32 %v569_v49, %v573_v21  ;;  %v594_v47 = vsub.f32 %v573_v21, %v1913_v23 }
  0xf2   : > { %v568_v26 = vsub.f32 0.0, %v560_v56  ;;  %v595_v44 = vsub.f32 %v573_v21, %v1915_v24 }
  0xf3   : > { %v575_v62 = vadd.f32 -2.0794415, %v567_v8  ;;  %v578_v36 = vmax.f32 %v570_v4, %v574_v60  ;;  %v596_v0 = vsub.f32 %v574_v60, %v1917_v25  ;;  %v597_v56 = vsub.f32 %v574_v60, %v1927_v29 }
  0xf4   : > { %v576_v43 = vadd.f32 -2.0794415, %v568_v26 }
  0xf5   : > { %v579_v22 = vmax.f32 %v571_v59, %v575_v62  ;;  %v581_v42 = vmax.f32 %v577_v19, %v578_v36  ;;  %v598_v26 = vsub.f32 %v575_v62, %v1929_v30  ;;  %v599_v19 = vsub.f32 %v575_v62, %v1931_v31 }
  0xf6   : > { %v580_v9 = vmax.f32 %v572_v57, %v576_v43 }
  0xf8   : > { %v582_v13 = vmax.f32 %v579_v22, %v580_v9  ;;  %v600_v9 = vsub.f32 %v576_v43, %v1933_v33 }
  0xfa   : > { %v583_v27 = vmax.f32 %v581_v42, %v582_v13  ;;  %v601_v13 = vsub.f32 %v576_v43, %v1935_v34 }
  0xfc   : > { %v2213_v20 = vsub.f32 %v583_v27, %v1979_v50  ;;  %v2216_v58 = vsub.f32 %v583_v27, %v1983_v53 }
  0xfe   : > { %v602_v15 = vsub.f32 %v586_v52, %v2213_v20  ;;  %v603_v2 = vsub.f32 %v587_v48, %v2216_v58  ;;  %v604_v54 = vsub.f32 %v588_v61, %v2213_v20  ;;  %v605_v40 = vsub.f32 %v589_v1, %v2216_v58 }
  0xff   : > { %v606_v32 = vsub.f32 %v590_v3, %v2213_v20  ;;  %v607_v46 = vsub.f32 %v591_v55, %v2216_v58  ;;  %v608_v49 = vsub.f32 %v592_v35, %v2213_v20  ;;  %v609_v8 = vsub.f32 %v593_v45, %v2216_v58 }
 0x100   : > { %v618_v63 = vmul.f32 1.442695, %v602_v15  ;;  %v620_v51 = vmul.f32 1.442695, %v603_v2  ;;  %v622_v4 = vmul.f32 1.442695, %v604_v54  ;;  %v610_v57 = vsub.f32 %v594_v47, %v2213_v20 }
 0x101   : > { %v624_v59 = vmul.f32 1.442695, %v605_v40  ;;  %v626_v21 = vmul.f32 1.442695, %v606_v32  ;;  %v611_v36 = vsub.f32 %v595_v44, %v2216_v58  ;;  %v628_v22 = vmul.f32 1.442695, %v607_v46 }
 0x102   : > { %1525 = vpow2.f32 %v618_v63  ;;  %v612_v42 = vsub.f32 %v596_v0, %v2213_v20  ;;  %v630_v60 = vmul.f32 1.442695, %v608_v49  ;;  %v613_v27 = vsub.f32 %v597_v56, %v2216_v58 }
 0x103   : > { %1527 = vpow2.f32 %v620_v51  ;;  %v632_v52 = vmul.f32 1.442695, %v609_v8  ;;  %v614_v48 = vsub.f32 %v598_v26, %v2213_v20  ;;  %v634_v62 = vmul.f32 1.442695, %v610_v57 }
 0x104   : > { %1529 = vpow2.f32 %v622_v4  ;;  %v615_v61 = vsub.f32 %v599_v19, %v2216_v58  ;;  %v636_v1 = vmul.f32 1.442695, %v611_v36  ;;  %v616_v3 = vsub.f32 %v600_v9, %v2213_v20 }
 0x105   : > { %1531 = vpow2.f32 %v624_v59  ;;  %v638_v55 = vmul.f32 1.442695, %v612_v42  ;;  %v617_v35 = vsub.f32 %v601_v13, %v2216_v58  ;;  %v640_v43 = vmul.f32 1.442695, %v613_v27 }
 0x106   : > { %1533 = vpow2.f32 %v626_v21  ;;  %v642_v15 = vmul.f32 1.442695, %v614_v48  ;;  %v644_v2 = vmul.f32 1.442695, %v615_v61  ;;  %v646_v45 = vmul.f32 1.442695, %v616_v3 }
 0x107   : > { %1535 = vpow2.f32 %v628_v22  ;;  %v648_v47 = vmul.f32 1.442695, %v617_v35 }
 0x108   : > { %1537 = vpow2.f32 %v630_v60 }
 0x109   : > { %1539 = vpow2.f32 %v632_v52 }
 0x10a   : > { %1541 = vpow2.f32 %v634_v62 }
 0x10b   : > { %1543 = vpow2.f32 %v636_v1 }
 0x10c   : > { %v1526_v54 = vpop.eup %1525  ;;  %1545 = vpow2.f32 %v638_v55 }
 0x10d   : > { %v1528_v40 = vpop.eup %1527  ;;  %1547 = vpow2.f32 %v640_v43 }
 0x10e   : > { %v1530_v32 = vpop.eup %1529  ;;  %1549 = vpow2.f32 %v642_v15 }
 0x10f   : > { %v1532_v44 = vpop.eup %1531  ;;  %1551 = vpow2.f32 %v644_v2  ;;  %v650_v0 = vadd.f32 %v1530_v32, %v1526_v54 }
 0x110   : > { %v1534_v46 = vpop.eup %1533  ;;  %1553 = vpow2.f32 %v646_v45  ;;  %v657_v49 = vadd.f32 %v1532_v44, %v1528_v40 }
 0x111   : > { %v1536_v63 = vpop.eup %1535  ;;  %1555 = vpow2.f32 %v648_v47  ;;  %v651_v51 = vadd.f32 %v1534_v46, %v650_v0 }
 0x112   : > { %v1538_v4 = vpop.eup %1537  ;;  %v658_v56 = vadd.f32 %v1536_v63, %v657_v49 }
 0x113   : > { %v1540_v8 = vpop.eup %1539  ;;  %v652_v59 = vadd.f32 %v1538_v4, %v651_v51 }
 0x114   : > { %v1542_v26 = vpop.eup %1541  ;;  %v659_v57 = vadd.f32 %v1540_v8, %v658_v56 }
 0x115   : > { %v1544_v21 = vpop.eup %1543  ;;  %v653_v19 = vadd.f32 %v1542_v26, %v652_v59 }
 0x116   : > { %v1546_v36 = vpop.eup %1545  ;;  %v660_v22 = vadd.f32 %v1544_v21, %v659_v57 }
 0x117   : > { %v1548_v9 = vpop.eup %1547  ;;  %v654_v42 = vadd.f32 %v1546_v36, %v653_v19 }
 0x118   : > { %v1550_v60 = vpop.eup %1549  ;;  %v661_v13 = vadd.f32 %v1548_v9, %v660_v22 }
 0x119   : > { %v1552_v27 = vpop.eup %1551  ;;  %v655_v52 = vadd.f32 %v1550_v60, %v654_v42 }
 0x11a   : > { %v1554_v48 = vpop.eup %1553  ;;  %v662_v62 = vadd.f32 %v1552_v27, %v661_v13 }
 0x11b   : > { %v1556_v61 = vpop.eup %1555  ;;  %v656_v1 = vadd.f32 %v1554_v48, %v655_v52 }
 0x11c   : > { %v663_v3 = vadd.f32 %v1556_v61, %v662_v62 }
 0x11d   : > { %1557 = vlog2.f32 %v656_v1 }
 0x11e   : > { %1559 = vlog2.f32 %v663_v3 }
 0x127   : > { %v1558_v55 = vpop.eup %1557 }
 0x128   : > { %v1560_v35 = vpop.eup %1559  ;;  %v665_v43 = vmul.f32 0.6931472, %v1558_v55 }
 0x129   : > { %v667_v15 = vmul.f32 0.6931472, %v1560_v35 }
 0x12a   : > { %v668_v2 = vadd.f32 %v665_v43, %v2213_v20 }
 0x12b   : > { %v669_v54 = vadd.f32 %v667_v15, %v2216_v58 }
 0x12c   : > { %v670_v45 = vsub.f32 0.0, %v668_v2 }
 0x12d   : > { %v671_v40 = vsub.f32 0.0, %v669_v54 }
 0x12e   : > { %v2248_v47 = vadd.f32 -2.7725887, %v670_v45 }
 0x12f   : > { %v2250_v32 = vadd.f32 -2.7725887, %v671_v40 }
 0x130   : > { %v689_v20 = vsub.f32 %v2248_v47, %v1868_v5  ;;  %v691_v56 = vsub.f32 %v2248_v47, %v1881_v10  ;;  %v693_v21 = vsub.f32 %v2248_v47, %v1885_v12  ;;  %v695_v36 = vsub.f32 %v2248_v47, %v1898_v17 }
 0x131   : > { %v674_v44 = vmax.f32 %v2248_v47, %v2250_v32  ;;  %v690_v58 = vsub.f32 %v2250_v32, %v1870_v6  ;;  %v692_v8 = vsub.f32 %v2250_v32, %v1883_v11  ;;  %v694_v19 = vsub.f32 %v2250_v32, %v1896_v16 }
 0x132   : > { %v696_v13 = vsub.f32 %v2250_v32, %v1900_v18  ;;  %v697_v48 = vsub.f32 %v2248_v47, %v1913_v23  ;;  %v698_v62 = vsub.f32 %v2250_v32, %v1915_v24  ;;  %v699_v3 = vsub.f32 %v2248_v47, %v1917_v25 }
 0x133   : > { %v675_v0 = vrot.slane %v674_v44, 4  ;;  %v700_v55 = vsub.f32 %v2250_v32, %v1927_v29  ;;  %v701_v45 = vsub.f32 %v2248_v47, %v1929_v30  ;;  %v702_v40 = vsub.f32 %v2250_v32, %v1931_v31 }
 0x135   : > { %v676_v46 = vmax.f32 %v674_v44, %v675_v0 }
 0x137   : > { %v677_v49 = vrot.slane %v676_v46, 2 }
 0x139   : > { %v678_v63 = vmax.f32 %v676_v46, %v677_v49 }
 0x13b   : > { %v679_v51 = vrot.slane %v678_v63, 1 }
 0x13d   : > { %v680_v4 = vmax.f32 %v678_v63, %v679_v51  ;;  %v703_v51 = vsub.f32 %v2248_v47, %v1933_v33 }
 0x13f   : > { %v2263_v59 = vsub.f32 %v680_v4, %v1949_v7  ;;  %v2266_v26 = vsub.f32 %v680_v4, %v1951_v14  ;;  %v2269_v57 = vsub.f32 %v680_v4, %v1955_v28  ;;  %v2278_v22 = vsub.f32 %v680_v4, %v1959_v37 }
 0x140   : > { %v2287_v52 = vsub.f32 %v680_v4, %v1961_v38  ;;  %v2295_v1 = vsub.f32 %v680_v4, %v1963_v39  ;;  %v2309_v46 = vsub.f32 %v680_v4, %v1966_v41 }
 0x141   : > { %v705_v9 = vsub.f32 %v689_v20, %v2263_v59  ;;  %v706_v42 = vsub.f32 %v690_v58, %v2263_v59  ;;  %v707_v60 = vsub.f32 %v691_v56, %v2266_v26  ;;  %v708_v27 = vsub.f32 %v692_v8, %v2266_v26  ;;  %v2610_v56 = vld [vmem:[#allocation8_spill] sm:$0xff] }
 0x142   : > { %v709_v61 = vsub.f32 %v693_v21, %v2269_v57  ;;  %v710_v35 = vsub.f32 %v694_v19, %v2269_v57  ;;  %v711_v43 = vsub.f32 %v695_v36, %v2278_v22  ;;  %v712_v44 = vsub.f32 %v696_v13, %v2278_v22 }
 0x143   : > { %v721_v15 = vmul.f32 1.442695, %v705_v9  ;;  %v723_v2 = vmul.f32 1.442695, %v706_v42  ;;  %v725_v54 = vmul.f32 1.442695, %v707_v60  ;;  %v713_v49 = vsub.f32 %v697_v48, %v2287_v52 }
 0x144   : > { %v727_v0 = vmul.f32 1.442695, %v708_v27  ;;  %v729_v63 = vmul.f32 1.442695, %v709_v61  ;;  %v714_v20 = vsub.f32 %v698_v62, %v2287_v52  ;;  %v731_v58 = vmul.f32 1.442695, %v710_v35 }
 0x145   : > { %1561 = vpow2.f32 %v721_v15  ;;  %v2316_v8 = vsub.f32 %v680_v4, %v2610_v56  ;;  %v715_v21 = vsub.f32 %v699_v3, %v2295_v1  ;;  %v733_v19 = vmul.f32 1.442695, %v711_v43 }
 0x146   : > { %1563 = vpow2.f32 %v723_v2  ;;  %v704_v36 = vsub.f32 %v2250_v32, %v1935_v34  ;;  %v716_v9 = vsub.f32 %v700_v55, %v2295_v1  ;;  %v735_v42 = vmul.f32 1.442695, %v712_v44 }
 0x147   : > { %1565 = vpow2.f32 %v725_v54  ;;  %v717_v47 = vsub.f32 %v701_v45, %v2309_v46  ;;  %v737_v60 = vmul.f32 1.442695, %v713_v49  ;;  %v718_v13 = vsub.f32 %v702_v40, %v2309_v46 }
 0x148   : > { %1567 = vpow2.f32 %v727_v0  ;;  %v739_v4 = vmul.f32 1.442695, %v714_v20  ;;  %v719_v27 = vsub.f32 %v703_v51, %v2316_v8  ;;  %v741_v48 = vmul.f32 1.442695, %v715_v21 }
 0x149   : > { %1569 = vpow2.f32 %v729_v63  ;;  %v720_v62 = vsub.f32 %v704_v36, %v2316_v8  ;;  %v743_v32 = vmul.f32 1.442695, %v716_v9  ;;  %v745_v61 = vmul.f32 1.442695, %v717_v47 }
 0x14a   : > { %1571 = vpow2.f32 %v731_v58  ;;  %v747_v3 = vmul.f32 1.442695, %v718_v13  ;;  %v749_v35 = vmul.f32 1.442695, %v719_v27 }
 0x14b   : > { %1573 = vpow2.f32 %v733_v19  ;;  %v751_v15 = vmul.f32 1.442695, %v720_v62 }
 0x14c   : > { %1575 = vpow2.f32 %v735_v42 }
 0x14d   : > { %1577 = vpow2.f32 %v737_v60 }
 0x14e   : > { %1579 = vpow2.f32 %v739_v4 }
 0x14f   : > { %v1562_v55 = vpop.eup %1561  ;;  %1581 = vpow2.f32 %v741_v48 }
 0x150   : > { %v1564_v43 = vpop.eup %1563  ;;  %1583 = vpow2.f32 %v743_v32 }
 0x151   : > { %v1566_v2 = vpop.eup %1565  ;;  %1585 = vpow2.f32 %v745_v61  ;;  %v753_v54 = vadd.f32 %v1564_v43, %v1562_v55 }
 0x152   : > { %v1568_v45 = vpop.eup %1567  ;;  %1587 = vpow2.f32 %v747_v3 }
 0x153   : > { %v1570_v40 = vpop.eup %1569  ;;  %1589 = vpow2.f32 %v749_v35  ;;  %v754_v44 = vrot.slane %v753_v54, 4  ;;  %v760_v0 = vadd.f32 %v1568_v45, %v1566_v2 }
 0x154   : > { %v1572_v49 = vpop.eup %1571  ;;  %1591 = vpow2.f32 %v751_v15 }
 0x155   : > { %v1574_v63 = vpop.eup %1573  ;;  %v755_v51 = vadd.f32 %v754_v44, %v753_v54  ;;  %v761_v20 = vrot.slane %v760_v0, 4  ;;  %v767_v58 = vadd.f32 %v1572_v49, %v1570_v40 }
 0x156   : > { %v1576_v21 = vpop.eup %1575 }
 0x157   : > { %v1578_v19 = vpop.eup %1577  ;;  %v756_v36 = vrot.slane %v755_v51, 2  ;;  %v762_v9 = vadd.f32 %v761_v20, %v760_v0  ;;  %v768_v42 = vrot.slane %v767_v58, 4  ;;  %v774_v47 = vadd.f32 %v1576_v21, %v1574_v63 }
 0x158   : > { %v1580_v60 = vpop.eup %1579 }
 0x159   : > { %v1582_v13 = vpop.eup %1581  ;;  %v757_v4 = vadd.f32 %v756_v36, %v755_v51  ;;  %v763_v27 = vrot.slane %v762_v9, 2  ;;  %v769_v48 = vadd.f32 %v768_v42, %v767_v58  ;;  %v775_v62 = vrot.slane %v774_v47, 4 }
 0x15a   : > { %v1584_v32 = vpop.eup %1583  ;;  %v781_v61 = vadd.f32 %v1580_v60, %v1578_v19 }
 0x15b   : > { %v1586_v3 = vpop.eup %1585  ;;  %v758_v55 = vrot.slane %v757_v4, 1  ;;  %v764_v35 = vadd.f32 %v763_v27, %v762_v9  ;;  %v770_v43 = vrot.slane %v769_v48, 2  ;;  %v776_v15 = vadd.f32 %v775_v62, %v774_v47 }
 0x15c   : > { %v1588_v2 = vpop.eup %1587  ;;  %v782_v54 = vrot.slane %v781_v61, 4  ;;  %v788_v45 = vadd.f32 %v1584_v32, %v1582_v13 }
 0x15d   : > { %v1590_v40 = vpop.eup %1589  ;;  %v759_v44 = vadd.f32 %v758_v55, %v757_v4  ;;  %v765_v0 = vrot.slane %v764_v35, 1  ;;  %v771_v49 = vadd.f32 %v770_v43, %v769_v48  ;;  %v777_v63 = vrot.slane %v776_v15, 2 }
 0x15e   : > { %v1592_v20 = vpop.eup %1591  ;;  %v783_v51 = vadd.f32 %v782_v54, %v781_v61  ;;  %v789_v21 = vrot.slane %v788_v45, 4  ;;  %v795_v58 = vadd.f32 %v1588_v2, %v1586_v3 }
 0x15f   : > { %v766_v36 = vadd.f32 %v765_v0, %v764_v35  ;;  %v772_v42 = vrot.slane %v771_v49, 1  ;;  %v778_v19 = vadd.f32 %v777_v63, %v776_v15  ;;  %v802_v60 = vadd.f32 %v1592_v20, %v1590_v40 }
 0x160   : > { %v784_v56 = vrot.slane %v783_v51, 2  ;;  %v790_v9 = vadd.f32 %v789_v21, %v788_v45  ;;  %v796_v27 = vrot.slane %v795_v58, 4  ;;  %1593 = vlog2.f32 %v759_v44 }
 0x161   : > { %v773_v47 = vadd.f32 %v772_v42, %v771_v49  ;;  %v779_v62 = vrot.slane %v778_v19, 1  ;;  %v803_v13 = vrot.slane %v802_v60, 4  ;;  %1595 = vlog2.f32 %v766_v36 }
 0x162   : > { %v785_v4 = vadd.f32 %v784_v56, %v783_v51  ;;  %v791_v32 = vrot.slane %v790_v9, 2  ;;  %v797_v48 = vadd.f32 %v796_v27, %v795_v58 }
 0x163   : > { %v780_v55 = vadd.f32 %v779_v62, %v778_v19  ;;  %v804_v43 = vadd.f32 %v803_v13, %v802_v60  ;;  %1597 = vlog2.f32 %v773_v47 }
 0x164   : > { %v786_v61 = vrot.slane %v785_v4, 1  ;;  %v792_v3 = vadd.f32 %v791_v32, %v790_v9  ;;  %v798_v35 = vrot.slane %v797_v48, 2 }
 0x165   : > { %v805_v2 = vrot.slane %v804_v43, 2  ;;  %1599 = vlog2.f32 %v780_v55 }
 0x166   : > { %v787_v15 = vadd.f32 %v786_v61, %v785_v4  ;;  %v793_v54 = vrot.slane %v792_v3, 1  ;;  %v799_v45 = vadd.f32 %v798_v35, %v797_v48 }
 0x167   : > { %v806_v40 = vadd.f32 %v805_v2, %v804_v43 }
 0x168   : > { %v794_v44 = vadd.f32 %v793_v54, %v792_v3  ;;  %v800_v0 = vrot.slane %v799_v45, 1  ;;  %1601 = vlog2.f32 %v787_v15 }
 0x169   : > { %v807_v49 = vrot.slane %v806_v40, 1 }
 0x16a   : > { %v1594_v63 = vpop.eup %1593  ;;  %v801_v56 = vadd.f32 %v800_v0, %v799_v45  ;;  %1603 = vlog2.f32 %v794_v44 }
 0x16b   : > { %v1596_v20 = vpop.eup %1595  ;;  %v808_v51 = vadd.f32 %v807_v49, %v806_v40  ;;  %v810_v21 = vmul.f32 0.6931472, %v1594_v63 }
 0x16c   : > { %1605 = vlog2.f32 %v801_v56  ;;  %v812_v36 = vmul.f32 0.6931472, %v1596_v20 }
 0x16d   : > { %v1598_v58 = vpop.eup %1597  ;;  %1607 = vlog2.f32 %v808_v51  ;;  %v825_v9 = vadd.f32 %v810_v21, %v2263_v59 }
 0x16e   : > { %v814_v19 = vmul.f32 0.6931472, %v1598_v58  ;;  %v826_v27 = vadd.f32 %v812_v36, %v2266_v26 }
 0x16f   : > { %v1600_v42 = vpop.eup %1599  ;;  %v833_v48 = vsub.f32 0.0, %v825_v9 }
 0x170   : > { %v816_v60 = vmul.f32 0.6931472, %v1600_v42  ;;  %v827_v13 = vadd.f32 %v814_v19, %v2269_v57  ;;  %v834_v61 = vsub.f32 0.0, %v826_v27 }
 0x171   : > { %v841_v40 = vadd.f32 -2.0794415, %v833_v48 }
 0x172   : > { %v1602_v47 = vpop.eup %1601  ;;  %v828_v32 = vadd.f32 %v816_v60, %v2278_v22  ;;  %v835_v59 = vsub.f32 0.0, %v827_v13  ;;  %v842_v0 = vadd.f32 -2.0794415, %v834_v61 }
 0x173   : > { %v818_v62 = vmul.f32 0.6931472, %v1602_v47  ;;  %v859_v47 = vsub.f32 %v841_v40, %v1870_v6 }
 0x174   : > { %v1604_v4 = vpop.eup %1603  ;;  %v836_v45 = vsub.f32 0.0, %v828_v32 }
 0x175   : > { %v820_v55 = vmul.f32 0.6931472, %v1604_v4  ;;  %v829_v43 = vadd.f32 %v818_v62, %v2287_v52  ;;  %v843_v52 = vadd.f32 -2.0794415, %v835_v59  ;;  %v861_v62 = vsub.f32 %v842_v0, %v1883_v11 }
 0x176   : > { %v1606_v3 = vpop.eup %1605  ;;  %v844_v51 = vadd.f32 -2.0794415, %v836_v45 }
 0x177   : > { %v1608_v35 = vpop.eup %1607  ;;  %v822_v2 = vmul.f32 0.6931472, %v1606_v3  ;;  %v830_v15 = vadd.f32 %v820_v55, %v2295_v1  ;;  %v837_v54 = vsub.f32 0.0, %v829_v43  ;;  %v862_v32 = vsub.f32 %v843_v52, %v1885_v12 }
 0x178   : > { %v824_v26 = vmul.f32 0.6931472, %v1608_v35  ;;  %v863_v48 = vsub.f32 %v843_v52, %v1896_v16  ;;  %v864_v55 = vsub.f32 %v844_v51, %v1898_v17  ;;  %v865_v35 = vsub.f32 %v844_v51, %v1900_v18 }
 0x179   : > { %v831_v57 = vadd.f32 %v822_v2, %v2309_v46  ;;  %v838_v44 = vsub.f32 0.0, %v830_v15  ;;  %v845_v22 = vadd.f32 -2.0794415, %v837_v54  ;;  %v858_v46 = vsub.f32 %v841_v40, %v1868_v5 }
 0x17a   : > { %v832_v49 = vadd.f32 %v824_v26, %v2316_v8  ;;  %v860_v8 = vsub.f32 %v842_v0, %v1881_v10 }
 0x17b   : > { %v839_v63 = vsub.f32 0.0, %v831_v57  ;;  %v846_v56 = vadd.f32 -2.0794415, %v838_v44  ;;  %v849_v21 = vmax.f32 %v841_v40, %v845_v22  ;;  %v866_v15 = vsub.f32 %v845_v22, %v1913_v23 }
 0x17c   : > { %v840_v20 = vsub.f32 0.0, %v832_v49  ;;  %v867_v54 = vsub.f32 %v845_v22, %v1915_v24 }
 0x17d   : > { %v847_v58 = vadd.f32 -2.0794415, %v839_v63  ;;  %v850_v1 = vmax.f32 %v842_v0, %v846_v56  ;;  %v868_v26 = vsub.f32 %v846_v56, %v1917_v25  ;;  %v869_v49 = vsub.f32 %v846_v56, %v1927_v29 }
 0x17e   : > { %v848_v36 = vadd.f32 -2.0794415, %v840_v20 }
 0x17f   : > { %v851_v42 = vmax.f32 %v843_v52, %v847_v58  ;;  %v853_v60 = vmax.f32 %v849_v21, %v850_v1  ;;  %v870_v20 = vsub.f32 %v847_v58, %v1929_v30  ;;  %v871_v21 = vsub.f32 %v847_v58, %v1931_v31 }
 0x180   : > { %v852_v19 = vmax.f32 %v844_v51, %v848_v36 }
 0x182   : > { %v854_v9 = vmax.f32 %v851_v42, %v852_v19  ;;  %v872_v19 = vsub.f32 %v848_v36, %v1933_v33 }
 0x184   : > { %v855_v27 = vmax.f32 %v853_v60, %v854_v9  ;;  %v873_v9 = vsub.f32 %v848_v36, %v1935_v34 }
 0x186   : > { %v2339_v13 = vsub.f32 %v855_v27, %v1979_v50  ;;  %v2342_v4 = vsub.f32 %v855_v27, %v1983_v53 }
 0x188   : > { %v874_v43 = vsub.f32 %v858_v46, %v2339_v13  ;;  %v875_v61 = vsub.f32 %v859_v47, %v2342_v4  ;;  %v876_v3 = vsub.f32 %v860_v8, %v2339_v13  ;;  %v877_v2 = vsub.f32 %v861_v62, %v2342_v4 }
 0x189   : > { %v878_v59 = vsub.f32 %v862_v32, %v2339_v13  ;;  %v879_v45 = vsub.f32 %v863_v48, %v2342_v4  ;;  %v880_v40 = vsub.f32 %v864_v55, %v2339_v13  ;;  %v881_v63 = vsub.f32 %v865_v35, %v2342_v4 }
 0x18a   : > { %v890_v57 = vmul.f32 1.442695, %v874_v43  ;;  %v892_v44 = vmul.f32 1.442695, %v875_v61  ;;  %v894_v0 = vmul.f32 1.442695, %v876_v3  ;;  %v882_v51 = vsub.f32 %v866_v15, %v2339_v13 }
 0x18b   : > { %v896_v52 = vmul.f32 1.442695, %v877_v2  ;;  %v898_v22 = vmul.f32 1.442695, %v878_v59  ;;  %v883_v1 = vsub.f32 %v867_v54, %v2342_v4  ;;  %v900_v42 = vmul.f32 1.442695, %v879_v45 }
 0x18c   : > { %1609 = vpow2.f32 %v890_v57  ;;  %v884_v60 = vsub.f32 %v868_v26, %v2339_v13  ;;  %v902_v56 = vmul.f32 1.442695, %v880_v40  ;;  %v885_v27 = vsub.f32 %v869_v49, %v2342_v4 }
 0x18d   : > { %1611 = vpow2.f32 %v892_v44  ;;  %v904_v46 = vmul.f32 1.442695, %v881_v63  ;;  %v886_v47 = vsub.f32 %v870_v20, %v2339_v13  ;;  %v906_v58 = vmul.f32 1.442695, %v882_v51 }
 0x18e   : > { %1613 = vpow2.f32 %v894_v0  ;;  %v887_v8 = vsub.f32 %v871_v21, %v2342_v4  ;;  %v908_v62 = vmul.f32 1.442695, %v883_v1  ;;  %v888_v32 = vsub.f32 %v872_v19, %v2339_v13 }
 0x18f   : > { %1615 = vpow2.f32 %v896_v52  ;;  %v910_v48 = vmul.f32 1.442695, %v884_v60  ;;  %v889_v55 = vsub.f32 %v873_v9, %v2342_v4  ;;  %v912_v36 = vmul.f32 1.442695, %v885_v27 }
 0x190   : > { %1617 = vpow2.f32 %v898_v22  ;;  %v914_v43 = vmul.f32 1.442695, %v886_v47  ;;  %v916_v61 = vmul.f32 1.442695, %v887_v8  ;;  %v918_v35 = vmul.f32 1.442695, %v888_v32 }
 0x191   : > { %1619 = vpow2.f32 %v900_v42  ;;  %v920_v15 = vmul.f32 1.442695, %v889_v55 }
 0x192   : > { %1621 = vpow2.f32 %v902_v56 }
 0x193   : > { %1623 = vpow2.f32 %v904_v46 }
 0x194   : > { %1625 = vpow2.f32 %v906_v58 }
 0x195   : > { %1627 = vpow2.f32 %v908_v62 }
 0x196   : > { %v1610_v3 = vpop.eup %1609  ;;  %1629 = vpow2.f32 %v910_v48 }
 0x197   : > { %v1612_v2 = vpop.eup %1611  ;;  %1631 = vpow2.f32 %v912_v36 }
 0x198   : > { %v1614_v59 = vpop.eup %1613  ;;  %1633 = vpow2.f32 %v914_v43 }
 0x199   : > { %v1616_v54 = vpop.eup %1615  ;;  %1635 = vpow2.f32 %v916_v61  ;;  %v922_v26 = vadd.f32 %v1614_v59, %v1610_v3 }
 0x19a   : > { %v1618_v45 = vpop.eup %1617  ;;  %1637 = vpow2.f32 %v918_v35  ;;  %v929_v40 = vadd.f32 %v1616_v54, %v1612_v2 }
 0x19b   : > { %v1620_v57 = vpop.eup %1619  ;;  %1639 = vpow2.f32 %v920_v15  ;;  %v923_v44 = vadd.f32 %v1618_v45, %v922_v26 }
 0x19c   : > { %v1622_v0 = vpop.eup %1621  ;;  %v930_v49 = vadd.f32 %v1620_v57, %v929_v40 }
 0x19d   : > { %v1624_v63 = vpop.eup %1623  ;;  %v924_v52 = vadd.f32 %v1622_v0, %v923_v44 }
 0x19e   : > { %v1626_v20 = vpop.eup %1625  ;;  %v931_v51 = vadd.f32 %v1624_v63, %v930_v49 }
 0x19f   : > { %v1628_v22 = vpop.eup %1627  ;;  %v925_v21 = vadd.f32 %v1626_v20, %v924_v52 }
 0x1a0   : > { %v1630_v1 = vpop.eup %1629  ;;  %v932_v42 = vadd.f32 %v1628_v22, %v931_v51 }
 0x1a1   : > { %v1632_v19 = vpop.eup %1631  ;;  %v926_v60 = vadd.f32 %v1630_v1, %v925_v21 }
 0x1a2   : > { %v1634_v56 = vpop.eup %1633  ;;  %v933_v9 = vadd.f32 %v1632_v19, %v932_v42 }
 0x1a3   : > { %v1636_v27 = vpop.eup %1635  ;;  %v927_v46 = vadd.f32 %v1634_v56, %v926_v60 }
 0x1a4   : > { %v1638_v47 = vpop.eup %1637  ;;  %v934_v58 = vadd.f32 %v1636_v27, %v933_v9 }
 0x1a5   : > { %v1640_v8 = vpop.eup %1639  ;;  %v928_v62 = vadd.f32 %v1638_v47, %v927_v46 }
 0x1a6   : > { %v935_v32 = vadd.f32 %v1640_v8, %v934_v58 }
 0x1a7   : > { %1641 = vlog2.f32 %v928_v62 }
 0x1a8   : > { %1643 = vlog2.f32 %v935_v32 }
 0x1b1   : > { %v1642_v48 = vpop.eup %1641 }
 0x1b2   : > { %v1644_v55 = vpop.eup %1643  ;;  %v937_v36 = vmul.f32 0.6931472, %v1642_v48 }
 0x1b3   : > { %v939_v43 = vmul.f32 0.6931472, %v1644_v55 }
 0x1b4   : > { %v940_v61 = vadd.f32 %v937_v36, %v2339_v13 }
 0x1b5   : > { %v941_v3 = vadd.f32 %v939_v43, %v2342_v4 }
 0x1b6   : > { %v942_v35 = vsub.f32 0.0, %v940_v61 }
 0x1b7   : > { %v943_v2 = vsub.f32 0.0, %v941_v3 }
 0x1b8   : > { %v2374_v15 = vadd.f32 -2.7725887, %v942_v35 }
 0x1b9   : > { %v2376_v59 = vadd.f32 -2.7725887, %v943_v2 }
 0x1ba   : > { %v961_v13 = vsub.f32 %v2374_v15, %v1868_v5  ;;  %v963_v49 = vsub.f32 %v2374_v15, %v1881_v10  ;;  %v965_v22 = vsub.f32 %v2374_v15, %v1885_v12  ;;  %v967_v1 = vsub.f32 %v2374_v15, %v1898_v17 }
 0x1bb   : > { %v946_v54 = vmax.f32 %v2374_v15, %v2376_v59  ;;  %v962_v4 = vsub.f32 %v2376_v59, %v1870_v6  ;;  %v964_v63 = vsub.f32 %v2376_v59, %v1883_v11  ;;  %v966_v21 = vsub.f32 %v2376_v59, %v1896_v16 }
 0x1bc   : > { %v968_v9 = vsub.f32 %v2376_v59, %v1900_v18  ;;  %v969_v47 = vsub.f32 %v2374_v15, %v1913_v23  ;;  %v970_v58 = vsub.f32 %v2376_v59, %v1915_v24  ;;  %v971_v32 = vsub.f32 %v2374_v15, %v1917_v25 }
 0x1bd   : > { %v947_v26 = vrot.slane %v946_v54, 4  ;;  %v972_v48 = vsub.f32 %v2376_v59, %v1927_v29  ;;  %v973_v35 = vsub.f32 %v2374_v15, %v1929_v30  ;;  %v974_v2 = vsub.f32 %v2376_v59, %v1931_v31 }
 0x1bf   : > { %v948_v45 = vmax.f32 %v946_v54, %v947_v26 }
 0x1c1   : > { %v949_v40 = vrot.slane %v948_v45, 2 }
 0x1c3   : > { %v950_v57 = vmax.f32 %v948_v45, %v949_v40 }
 0x1c5   : > { %v951_v44 = vrot.slane %v950_v57, 1 }
 0x1c7   : > { %v952_v0 = vmax.f32 %v950_v57, %v951_v44  ;;  %v975_v44 = vsub.f32 %v2374_v15, %v1933_v33 }
 0x1c9   : > { %v2389_v52 = vsub.f32 %v952_v0, %v1949_v7  ;;  %v2392_v20 = vsub.f32 %v952_v0, %v1951_v14  ;;  %v2395_v51 = vsub.f32 %v952_v0, %v1955_v28  ;;  %v2404_v42 = vsub.f32 %v952_v0, %v1959_v37 }
 0x1ca   : > { %v2413_v46 = vsub.f32 %v952_v0, %v1961_v38  ;;  %v2421_v62 = vsub.f32 %v952_v0, %v1963_v39  ;;  %v2435_v45 = vsub.f32 %v952_v0, %v1966_v41 }
 0x1cb   : > { %v977_v19 = vsub.f32 %v961_v13, %v2389_v52  ;;  %v978_v60 = vsub.f32 %v962_v4, %v2389_v52  ;;  %v979_v56 = vsub.f32 %v963_v49, %v2392_v20  ;;  %v980_v27 = vsub.f32 %v964_v63, %v2392_v20  ;;  %v2611_v49 = vld [vmem:[#allocation8_spill] sm:$0xff] }
 0x1cc   : > { %v981_v8 = vsub.f32 %v965_v22, %v2395_v51  ;;  %v982_v55 = vsub.f32 %v966_v21, %v2395_v51  ;;  %v983_v36 = vsub.f32 %v967_v1, %v2404_v42  ;;  %v984_v54 = vsub.f32 %v968_v9, %v2404_v42 }
 0x1cd   : > { %v993_v43 = vmul.f32 1.442695, %v977_v19  ;;  %v995_v61 = vmul.f32 1.442695, %v978_v60  ;;  %v997_v3 = vmul.f32 1.442695, %v979_v56  ;;  %v985_v40 = vsub.f32 %v969_v47, %v2413_v46 }
 0x1ce   : > { %v999_v26 = vmul.f32 1.442695, %v980_v27  ;;  %v1001_v57 = vmul.f32 1.442695, %v981_v8  ;;  %v986_v13 = vsub.f32 %v970_v58, %v2413_v46  ;;  %v1003_v4 = vmul.f32 1.442695, %v982_v55 }
 0x1cf   : > { %1645 = vpow2.f32 %v993_v43  ;;  %v2442_v63 = vsub.f32 %v952_v0, %v2611_v49  ;;  %v987_v22 = vsub.f32 %v971_v32, %v2421_v62  ;;  %v1005_v21 = vmul.f32 1.442695, %v983_v36 }
 0x1d0   : > { %1647 = vpow2.f32 %v995_v61  ;;  %v976_v1 = vsub.f32 %v2376_v59, %v1935_v34  ;;  %v988_v19 = vsub.f32 %v972_v48, %v2421_v62  ;;  %v1007_v60 = vmul.f32 1.442695, %v984_v54 }
 0x1d1   : > { %1649 = vpow2.f32 %v997_v3  ;;  %v989_v15 = vsub.f32 %v973_v35, %v2435_v45  ;;  %v1009_v56 = vmul.f32 1.442695, %v985_v40  ;;  %v990_v9 = vsub.f32 %v974_v2, %v2435_v45 }
 0x1d2   : > { %1651 = vpow2.f32 %v999_v26  ;;  %v1011_v0 = vmul.f32 1.442695, %v986_v13  ;;  %v991_v27 = vsub.f32 %v975_v44, %v2442_v63  ;;  %v1013_v47 = vmul.f32 1.442695, %v987_v22 }
 0x1d3   : > { %1653 = vpow2.f32 %v1001_v57  ;;  %v992_v58 = vsub.f32 %v976_v1, %v2442_v63  ;;  %v1015_v59 = vmul.f32 1.442695, %v988_v19  ;;  %v1017_v8 = vmul.f32 1.442695, %v989_v15 }
 0x1d4   : > { %1655 = vpow2.f32 %v1003_v4  ;;  %v1019_v32 = vmul.f32 1.442695, %v990_v9  ;;  %v1021_v55 = vmul.f32 1.442695, %v991_v27 }
 0x1d5   : > { %1657 = vpow2.f32 %v1005_v21  ;;  %v1023_v43 = vmul.f32 1.442695, %v992_v58 }
 0x1d6   : > { %1659 = vpow2.f32 %v1007_v60 }
 0x1d7   : > { %1661 = vpow2.f32 %v1009_v56 }
 0x1d8   : > { %1663 = vpow2.f32 %v1011_v0 }
 0x1d9   : > { %v1646_v48 = vpop.eup %1645  ;;  %1665 = vpow2.f32 %v1013_v47 }
 0x1da   : > { %v1648_v36 = vpop.eup %1647  ;;  %1667 = vpow2.f32 %v1015_v59 }
 0x1db   : > { %v1650_v61 = vpop.eup %1649  ;;  %1669 = vpow2.f32 %v1017_v8  ;;  %v1025_v3 = vadd.f32 %v1648_v36, %v1646_v48 }
 0x1dc   : > { %v1652_v35 = vpop.eup %1651  ;;  %1671 = vpow2.f32 %v1019_v32 }
 0x1dd   : > { %v1654_v2 = vpop.eup %1653  ;;  %1673 = vpow2.f32 %v1021_v55  ;;  %v1026_v54 = vrot.slane %v1025_v3, 4  ;;  %v1032_v26 = vadd.f32 %v1652_v35, %v1650_v61 }
 0x1de   : > { %v1656_v40 = vpop.eup %1655  ;;  %1675 = vpow2.f32 %v1023_v43 }
 0x1df   : > { %v1658_v57 = vpop.eup %1657  ;;  %v1027_v44 = vadd.f32 %v1026_v54, %v1025_v3  ;;  %v1033_v13 = vrot.slane %v1032_v26, 4  ;;  %v1039_v4 = vadd.f32 %v1656_v40, %v1654_v2 }
 0x1e0   : > { %v1660_v49 = vpop.eup %1659 }
 0x1e1   : > { %v1662_v22 = vpop.eup %1661  ;;  %v1028_v21 = vrot.slane %v1027_v44, 2  ;;  %v1034_v1 = vadd.f32 %v1033_v13, %v1032_v26  ;;  %v1040_v19 = vrot.slane %v1039_v4, 4  ;;  %v1046_v60 = vadd.f32 %v1660_v49, %v1658_v57 }
 0x1e2   : > { %v1664_v15 = vpop.eup %1663 }
 0x1e3   : > { %v1666_v56 = vpop.eup %1665  ;;  %v1029_v9 = vadd.f32 %v1028_v21, %v1027_v44  ;;  %v1035_v0 = vrot.slane %v1034_v1, 2  ;;  %v1041_v27 = vadd.f32 %v1040_v19, %v1039_v4  ;;  %v1047_v47 = vrot.slane %v1046_v60, 4 }
 0x1e4   : > { %v1668_v58 = vpop.eup %1667  ;;  %v1053_v59 = vadd.f32 %v1664_v15, %v1662_v22 }
 0x1e5   : > { %v1670_v8 = vpop.eup %1669  ;;  %v1030_v32 = vrot.slane %v1029_v9, 1  ;;  %v1036_v48 = vadd.f32 %v1035_v0, %v1034_v1  ;;  %v1042_v55 = vrot.slane %v1041_v27, 2  ;;  %v1048_v36 = vadd.f32 %v1047_v47, %v1046_v60 }
 0x1e6   : > { %v1672_v43 = vpop.eup %1671  ;;  %v1054_v61 = vrot.slane %v1053_v59, 4  ;;  %v1060_v3 = vadd.f32 %v1668_v58, %v1666_v56 }
 0x1e7   : > { %v1674_v35 = vpop.eup %1673  ;;  %v1031_v2 = vadd.f32 %v1030_v32, %v1029_v9  ;;  %v1037_v54 = vrot.slane %v1036_v48, 1  ;;  %v1043_v26 = vadd.f32 %v1042_v55, %v1041_v27  ;;  %v1049_v40 = vrot.slane %v1048_v36, 2 }
 0x1e8   : > { %v1676_v57 = vpop.eup %1675  ;;  %v1055_v44 = vadd.f32 %v1054_v61, %v1053_v59  ;;  %v1061_v13 = vrot.slane %v1060_v3, 4  ;;  %v1067_v4 = vadd.f32 %v1672_v43, %v1670_v8 }
 0x1e9   : > { %v1038_v49 = vadd.f32 %v1037_v54, %v1036_v48  ;;  %v1044_v21 = vrot.slane %v1043_v26, 1  ;;  %v1050_v22 = vadd.f32 %v1049_v40, %v1048_v36  ;;  %v1074_v19 = vadd.f32 %v1676_v57, %v1674_v35 }
 0x1ea   : > { %v1056_v15 = vrot.slane %v1055_v44, 2  ;;  %v1062_v1 = vadd.f32 %v1061_v13, %v1060_v3  ;;  %v1068_v0 = vrot.slane %v1067_v4, 4  ;;  %1677 = vlog2.f32 %v1031_v2 }
 0x1eb   : > { %v1045_v60 = vadd.f32 %v1044_v21, %v1043_v26  ;;  %v1051_v47 = vrot.slane %v1050_v22, 1  ;;  %v1075_v56 = vrot.slane %v1074_v19, 4  ;;  %1679 = vlog2.f32 %v1038_v49 }
 0x1ec   : > { %v1057_v9 = vadd.f32 %v1056_v15, %v1055_v44  ;;  %v1063_v58 = vrot.slane %v1062_v1, 2  ;;  %v1069_v27 = vadd.f32 %v1068_v0, %v1067_v4 }
 0x1ed   : > { %v1052_v32 = vadd.f32 %v1051_v47, %v1050_v22  ;;  %v1076_v55 = vadd.f32 %v1075_v56, %v1074_v19  ;;  %1681 = vlog2.f32 %v1045_v60 }
 0x1ee   : > { %v1058_v59 = vrot.slane %v1057_v9, 1  ;;  %v1064_v8 = vadd.f32 %v1063_v58, %v1062_v1  ;;  %v1070_v48 = vrot.slane %v1069_v27, 2 }
 0x1ef   : > { %v1077_v43 = vrot.slane %v1076_v55, 2  ;;  %1683 = vlog2.f32 %v1052_v32 }
 0x1f0   : > { %v1059_v36 = vadd.f32 %v1058_v59, %v1057_v9  ;;  %v1065_v61 = vrot.slane %v1064_v8, 1  ;;  %v1071_v3 = vadd.f32 %v1070_v48, %v1069_v27 }
 0x1f1   : > { %v1078_v35 = vadd.f32 %v1077_v43, %v1076_v55 }
 0x1f2   : > { %v1066_v2 = vadd.f32 %v1065_v61, %v1064_v8  ;;  %v1072_v54 = vrot.slane %v1071_v3, 1  ;;  %1685 = vlog2.f32 %v1059_v36 }
 0x1f3   : > { %v1079_v26 = vrot.slane %v1078_v35, 1 }
 0x1f4   : > { %v1678_v40 = vpop.eup %1677  ;;  %v1073_v57 = vadd.f32 %v1072_v54, %v1071_v3  ;;  %1687 = vlog2.f32 %v1066_v2 }
 0x1f5   : > { %v1680_v44 = vpop.eup %1679  ;;  %v1080_v13 = vadd.f32 %v1079_v26, %v1078_v35  ;;  %v1082_v4 = vmul.f32 0.6931472, %v1678_v40 }
 0x1f6   : > { %1689 = vlog2.f32 %v1073_v57  ;;  %v1084_v21 = vmul.f32 0.6931472, %v1680_v44 }
 0x1f7   : > { %v1682_v49 = vpop.eup %1681  ;;  %1691 = vlog2.f32 %v1080_v13  ;;  %v1097_v1 = vadd.f32 %v1082_v4, %v2389_v52 }
 0x1f8   : > { %v1086_v19 = vmul.f32 0.6931472, %v1682_v49  ;;  %v1098_v0 = vadd.f32 %v1084_v21, %v2392_v20 }
 0x1f9   : > { %v1684_v22 = vpop.eup %1683  ;;  %v1105_v27 = vsub.f32 0.0, %v1097_v1 }
 0x1fa   : > { %v1088_v15 = vmul.f32 0.6931472, %v1684_v22  ;;  %v1099_v56 = vadd.f32 %v1086_v19, %v2395_v51  ;;  %v1106_v59 = vsub.f32 0.0, %v1098_v0 }
 0x1fb   : > { %v2458_v35 = vadd.f32 -2.0794415, %v1105_v27 }
 0x1fc   : > { %v1686_v60 = vpop.eup %1685  ;;  %v1100_v58 = vadd.f32 %v1088_v15, %v2404_v42  ;;  %v1107_v52 = vsub.f32 0.0, %v1099_v56  ;;  %v2461_v42 = vadd.f32 -2.0794415, %v1106_v59 }
 0x1fd   : > { %v1090_v47 = vmul.f32 0.6931472, %v1686_v60  ;;  %v1130_v0 = vsub.f32 %v2458_v35, %v1868_v5  ;;  %v1131_v60 = vsub.f32 %v2458_v35, %v1870_v6 }
 0x1fe   : > { %v1688_v9 = vpop.eup %1687  ;;  %v1108_v3 = vsub.f32 0.0, %v1100_v58  ;;  %v2466_v57 = vadd.f32 -2.0794415, %v1107_v52  ;;  %v1133_v56 = vsub.f32 %v2461_v42, %v1883_v11 }
 0x1ff   : > { %v1092_v32 = vmul.f32 0.6931472, %v1688_v9  ;;  %v1101_v55 = vadd.f32 %v1090_v47, %v2413_v46  ;;  %v1132_v47 = vsub.f32 %v2461_v42, %v1881_v10 }
 0x200   : > { %v1690_v8 = vpop.eup %1689  ;;  %v2470_v13 = vadd.f32 -2.0794415, %v1108_v3  ;;  %v1134_v27 = vsub.f32 %v2466_v57, %v1885_v12 }
 0x201   : > { %v1692_v48 = vpop.eup %1691  ;;  %v1094_v43 = vmul.f32 0.6931472, %v1690_v8  ;;  %v1102_v36 = vadd.f32 %v1092_v32, %v2421_v62  ;;  %v1109_v61 = vsub.f32 0.0, %v1101_v55  ;;  %v1135_v32 = vsub.f32 %v2466_v57, %v1896_v16 }
 0x202   : > { %v1096_v20 = vmul.f32 0.6931472, %v1692_v48  ;;  %v1136_v55 = vsub.f32 %v2470_v13, %v1898_v17 }
 0x203   : > { %v1103_v51 = vadd.f32 %v1094_v43, %v2435_v45  ;;  %v1110_v2 = vsub.f32 0.0, %v1102_v36  ;;  %v2463_v54 = vadd.f32 -2.0794415, %v1109_v61  ;;  %v1137_v43 = vsub.f32 %v2470_v13, %v1900_v18 }
 0x204   : > { %v1104_v46 = vadd.f32 %v1096_v20, %v2442_v63 }
 0x205   : > { %v2612_v26 = vmov %v2463_v54  ;;  %v1111_v40 = vsub.f32 0.0, %v1103_v51  ;;  %v2468_v44 = vadd.f32 -2.0794415, %v1110_v2 }
 0x206   : > { %v1112_v62 = vsub.f32 0.0, %v1104_v46  ;;  %v1121_v4 = vmax.f32 %v2458_v35, %v2612_v26  ;;  %v1138_v52 = vsub.f32 %v2612_v26, %v1913_v23  ;;  %v1139_v20 = vsub.f32 %v2612_v26, %v1915_v24 }
 0x207   : > { %v2474_v49 = vadd.f32 -2.0794415, %v1111_v40  ;;  %v1122_v45 = vmax.f32 %v2461_v42, %v2468_v44  ;;  %v1140_v3 = vsub.f32 %v2468_v44, %v1917_v25 }
 0x208   : > { %v2478_v21 = vadd.f32 -2.0794415, %v1112_v62  ;;  %v1141_v62 = vsub.f32 %v2468_v44, %v1927_v29 }
 0x209   : > { %v1123_v63 = vmax.f32 %v2466_v57, %v2474_v49  ;;  %v1125_v19 = vmax.f32 %v1121_v4, %v1122_v45 }
 0x20a   : > { %v1124_v22 = vmax.f32 %v2470_v13, %v2478_v21 }
 0x20c   : > { %v1126_v15 = vmax.f32 %v1123_v63, %v1124_v22  ;;  %v1142_v63 = vsub.f32 %v2474_v49, %v1929_v30 }
 0x20e   : > { %v1127_v1 = vmax.f32 %v1125_v19, %v1126_v15  ;;  %v1143_v15 = vsub.f32 %v2474_v49, %v1931_v31 }
 0x210   : > { %v2493_v9 = vsub.f32 %v1127_v1, %v1979_v50  ;;  %v2496_v58 = vsub.f32 %v1127_v1, %v1983_v53 }
 0x212   : > { %v1146_v59 = vsub.f32 %v1130_v0, %v2493_v9  ;;  %v1147_v8 = vsub.f32 %v1131_v60, %v2496_v58  ;;  %v1148_v48 = vsub.f32 %v1132_v47, %v2493_v9  ;;  %v1149_v36 = vsub.f32 %v1133_v56, %v2496_v58 }
 0x213   : > { %v1150_v61 = vsub.f32 %v1134_v27, %v2493_v9  ;;  %v1151_v51 = vsub.f32 %v1135_v32, %v2496_v58  ;;  %v1152_v2 = vsub.f32 %v1136_v55, %v2493_v9  ;;  %v1153_v4 = vsub.f32 %v1137_v43, %v2496_v58 }
 0x214   : > { %v1162_v54 = vmul.f32 1.442695, %v1146_v59  ;;  %v1164_v46 = vmul.f32 1.442695, %v1147_v8  ;;  %v1166_v40 = vmul.f32 1.442695, %v1148_v48  ;;  %v1154_v22 = vsub.f32 %v1138_v52, %v2493_v9 }
 0x215   : > { %v1168_v45 = vmul.f32 1.442695, %v1149_v36  ;;  %v1170_v19 = vmul.f32 1.442695, %v1150_v61  ;;  %v1155_v1 = vsub.f32 %v1139_v20, %v2496_v58  ;;  %v1172_v0 = vmul.f32 1.442695, %v1151_v51 }
 0x216   : > { %1693 = vpow2.f32 %v1162_v54  ;;  %v1144_v60 = vsub.f32 %v2478_v21, %v1933_v33  ;;  %v1156_v47 = vsub.f32 %v1140_v3, %v2493_v9  ;;  %v1174_v56 = vmul.f32 1.442695, %v1152_v2 }
 0x217   : > { %1695 = vpow2.f32 %v1164_v46  ;;  %v1145_v27 = vsub.f32 %v2478_v21, %v1935_v34  ;;  %v1157_v32 = vsub.f32 %v1141_v62, %v2496_v58  ;;  %v1176_v55 = vmul.f32 1.442695, %v1153_v4 }
 0x218   : > { %1697 = vpow2.f32 %v1166_v40  ;;  %v1158_v59 = vsub.f32 %v1142_v63, %v2493_v9  ;;  %v1178_v8 = vmul.f32 1.442695, %v1154_v22  ;;  %v1159_v48 = vsub.f32 %v1143_v15, %v2496_v58 }
 0x219   : > { %1699 = vpow2.f32 %v1168_v45  ;;  %v1180_v43 = vmul.f32 1.442695, %v1155_v1  ;;  %v1160_v36 = vsub.f32 %v1144_v60, %v2493_v9  ;;  %v1182_v52 = vmul.f32 1.442695, %v1156_v47 }
 0x21a   : > { %1701 = vpow2.f32 %v1170_v19  ;;  %v1161_v61 = vsub.f32 %v1145_v27, %v2496_v58  ;;  %v1184_v20 = vmul.f32 1.442695, %v1157_v32  ;;  %v1186_v3 = vmul.f32 1.442695, %v1158_v59 }
 0x21b   : > { %1703 = vpow2.f32 %v1172_v0  ;;  %v1188_v51 = vmul.f32 1.442695, %v1159_v48  ;;  %v1190_v54 = vmul.f32 1.442695, %v1160_v36 }
 0x21c   : > { %1705 = vpow2.f32 %v1174_v56  ;;  %v1192_v40 = vmul.f32 1.442695, %v1161_v61 }
 0x21d   : > { %1707 = vpow2.f32 %v1176_v55 }
 0x21e   : > { %1709 = vpow2.f32 %v1178_v8 }
 0x21f   : > { %1711 = vpow2.f32 %v1180_v43 }
 0x220   : > { %v1694_v2 = vpop.eup %1693  ;;  %1713 = vpow2.f32 %v1182_v52 }
 0x221   : > { %v1696_v46 = vpop.eup %1695  ;;  %1715 = vpow2.f32 %v1184_v20 }
 0x222   : > { %v1698_v62 = vpop.eup %1697  ;;  %1717 = vpow2.f32 %v1186_v3 }
 0x223   : > { %v1700_v4 = vpop.eup %1699  ;;  %1719 = vpow2.f32 %v1188_v51  ;;  %v1194_v45 = vadd.f32 %v1698_v62, %v1694_v2 }
 0x224   : > { %v1702_v63 = vpop.eup %1701  ;;  %1721 = vpow2.f32 %v1190_v54  ;;  %v1201_v22 = vadd.f32 %v1700_v4, %v1696_v46 }
 0x225   : > { %v1704_v19 = vpop.eup %1703  ;;  %1723 = vpow2.f32 %v1192_v40  ;;  %v1195_v15 = vadd.f32 %v1702_v63, %v1194_v45 }
 0x226   : > { %v1706_v1 = vpop.eup %1705  ;;  %v1202_v0 = vadd.f32 %v1704_v19, %v1201_v22 }
 0x227   : > { %v1708_v60 = vpop.eup %1707  ;;  %v1196_v47 = vadd.f32 %v1706_v1, %v1195_v15 }
 0x228   : > { %v1710_v56 = vpop.eup %1709  ;;  %v1203_v27 = vadd.f32 %v1708_v60, %v1202_v0 }
 0x229   : > { %v1712_v32 = vpop.eup %1711  ;;  %v1197_v55 = vadd.f32 %v1710_v56, %v1196_v47 }
 0x22a   : > { %v1714_v59 = vpop.eup %1713  ;;  %v1204_v8 = vadd.f32 %v1712_v32, %v1203_v27 }
 0x22b   : > { %v1716_v48 = vpop.eup %1715  ;;  %v1198_v43 = vadd.f32 %v1714_v59, %v1197_v55 }
 0x22c   : > { %v1718_v36 = vpop.eup %1717  ;;  %v1205_v52 = vadd.f32 %v1716_v48, %v1204_v8 }
 0x22d   : > { %v1720_v61 = vpop.eup %1719  ;;  %v1199_v20 = vadd.f32 %v1718_v36, %v1198_v43 }
 0x22e   : > { %v1722_v3 = vpop.eup %1721  ;;  %v1206_v51 = vadd.f32 %v1720_v61, %v1205_v52 }
 0x22f   : > { %v1724_v2 = vpop.eup %1723  ;;  %v1200_v54 = vadd.f32 %v1722_v3, %v1199_v20 }
 0x230   : > { %v1207_v46 = vadd.f32 %v1724_v2, %v1206_v51 }
 0x231   : > { %1725 = vlog2.f32 %v1200_v54 }
 0x232   : > { %1727 = vlog2.f32 %v1207_v46 }
 0x23b   : > { %v1726_v40 = vpop.eup %1725 }
 0x23c   : > { %v1728_v62 = vpop.eup %1727  ;;  %v1209_v4 = vmul.f32 0.6931472, %v1726_v40 }
 0x23d   : > { %v1211_v45 = vmul.f32 0.6931472, %v1728_v62 }
 0x23e   : > { %v1212_v63 = vadd.f32 %v1209_v4, %v2493_v9 }
 0x23f   : > { %v1213_v22 = vadd.f32 %v1211_v45, %v2496_v58  ;;  %118 = sbr.rel (!%p116_p0) target bundleno = 29 (0x1d), region = 39 }
 0x240   : > { %v1214_v19 = vsub.f32 0.0, %v1212_v63 }
 0x241   : > { %v1215_v15 = vsub.f32 0.0, %v1213_v22 }
 0x242   : > { %v1216_v1 = vadd.f32 -2.7725887, %v1214_v19  }
 0x243   : > { %v1217_v0 = vadd.f32 -2.7725887, %v1215_v15  }
 0x244   : > { %v2614_v55 = vmov %v1216_v1  ;;  %v1218_v60 = vadd.f32 (%p116_p0), %v1216_v1, %v2458_v35  ;;  %v1220_v58 = vadd.f32 (%p116_p0), %v1216_v1, %v2461_v42  ;;  %v1222_v56 = vadd.f32 (%p116_p0), %v1216_v1, %v2466_v57 }
 0x245   : > { %v2613_v54 = vmov %v1217_v0  ;;  %v1219_v9 = vadd.f32 (%p116_p0), %v1217_v0, %v2458_v35  ;;  %v1221_v47 = vadd.f32 (%p116_p0), %v1217_v0, %v2461_v42  ;;  %v1223_v27 = vadd.f32 (%p116_p0), %v1217_v0, %v2466_v57 }
 0x246   :  { %v1224_v32 = vadd.f32 %v1216_v1, %v2470_v13  ;;  %v1225_v55 = vadd.f32 %v1217_v0, %v2470_v13  ;;  %v1234_v59 = vsub.f32 %v1218_v60, %v1868_v5  ;;  %v1236_v7 = vsub.f32 %v1220_v58, %v1881_v10 }
 0x247   :  { %v1235_v8 = vsub.f32 %v1219_v9, %v1870_v6  ;;  %v1237_v14 = vsub.f32 %v1221_v47, %v1883_v11  ;;  %v1238_v28 = vsub.f32 %v1222_v56, %v1885_v12  ;;  %v1239_v37 = vsub.f32 %v1223_v27, %v1896_v16 }
 0x248   :  { %v1240_v38 = vsub.f32 %v1224_v32, %v1898_v17  ;;  %v1250_v39 = vmul.f32 1.442695, %v1234_v59  ;;  %v1254_v50 = vmul.f32 1.442695, %v1236_v7  ;;  %v1226_v53 = vadd.f32 %v1216_v1, %v2612_v26 }
 0x249   :  { %v1252_v41 = vmul.f32 1.442695, %v1235_v8  ;;  %v1256_v35 = vmul.f32 1.442695, %v1237_v14  ;;  %v1241_v5 = vsub.f32 %v1225_v55, %v1900_v18  ;;  %v1227_v6 = vadd.f32 %v1217_v0, %v2612_v26 }
 0x24a   :  { %1729 = vpow2.f32 %v1250_v39  ;;  %v1258_v10 = vmul.f32 1.442695, %v1238_v28  ;;  %v1260_v42 = vmul.f32 1.442695, %v1239_v37  ;;  %v1242_v11 = vsub.f32 %v1226_v53, %v1913_v23 }
 0x24b   :  { %1731 = vpow2.f32 %v1252_v41  ;;  %v1243_v12 = vsub.f32 %v1227_v6, %v1915_v24  ;;  %v1228_v16 = vadd.f32 %v1216_v1, %v2468_v44  ;;  %v1229_v17 = vadd.f32 %v1217_v0, %v2468_v44 }
 0x24c   :  { %1733 = vpow2.f32 %v1254_v50  ;;  %v1262_v57 = vmul.f32 1.442695, %v1240_v38  ;;  %v1230_v13 = vadd.f32 %v1216_v1, %v2474_v49  ;;  %v1231_v18 = vadd.f32 %v1217_v0, %v2474_v49 }
 0x24d   :  { %1735 = vpow2.f32 %v1256_v35  ;;  %v1264_v26 = vmul.f32 1.442695, %v1241_v5  ;;  %v1244_v48 = vsub.f32 %v1228_v16, %v1917_v25  ;;  %v1245_v43 = vsub.f32 %v1229_v17, %v1927_v29 }
 0x24e   :  { %1737 = vpow2.f32 %v1258_v10  ;;  %v1266_v23 = vmul.f32 1.442695, %v1242_v11  ;;  %v1246_v24 = vsub.f32 %v1230_v13, %v1929_v30  ;;  %v1232_v44 = vadd.f32 %v1216_v1, %v2478_v21 }
 0x24f   :  { %1739 = vpow2.f32 %v1260_v42  ;;  %v1268_v36 = vmul.f32 1.442695, %v1243_v12  ;;  %v1247_v52 = vsub.f32 %v1231_v18, %v1931_v31  ;;  %v1233_v49 = vadd.f32 %v1217_v0, %v2478_v21 }
 0x250   :  { %1741 = vpow2.f32 %v1262_v57  ;;  %v1270_v61 = vmul.f32 1.442695, %v1244_v48  ;;  %v1248_v25 = vsub.f32 %v1232_v44, %v1933_v33  ;;  %v1272_v29 = vmul.f32 1.442695, %v1245_v43 }
 0x251   :  { %1743 = vpow2.f32 %v1264_v26  ;;  %v1249_v20 = vsub.f32 %v1233_v49, %v1935_v34  ;;  %v1274_v3 = vmul.f32 1.442695, %v1246_v24  ;;  %v1834_v30 = vmov 0.0  }
 0x252   :  { %1745 = vpow2.f32 %v1266_v23  ;;  %1298 = vst [vmem:[#allocation4] sm:$0xff] %v1834_v30  ;;  %v1276_v51 = vmul.f32 1.442695, %v1247_v52 }
 0x253   :  { %1747 = vpow2.f32 %v1268_v36 }
 0x254   :  { %1772 = shalt.err (!%p1769_p5)
}
 0x255   :  { %s1773_s18 = scalar_lea.hbm %s2605_s2, 128 }
 0x256   :  { %p1774_p6 = scmp.ne.s32.totalorder %s2605_s2, %s1773_s18  ;;  %p1777_p7 = scmp.lt.u32.totalorder %s1773_s18, %s2605_s2 }
 0x258   :  { %p1779_p8 = pnand %p1777_p7, %p1774_p6 }
 0x25a   :  { %1782 = shalt.err (!%p1779_p8)
}
 0x25b   :  { %1320 = dma.vmem_to_hbm [thread:$0]  %s1318_s14, 128, %s2605_s2, [#allocation5]   ;;  %v1730_v31 = vpop.eup %1729  ;;  %1749 = vpow2.f32 %v1270_v61  ;;  %v1278_v33 = vmul.f32 1.442695, %v1248_v25  ;;  %v1280_v21 = vmul.f32 1.442695, %v1249_v20 }
 0x25c   :  { %v1732_v34 = vpop.eup %1731  ;;  %1282 = vst [vmem:[#allocation2] sm:$0xff] %v1730_v31  ;;  %1751 = vpow2.f32 %v1272_v29  ;;  %s1835_s2 = smov [#allocation2]  }
 0x25d   :  { %v1734_v2 = vpop.eup %1733  ;;  %1283 = vst [vmem:[#allocation2 + $0x8] sm:$0xff] %v1732_v34  ;;  %1753 = vpow2.f32 %v1274_v3  ;;  %s1304_s25 = sshll.u32 %s1835_s2, 4  ;;  %s1305_s25 = int_to_ptr.vmem [resolvable:$true] %s1304_s25 }
 0x25e   :  { %v1736_v54 = vpop.eup %1735  ;;  %1284 = vst [vmem:[#allocation2 + $0x10] sm:$0xff] %v1734_v2  ;;  %1755 = vpow2.f32 %v1276_v51  ;;  %s1783_s26 = scalar_lea.vmem %s1305_s25, 2048  ;;  %p1788_p10 = scmp.lt.s32.totalorder %s1305_s25, %s1305_s25 }
 0x25f   :  { %v1738_v46 = vpop.eup %1737  ;;  %1285 = vst [vmem:[#allocation2 + $0x18] sm:$0xff] %v1736_v54  ;;  %1757 = vpow2.f32 %v1278_v33  ;;  %p1784_p9 = scmp.ne.s32.totalorder %s1305_s25, %s1783_s26  ;;  %p1789_p11 = scmp.lt.s32.totalorder %s1783_s26, %s1783_s26 }
 0x260   :  { %v1740_v40 = vpop.eup %1739  ;;  %1286 = vst [vmem:[#allocation2 + $0x20] sm:$0xff] %v1738_v46  ;;  %1759 = vpow2.f32 %v1280_v21 }
 0x261   :  { %v1742_v62 = vpop.eup %1741  ;;  %1287 = vst [vmem:[#allocation2 + $0x28] sm:$0xff] %v1740_v40  ;;  %p1790_p12 = por %p1789_p11, %p1788_p10 }
 0x262   :  { %v1744_v4 = vpop.eup %1743  ;;  %1288 = vst [vmem:[#allocation2 + $0x30] sm:$0xff] %v1742_v62 }
 0x263   :  { %v1746_v45 = vpop.eup %1745  ;;  %1289 = vst [vmem:[#allocation2 + $0x38] sm:$0xff] %v1744_v4  ;;  %p1791_p13 = pnand %p1790_p12, %p1784_p9 }
 0x264   :  { %v1748_v63 = vpop.eup %1747  ;;  %1290 = vst [vmem:[#allocation2 + $0x40] sm:$0xff] %v1746_v45 }
 0x265   :  { %v1750_v22 = vpop.eup %1749  ;;  %1291 = vst [vmem:[#allocation2 + $0x48] sm:$0xff] %v1748_v63 }
 0x266   :  { %v1752_v19 = vpop.eup %1751  ;;  %1292 = vst [vmem:[#allocation2 + $0x50] sm:$0xff] %v1750_v22 }
 0x267   :  { %v1754_v15 = vpop.eup %1753  ;;  %1293 = vst [vmem:[#allocation2 + $0x58] sm:$0xff] %v1752_v19 }
 0x268   :  { %v1756_v1 = vpop.eup %1755  ;;  %1294 = vst [vmem:[#allocation2 + $0x60] sm:$0xff] %v1754_v15 }
 0x269   :  { %v1758_v0 = vpop.eup %1757  ;;  %1295 = vst [vmem:[#allocation2 + $0x68] sm:$0xff] %v1756_v1 }
 0x26a   :  { %v1760_v60 = vpop.eup %1759  ;;  %1296 = vst [vmem:[#allocation2 + $0x70] sm:$0xff] %v1758_v0 }
 0x26b   :  { %1297 = vst [vmem:[#allocation2 + $0x78] sm:$0xff] %v1760_v60 }
 0x26c   :  { %1794 = shalt.err (!%p1791_p13)
}
 0x26d   :  { %s1795_s29 = scalar_lea.hbm %s2604_s1, 2048 }
 0x26e   :  { %p1796_p0 = scmp.ne.s32.totalorder %s2604_s1, %s1795_s29  ;;  %p1799_p1 = scmp.lt.u32.totalorder %s1795_s29, %s2604_s1 }
 0x270   :  { %p1801_p2 = pnand %p1799_p1, %p1796_p0 }
 0x272   :  { %1804 = shalt.err (!%p1801_p2)
}
 0x273   :  { %s1836_s6 = smov 128   ;;  %s1837_s7 = smov 8  }
 0x274   :  { %1310 = dma.vmem_to_hbm [thread:$0]  %s1305_s25, 2048, %s2604_s1, [#allocation3], %s1836_s6, %s1836_s6, %s1837_s7  }
 0x275   :  { %1817 = dma.done.wait [#allocation3], 2048  }
 0x276   :  { %1818 = vsyncadd [#allocation3], 4294965248 }
 0x277   :  { %1819 = dma.done.wait [#allocation5], 128  }
 0x278   :  { %1820 = vsyncadd [#allocation5], 4294967168 }
 0x279   :  { %1327 = vsyncpa [#allocation3], 1 }
 0x27a   :  { %1328 = vsyncpa [#allocation5], 1 }

// kernel: branch_1_fun.3
= control target key start
LH: loop header
LB: loop body
LE: loop exit
PB: predicated region body
PF: predicated region fallthrough
CT: control target
= control target key end

     0   :  { %8 = vsyncpa [#allocation3], 0  ;;  %s1346_s0 = inlined_call_operand.vmem [shape: f32[8,16,128], index: 0, kind: input, shape index: {}]   ;;  %s1347_s1 = inlined_call_operand.hbm [shape: f32[8,16,128], index: 1, kind: output, shape index: {0}]   ;;  %s1348_s2 = inlined_call_operand.vmem [shape: f32[1,8,128], index: 2, kind: output, shape index: {1}]  }
   0x1   :  { %v11_v0 = vld [vmem:[%s1346_s0] sm:$0xff]  ;;  %v12_v1 = vld [vmem:[%s1346_s0 + $0x8] sm:$0xff]  ;;  %v13_v2 = vld [vmem:[%s1346_s0 + $0x10] sm:$0xff] }
   0x2   :  { %v14_v3 = vld [vmem:[%s1346_s0 + $0x18] sm:$0xff]  ;;  %v15_v4 = vld [vmem:[%s1346_s0 + $0x20] sm:$0xff]  ;;  %v16_v5 = vld [vmem:[%s1346_s0 + $0x28] sm:$0xff]  ;;  %v27_v6 = vmul.f32 -10.0, %v11_v0  ;;  %v28_v7 = vmul.f32 -10.0, %v12_v1  ;;  %v29_v9 = vmul.f32 -10.0, %v13_v2 }
   0x3   :  { %v17_v8 = vld [vmem:[%s1346_s0 + $0x30] sm:$0xff]  ;;  %v30_v10 = vmul.f32 -10.0, %v14_v3  ;;  %v18_v11 = vld [vmem:[%s1346_s0 + $0x38] sm:$0xff]  ;;  %v31_v12 = vmul.f32 -10.0, %v15_v4  ;;  %v19_v13 = vld [vmem:[%s1346_s0 + $0x40] sm:$0xff]  ;;  %v32_v14 = vmul.f32 -10.0, %v16_v5 }
   0x4   :  { %v20_v15 = vld [vmem:[%s1346_s0 + $0x48] sm:$0xff]  ;;  %v33_v16 = vmul.f32 -10.0, %v17_v8  ;;  %v43_v17 = vmul.f32 1.442695, %v27_v6  ;;  %v45_v18 = vmul.f32 1.442695, %v28_v7 }
   0x5   :  { %v21_v19 = vld [vmem:[%s1346_s0 + $0x50] sm:$0xff]  ;;  %v34_v20 = vmul.f32 -10.0, %v18_v11  ;;  %v47_v21 = vmul.f32 1.442695, %v29_v9  ;;  %v49_v22 = vmul.f32 1.442695, %v30_v10 }
   0x6   :  { %v22_v23 = vld [vmem:[%s1346_s0 + $0x58] sm:$0xff]  ;;  %v35_v24 = vmul.f32 -10.0, %v19_v13  ;;  %922 = vpow2.f32 %v43_v17  ;;  %v51_v25 = vmul.f32 1.442695, %v31_v12  ;;  %v23_v26 = vld [vmem:[%s1346_s0 + $0x60] sm:$0xff]  ;;  %v36_v27 = vmul.f32 -10.0, %v20_v15 }
   0x7   :  { %924 = vpow2.f32 %v45_v18  ;;  %v53_v28 = vmul.f32 1.442695, %v32_v14  ;;  %v24_v29 = vld [vmem:[%s1346_s0 + $0x68] sm:$0xff]  ;;  %v37_v30 = vmul.f32 -10.0, %v21_v19  ;;  %v55_v31 = vmul.f32 1.442695, %v33_v16 }
   0x8   :  { %926 = vpow2.f32 %v47_v21  ;;  %v25_v32 = vld [vmem:[%s1346_s0 + $0x70] sm:$0xff]  ;;  %v38_v33 = vmul.f32 -10.0, %v22_v23  ;;  %v57_v34 = vmul.f32 1.442695, %v34_v20  ;;  %v26_v35 = vld [vmem:[%s1346_s0 + $0x78] sm:$0xff]  ;;  %v39_v36 = vmul.f32 -10.0, %v23_v26 }
   0x9   :  { %928 = vpow2.f32 %v49_v22  ;;  %v59_v37 = vmul.f32 1.442695, %v35_v24  ;;  %v40_v38 = vmul.f32 -10.0, %v24_v29  ;;  %v61_v39 = vmul.f32 1.442695, %v36_v27  ;;  %s1185_s0 = smov 0  }
   0xa   :  { %930 = vpow2.f32 %v51_v25  ;;  %v41_v40 = vmul.f32 -10.0, %v25_v32  ;;  %v63_v41 = vmul.f32 1.442695, %v37_v30  ;;  %v42_v42 = vmul.f32 -10.0, %v26_v35 }
   0xb   :  { %932 = vpow2.f32 %v53_v28  ;;  %v65_v43 = vmul.f32 1.442695, %v38_v33  ;;  %v67_v44 = vmul.f32 1.442695, %v39_v36  ;;  %v69_v45 = vmul.f32 1.442695, %v40_v38 }
   0xc   :  { %934 = vpow2.f32 %v55_v31  ;;  %v71_v47 = vmul.f32 1.442695, %v41_v40  ;;  %v73_v49 = vmul.f32 1.442695, %v42_v42  ;;  %v1181_v0 = vmov 0.0625  }
   0xd   :  { %936 = vpow2.f32 %v57_v34  ;;  %v1183_v1 = vmov 0.0625  }
   0xe   :  { %938 = vpow2.f32 %v59_v37 }
   0xf   :  { %940 = vpow2.f32 %v61_v39 }
  0x10   :  { %v1149_v46 = vpop.eup %922  ;;  %942 = vpow2.f32 %v63_v41 }
  0x11   :  { %v1151_v48 = vpop.eup %924  ;;  %944 = vpow2.f32 %v65_v43 }
  0x12   :  { %v1153_v50 = vpop.eup %926  ;;  %946 = vpow2.f32 %v67_v44 }
  0x13   :  { %v1155_v51 = vpop.eup %928  ;;  %948 = vpow2.f32 %v69_v45 }
  0x14   :  { %v1157_v52 = vpop.eup %930  ;;  %950 = vpow2.f32 %v71_v47 }
  0x15   :  { %v1159_v53 = vpop.eup %932  ;;  %952 = vpow2.f32 %v73_v49 }
  0x16   :  { %v1161_v54 = vpop.eup %934 }
  0x17   :  { %v1163_v55 = vpop.eup %936 }
  0x18   :  { %v1165_v56 = vpop.eup %938 }
  0x19   :  { %v1167_v57 = vpop.eup %940 }
  0x1a   :  { %v1169_v58 = vpop.eup %942 }
  0x1b   :  { %v1171_v59 = vpop.eup %944 }
  0x1c   :  { %v1173_v60 = vpop.eup %946 }
  0x1d   :  { %v1175_v61 = vpop.eup %948 }
  0x1e   :  { %v1177_v62 = vpop.eup %950 }
  0x1f   :  { %v1179_v63 = vpop.eup %952 }
  0x20 LB: > { %v91_v2 = vmul.f32 %v1076_v1, %v1149_v46  ;;  %v92_v3 = vmul.f32 %v1072_v0, %v1151_v48  ;;  %v93_v4 = vmul.f32 %v1076_v1, %v1153_v50  ;;  %v94_v5 = vmul.f32 %v1072_v0, %v1155_v51  ;;  %s80_s0 = sadd.s32 1, %s1080_s0   ;;  %s1080_s0 = sphi %s1185_s0, %s80_s0   ;;  %v1076_v1 = vphi %v1183_v1, %v1350_v1   ;;  %v1072_v0 = vphi %v1181_v0, %v1349_v0  }
  0x21   : > { %v95_v6 = vmul.f32 %v1076_v1, %v1157_v52  ;;  %v96_v7 = vmul.f32 %v1072_v0, %v1159_v53  ;;  %v97_v8 = vmul.f32 %v1076_v1, %v1161_v54  ;;  %v98_v9 = vmul.f32 %v1072_v0, %v1163_v55  ;;  %p77_p0 = scmp.ge.s32.totalorder %s80_s0, 50  }
  0x22   : > { %v99_v10 = vmul.f32 %v1076_v1, %v1165_v56  ;;  %v100_v11 = vmul.f32 %v1072_v0, %v1167_v57  ;;  %v101_v12 = vmul.f32 %v1076_v1, %v1169_v58  ;;  %v102_v13 = vmul.f32 %v1072_v0, %v1171_v59  ;;  %s1083_s13 = smov (%p77_p0), [#allocation2]  }
  0x23   : > { %v103_v14 = vmul.f32 %v1076_v1, %v1173_v60  ;;  %v104_v15 = vmul.f32 %v1072_v0, %v1175_v61  ;;  %v105_v16 = vmul.f32 %v1076_v1, %v1177_v62  ;;  %v106_v17 = vmul.f32 %v1072_v0, %v1179_v63  ;;  %s826_s14 = sshll.u32 (%p77_p0), %s1083_s13, 4  ;;  %s827_s14 = int_to_ptr.vmem [resolvable:$true] %s826_s14 }
  0x24   : > { %v107_v18 = vadd.f32 %v92_v3, %v91_v2  ;;  %v114_v19 = vadd.f32 %v94_v5, %v93_v4  ;;  %v121_v20 = vadd.f32 %v96_v7, %v95_v6  ;;  %v128_v21 = vadd.f32 %v98_v9, %v97_v8  ;;  %s1034_s15 = scalar_lea.vmem (%p77_p0), %s827_s14, 2048  ;;  %p1039_p2 = scmp.lt.s32.totalorder (%p77_p0), %s827_s14, %s827_s14 }
  0x25   : > { %v135_v22 = vadd.f32 %v100_v11, %v99_v10  ;;  %v142_v23 = vadd.f32 %v102_v13, %v101_v12  ;;  %v149_v24 = vadd.f32 %v104_v15, %v103_v14  ;;  %v156_v25 = vadd.f32 %v106_v17, %v105_v16  ;;  %p1035_p1 = scmp.ne.s32.totalorder (%p77_p0), %s827_s14, %s1034_s15  ;;  %p1040_p3 = scmp.lt.s32.totalorder (%p77_p0), %s1034_s15, %s1034_s15 }
  0x26   : > { %v108_v26 = vrot.slane %v107_v18, 4  ;;  %v115_v27 = vrot.slane %v114_v19, 4  ;;  %v122_v28 = vrot.slane %v121_v20, 4  ;;  %v129_v29 = vrot.slane %v128_v21, 4 }
  0x27   : > { %v136_v30 = vrot.slane %v135_v22, 4  ;;  %v143_v31 = vrot.slane %v142_v23, 4  ;;  %v150_v32 = vrot.slane %v149_v24, 4  ;;  %v157_v33 = vrot.slane %v156_v25, 4  ;;  %p1041_p4 = por (%p77_p0), %p1040_p3, %p1039_p2 }
  0x28   : > { %v109_v34 = vadd.f32 %v108_v26, %v107_v18  ;;  %v116_v35 = vadd.f32 %v115_v27, %v114_v19  ;;  %v123_v36 = vadd.f32 %v122_v28, %v121_v20  ;;  %v130_v37 = vadd.f32 %v129_v29, %v128_v21 }
  0x29   : > { %v137_v38 = vadd.f32 %v136_v30, %v135_v22  ;;  %v144_v39 = vadd.f32 %v143_v31, %v142_v23  ;;  %v151_v40 = vadd.f32 %v150_v32, %v149_v24  ;;  %v158_v41 = vadd.f32 %v157_v33, %v156_v25  ;;  %p1042_p5 = pnand (%p77_p0), %p1041_p4, %p1035_p1 }
  0x2a   : > { %v110_v42 = vrot.slane %v109_v34, 2  ;;  %v117_v43 = vrot.slane %v116_v35, 2  ;;  %v124_v44 = vrot.slane %v123_v36, 2  ;;  %v131_v45 = vrot.slane %v130_v37, 2 }
  0x2b   : > { %v138_v47 = vrot.slane %v137_v38, 2  ;;  %v145_v49 = vrot.slane %v144_v39, 2  ;;  %v152_v0 = vrot.slane %v151_v40, 2  ;;  %v159_v1 = vrot.slane %v158_v41, 2 }
  0x2c   : > { %v111_v2 = vadd.f32 %v110_v42, %v109_v34  ;;  %v118_v3 = vadd.f32 %v117_v43, %v116_v35  ;;  %v125_v4 = vadd.f32 %v124_v44, %v123_v36  ;;  %v132_v5 = vadd.f32 %v131_v45, %v130_v37 }
  0x2d   : > { %v139_v6 = vadd.f32 %v138_v47, %v137_v38  ;;  %v146_v7 = vadd.f32 %v145_v49, %v144_v39  ;;  %v153_v8 = vadd.f32 %v152_v0, %v151_v40  ;;  %v160_v9 = vadd.f32 %v159_v1, %v158_v41 }
  0x2e   : > { %v112_v10 = vrot.slane %v111_v2, 1  ;;  %v119_v11 = vrot.slane %v118_v3, 1  ;;  %v126_v12 = vrot.slane %v125_v4, 1  ;;  %v133_v13 = vrot.slane %v132_v5, 1 }
  0x2f   : > { %v140_v14 = vrot.slane %v139_v6, 1  ;;  %v147_v15 = vrot.slane %v146_v7, 1  ;;  %v154_v19 = vrot.slane %v153_v8, 1  ;;  %v161_v21 = vrot.slane %v160_v9, 1 }
  0x30   : > { %v113_v16 = vadd.f32 %v112_v10, %v111_v2  ;;  %v120_v17 = vadd.f32 %v119_v11, %v118_v3  ;;  %v127_v18 = vadd.f32 %v126_v12, %v125_v4  ;;  %v134_v20 = vadd.f32 %v133_v13, %v132_v5 }
  0x31   : > { %v141_v22 = vadd.f32 %v140_v14, %v139_v6  ;;  %v148_v23 = vadd.f32 %v147_v15, %v146_v7  ;;  %v155_v24 = vadd.f32 %v154_v19, %v153_v8  ;;  %v162_v25 = vadd.f32 %v161_v21, %v160_v9 }
  0x32   : > { %954 = vrcp.f32 %v113_v16 }
  0x33   : > { %956 = vrcp.f32 %v120_v17 }
  0x34   : > { %958 = vrcp.f32 %v127_v18 }
  0x35   : > { %960 = vrcp.f32 %v134_v20 }
  0x36   : > { %962 = vrcp.f32 %v141_v22 }
  0x37   : > { %964 = vrcp.f32 %v148_v23 }
  0x38   : > { %966 = vrcp.f32 %v155_v24 }
  0x39   : > { %968 = vrcp.f32 %v162_v25 }
  0x3c   : > { %v955_v26 = vpop.eup %954 }
  0x3d   : > { %v957_v27 = vpop.eup %956  ;;  %v171_v28 = vmul.f32 %v955_v26, %v113_v16 }
  0x3e   : > { %v959_v29 = vpop.eup %958  ;;  %v172_v30 = vmul.f32 %v957_v27, %v120_v17 }
  0x3f   : > { %v961_v31 = vpop.eup %960  ;;  %v173_v32 = vmul.f32 %v959_v29, %v127_v18  ;;  %v179_v33 = vsub.f32 2.0, %v171_v28 }
  0x40   : > { %v963_v34 = vpop.eup %962  ;;  %v174_v35 = vmul.f32 %v961_v31, %v134_v20  ;;  %v180_v36 = vsub.f32 2.0, %v172_v30 }
  0x41   : > { %v965_v37 = vpop.eup %964  ;;  %v175_v38 = vmul.f32 %v963_v34, %v141_v22  ;;  %v181_v39 = vsub.f32 2.0, %v173_v32  ;;  %v187_v40 = vmul.f32 %v955_v26, %v179_v33 }
  0x42   : > { %v967_v41 = vpop.eup %966  ;;  %v176_v42 = vmul.f32 %v965_v37, %v148_v23  ;;  %v182_v43 = vsub.f32 2.0, %v174_v35  ;;  %v188_v44 = vmul.f32 %v957_v27, %v180_v36 }
  0x43   : > { %v969_v45 = vpop.eup %968  ;;  %v177_v47 = vmul.f32 %v967_v41, %v155_v24  ;;  %v183_v49 = vsub.f32 2.0, %v175_v38  ;;  %v189_v0 = vmul.f32 %v959_v29, %v181_v39  ;;  %v195_v1 = vmul.f32 0.125, %v187_v40 }
  0x44   : > { %v178_v2 = vmul.f32 %v969_v45, %v162_v25  ;;  %v184_v3 = vsub.f32 2.0, %v176_v42  ;;  %v190_v4 = vmul.f32 %v961_v31, %v182_v43  ;;  %v196_v5 = vmul.f32 0.125, %v188_v44 }
  0x45   : > { %v185_v6 = vsub.f32 2.0, %v177_v47  ;;  %v191_v7 = vmul.f32 %v963_v34, %v183_v49  ;;  %v197_v8 = vmul.f32 0.125, %v189_v0  ;;  %v203_v11 = vmul.f32 %v1149_v46, %v195_v1 }
  0x46   : > { %v186_v9 = vsub.f32 2.0, %v178_v2  ;;  %v192_v10 = vmul.f32 %v965_v37, %v184_v3  ;;  %v198_v12 = vmul.f32 0.125, %v190_v4  ;;  %v204_v13 = vmul.f32 %v1151_v48, %v195_v1 }
  0x47   : > { %v205_v14 = vmul.f32 %v1153_v50, %v196_v5  ;;  %v206_v15 = vmul.f32 %v1155_v51, %v196_v5  ;;  %v193_v16 = vmul.f32 %v967_v41, %v185_v6  ;;  %v199_v17 = vmul.f32 0.125, %v191_v7 }
  0x48   : > { %v207_v18 = vmul.f32 %v1157_v52, %v197_v8  ;;  %v208_v19 = vmul.f32 %v1159_v53, %v197_v8  ;;  %v194_v20 = vmul.f32 %v969_v45, %v186_v9  ;;  %v200_v21 = vmul.f32 0.125, %v192_v10 }
  0x49   : > { %v209_v22 = vmul.f32 %v1161_v54, %v198_v12  ;;  %v210_v23 = vmul.f32 %v1163_v55, %v198_v12  ;;  %v219_v24 = vadd.f32 %v205_v14, %v203_v11  ;;  %v226_v25 = vadd.f32 %v206_v15, %v204_v13 }
  0x4a   : > { %v201_v26 = vmul.f32 0.125, %v193_v16  ;;  %v211_v27 = vmul.f32 %v1165_v56, %v199_v17  ;;  %v212_v28 = vmul.f32 %v1167_v57, %v199_v17  ;;  %v202_v31 = vmul.f32 0.125, %v194_v20 }
  0x4b   : > { %v220_v29 = vadd.f32 %v219_v24, %v207_v18  ;;  %v227_v30 = vadd.f32 %v226_v25, %v208_v19  ;;  %v213_v32 = vmul.f32 %v1169_v58, %v200_v21  ;;  %v214_v33 = vmul.f32 %v1171_v59, %v200_v21 }
  0x4c   : > { %v215_v36 = vmul.f32 %v1173_v60, %v201_v26  ;;  %v216_v37 = vmul.f32 %v1175_v61, %v201_v26  ;;  %v217_v40 = vmul.f32 %v1177_v62, %v202_v31  ;;  %v218_v41 = vmul.f32 %v1179_v63, %v202_v31 }
  0x4d   : > { %v221_v34 = vadd.f32 %v220_v29, %v209_v22  ;;  %v228_v35 = vadd.f32 %v227_v30, %v210_v23 }
  0x4f   : > { %v222_v38 = vadd.f32 %v221_v34, %v211_v27  ;;  %v229_v39 = vadd.f32 %v228_v35, %v212_v28 }
  0x51   : > { %v223_v42 = vadd.f32 %v222_v38, %v213_v32  ;;  %v230_v43 = vadd.f32 %v229_v39, %v214_v33 }
  0x53   : > { %v224_v44 = vadd.f32 %v223_v42, %v215_v36  ;;  %v231_v45 = vadd.f32 %v230_v43, %v216_v37 }
  0x55   : > { %v225_v47 = vadd.f32 %v224_v44, %v217_v40  ;;  %v232_v49 = vadd.f32 %v231_v45, %v218_v41 }
  0x57   : > { %970 = vrcp.f32 %v225_v47 }
  0x58   : > { %972 = vrcp.f32 %v232_v49 }
  0x61   : > { %v971_v0 = vpop.eup %970 }
  0x62   : > { %v973_v1 = vpop.eup %972  ;;  %v235_v2 = vmul.f32 %v971_v0, %v225_v47 }
  0x63   : > { %v236_v3 = vmul.f32 %v973_v1, %v232_v49 }
  0x64   : > { %v237_v4 = vsub.f32 2.0, %v235_v2 }
  0x65   : > { %v238_v5 = vsub.f32 2.0, %v236_v3 }
  0x66   : > { %v239_v6 = vmul.f32 %v971_v0, %v237_v4 }
  0x67   : > { %v240_v7 = vmul.f32 %v973_v1, %v238_v5 }
  0x68   : > { %v241_v8 = vmul.f32 0.0625, %v239_v6 }
  0x69   : > { %v242_v9 = vmul.f32 0.0625, %v240_v7 }
  0x6a   : > { %v243_v10 = vmul.f32 %v1149_v46, %v241_v8  ;;  %v245_v11 = vmul.f32 %v1153_v50, %v241_v8  ;;  %v247_v12 = vmul.f32 %v1157_v52, %v241_v8  ;;  %v249_v13 = vmul.f32 %v1161_v54, %v241_v8 }
  0x6b   : > { %v244_v14 = vmul.f32 %v1151_v48, %v242_v9  ;;  %v246_v15 = vmul.f32 %v1155_v51, %v242_v9  ;;  %v248_v16 = vmul.f32 %v1159_v53, %v242_v9  ;;  %v250_v17 = vmul.f32 %v1163_v55, %v242_v9 }
  0x6c   : > { %v251_v18 = vmul.f32 %v1165_v56, %v241_v8  ;;  %v252_v19 = vmul.f32 %v1167_v57, %v242_v9  ;;  %v253_v20 = vmul.f32 %v1169_v58, %v241_v8  ;;  %v254_v21 = vmul.f32 %v1171_v59, %v242_v9 }
  0x6d   : > { %v255_v22 = vmul.f32 %v1173_v60, %v241_v8  ;;  %v256_v23 = vmul.f32 %v1175_v61, %v242_v9  ;;  %v257_v24 = vmul.f32 %v1177_v62, %v241_v8  ;;  %v258_v25 = vmul.f32 %v1179_v63, %v242_v9 }
  0x6e   : > { %v259_v26 = vadd.f32 %v244_v14, %v243_v10  ;;  %v266_v27 = vadd.f32 %v246_v15, %v245_v11  ;;  %v273_v28 = vadd.f32 %v248_v16, %v247_v12  ;;  %v280_v29 = vadd.f32 %v250_v17, %v249_v13 }
  0x6f   : > { %v287_v30 = vadd.f32 %v252_v19, %v251_v18  ;;  %v294_v31 = vadd.f32 %v254_v21, %v253_v20  ;;  %v301_v32 = vadd.f32 %v256_v23, %v255_v22  ;;  %v308_v33 = vadd.f32 %v258_v25, %v257_v24 }
  0x70   : > { %v260_v34 = vrot.slane %v259_v26, 4  ;;  %v267_v35 = vrot.slane %v266_v27, 4  ;;  %v274_v36 = vrot.slane %v273_v28, 4  ;;  %v281_v37 = vrot.slane %v280_v29, 4 }
  0x71   : > { %v288_v38 = vrot.slane %v287_v30, 4  ;;  %v295_v39 = vrot.slane %v294_v31, 4  ;;  %v302_v40 = vrot.slane %v301_v32, 4  ;;  %v309_v41 = vrot.slane %v308_v33, 4 }
  0x72   : > { %v261_v42 = vadd.f32 %v260_v34, %v259_v26  ;;  %v268_v43 = vadd.f32 %v267_v35, %v266_v27  ;;  %v275_v44 = vadd.f32 %v274_v36, %v273_v28  ;;  %v282_v45 = vadd.f32 %v281_v37, %v280_v29 }
  0x73   : > { %v289_v47 = vadd.f32 %v288_v38, %v287_v30  ;;  %v296_v49 = vadd.f32 %v295_v39, %v294_v31  ;;  %v303_v0 = vadd.f32 %v302_v40, %v301_v32  ;;  %v310_v1 = vadd.f32 %v309_v41, %v308_v33 }
  0x74   : > { %v262_v2 = vrot.slane %v261_v42, 2  ;;  %v269_v3 = vrot.slane %v268_v43, 2  ;;  %v276_v4 = vrot.slane %v275_v44, 2  ;;  %v283_v5 = vrot.slane %v282_v45, 2 }
  0x75   : > { %v290_v6 = vrot.slane %v289_v47, 2  ;;  %v297_v7 = vrot.slane %v296_v49, 2  ;;  %v304_v8 = vrot.slane %v303_v0, 2  ;;  %v311_v9 = vrot.slane %v310_v1, 2 }
  0x76   : > { %v263_v10 = vadd.f32 %v262_v2, %v261_v42  ;;  %v270_v11 = vadd.f32 %v269_v3, %v268_v43  ;;  %v277_v12 = vadd.f32 %v276_v4, %v275_v44  ;;  %v284_v13 = vadd.f32 %v283_v5, %v282_v45 }
  0x77   : > { %v291_v14 = vadd.f32 %v290_v6, %v289_v47  ;;  %v298_v15 = vadd.f32 %v297_v7, %v296_v49  ;;  %v305_v16 = vadd.f32 %v304_v8, %v303_v0  ;;  %v312_v17 = vadd.f32 %v311_v9, %v310_v1 }
  0x78   : > { %v264_v18 = vrot.slane %v263_v10, 1  ;;  %v271_v19 = vrot.slane %v270_v11, 1  ;;  %v278_v20 = vrot.slane %v277_v12, 1  ;;  %v285_v21 = vrot.slane %v284_v13, 1 }
  0x79   : > { %v292_v22 = vrot.slane %v291_v14, 1  ;;  %v299_v23 = vrot.slane %v298_v15, 1  ;;  %v306_v27 = vrot.slane %v305_v16, 1  ;;  %v313_v29 = vrot.slane %v312_v17, 1 }
  0x7a   : > { %v265_v24 = vadd.f32 %v264_v18, %v263_v10  ;;  %v272_v25 = vadd.f32 %v271_v19, %v270_v11  ;;  %v279_v26 = vadd.f32 %v278_v20, %v277_v12  ;;  %v286_v28 = vadd.f32 %v285_v21, %v284_v13 }
  0x7b   : > { %v293_v30 = vadd.f32 %v292_v22, %v291_v14  ;;  %v300_v31 = vadd.f32 %v299_v23, %v298_v15  ;;  %v307_v32 = vadd.f32 %v306_v27, %v305_v16  ;;  %v314_v33 = vadd.f32 %v313_v29, %v312_v17 }
  0x7c   : > { %974 = vrcp.f32 %v265_v24 }
  0x7d   : > { %976 = vrcp.f32 %v272_v25 }
  0x7e   : > { %978 = vrcp.f32 %v279_v26 }
  0x7f   : > { %980 = vrcp.f32 %v286_v28 }
  0x80   : > { %982 = vrcp.f32 %v293_v30 }
  0x81   : > { %984 = vrcp.f32 %v300_v31 }
  0x82   : > { %986 = vrcp.f32 %v307_v32 }
  0x83   : > { %988 = vrcp.f32 %v314_v33 }
  0x86   : > { %v975_v34 = vpop.eup %974 }
  0x87   : > { %v977_v35 = vpop.eup %976  ;;  %v323_v36 = vmul.f32 %v975_v34, %v265_v24 }
  0x88   : > { %v979_v37 = vpop.eup %978  ;;  %v324_v38 = vmul.f32 %v977_v35, %v272_v25 }
  0x89   : > { %v981_v39 = vpop.eup %980  ;;  %v325_v40 = vmul.f32 %v979_v37, %v279_v26  ;;  %v331_v41 = vsub.f32 2.0, %v323_v36 }
  0x8a   : > { %v983_v42 = vpop.eup %982  ;;  %v326_v43 = vmul.f32 %v981_v39, %v286_v28  ;;  %v332_v44 = vsub.f32 2.0, %v324_v38 }
  0x8b   : > { %v985_v45 = vpop.eup %984  ;;  %v327_v47 = vmul.f32 %v983_v42, %v293_v30  ;;  %v333_v49 = vsub.f32 2.0, %v325_v40  ;;  %v339_v0 = vmul.f32 %v975_v34, %v331_v41 }
  0x8c   : > { %v987_v1 = vpop.eup %986  ;;  %v328_v2 = vmul.f32 %v985_v45, %v300_v31  ;;  %v334_v3 = vsub.f32 2.0, %v326_v43  ;;  %v340_v4 = vmul.f32 %v977_v35, %v332_v44 }
  0x8d   : > { %v989_v5 = vpop.eup %988  ;;  %v329_v6 = vmul.f32 %v987_v1, %v307_v32  ;;  %v335_v7 = vsub.f32 2.0, %v327_v47  ;;  %v341_v8 = vmul.f32 %v979_v37, %v333_v49  ;;  %v347_v9 = vmul.f32 0.125, %v339_v0 }
  0x8e   : > { %v330_v10 = vmul.f32 %v989_v5, %v314_v33  ;;  %v336_v11 = vsub.f32 2.0, %v328_v2  ;;  %v342_v12 = vmul.f32 %v981_v39, %v334_v3  ;;  %v348_v13 = vmul.f32 0.125, %v340_v4 }
  0x8f   : > { %v337_v14 = vsub.f32 2.0, %v329_v6  ;;  %v343_v15 = vmul.f32 %v983_v42, %v335_v7  ;;  %v349_v16 = vmul.f32 0.125, %v341_v8  ;;  %v355_v19 = vmul.f32 %v1149_v46, %v347_v9 }
  0x90   : > { %v338_v17 = vsub.f32 2.0, %v330_v10  ;;  %v344_v18 = vmul.f32 %v985_v45, %v336_v11  ;;  %v350_v20 = vmul.f32 0.125, %v342_v12  ;;  %v356_v21 = vmul.f32 %v1151_v48, %v347_v9 }
  0x91   : > { %v357_v22 = vmul.f32 %v1153_v50, %v348_v13  ;;  %v358_v23 = vmul.f32 %v1155_v51, %v348_v13  ;;  %v345_v24 = vmul.f32 %v987_v1, %v337_v14  ;;  %v351_v25 = vmul.f32 0.125, %v343_v15 }
  0x92   : > { %v359_v26 = vmul.f32 %v1157_v52, %v349_v16  ;;  %v360_v27 = vmul.f32 %v1159_v53, %v349_v16  ;;  %v346_v28 = vmul.f32 %v989_v5, %v338_v17  ;;  %v352_v29 = vmul.f32 0.125, %v344_v18 }
  0x93   : > { %v361_v30 = vmul.f32 %v1161_v54, %v350_v20  ;;  %v362_v31 = vmul.f32 %v1163_v55, %v350_v20  ;;  %v371_v32 = vadd.f32 %v357_v22, %v355_v19  ;;  %v378_v33 = vadd.f32 %v358_v23, %v356_v21 }
  0x94   : > { %v353_v34 = vmul.f32 0.125, %v345_v24  ;;  %v363_v35 = vmul.f32 %v1165_v56, %v351_v25  ;;  %v364_v36 = vmul.f32 %v1167_v57, %v351_v25  ;;  %v354_v39 = vmul.f32 0.125, %v346_v28 }
  0x95   : > { %v372_v37 = vadd.f32 %v371_v32, %v359_v26  ;;  %v379_v38 = vadd.f32 %v378_v33, %v360_v27  ;;  %v365_v40 = vmul.f32 %v1169_v58, %v352_v29  ;;  %v366_v41 = vmul.f32 %v1171_v59, %v352_v29 }
  0x96   : > { %v367_v44 = vmul.f32 %v1173_v60, %v353_v34  ;;  %v368_v45 = vmul.f32 %v1175_v61, %v353_v34  ;;  %v369_v0 = vmul.f32 %v1177_v62, %v354_v39  ;;  %v370_v1 = vmul.f32 %v1179_v63, %v354_v39 }
  0x97   : > { %v373_v42 = vadd.f32 %v372_v37, %v361_v30  ;;  %v380_v43 = vadd.f32 %v379_v38, %v362_v31 }
  0x99   : > { %v374_v47 = vadd.f32 %v373_v42, %v363_v35  ;;  %v381_v49 = vadd.f32 %v380_v43, %v364_v36 }
  0x9b   : > { %v375_v2 = vadd.f32 %v374_v47, %v365_v40  ;;  %v382_v3 = vadd.f32 %v381_v49, %v366_v41 }
  0x9d   : > { %v376_v4 = vadd.f32 %v375_v2, %v367_v44  ;;  %v383_v5 = vadd.f32 %v382_v3, %v368_v45 }
  0x9f   : > { %v377_v6 = vadd.f32 %v376_v4, %v369_v0  ;;  %v384_v7 = vadd.f32 %v383_v5, %v370_v1 }
  0xa1   : > { %990 = vrcp.f32 %v377_v6 }
  0xa2   : > { %992 = vrcp.f32 %v384_v7 }
  0xab   : > { %v991_v8 = vpop.eup %990 }
  0xac   : > { %v993_v9 = vpop.eup %992  ;;  %v387_v10 = vmul.f32 %v991_v8, %v377_v6 }
  0xad   : > { %v388_v11 = vmul.f32 %v993_v9, %v384_v7 }
  0xae   : > { %v389_v12 = vsub.f32 2.0, %v387_v10 }
  0xaf   : > { %v390_v13 = vsub.f32 2.0, %v388_v11 }
  0xb0   : > { %v391_v14 = vmul.f32 %v991_v8, %v389_v12 }
  0xb1   : > { %v392_v15 = vmul.f32 %v993_v9, %v390_v13 }
  0xb2   : > { %v393_v16 = vmul.f32 0.0625, %v391_v14 }
  0xb3   : > { %v394_v17 = vmul.f32 0.0625, %v392_v15 }
  0xb4   : > { %v395_v18 = vmul.f32 %v1149_v46, %v393_v16  ;;  %v397_v19 = vmul.f32 %v1153_v50, %v393_v16  ;;  %v399_v20 = vmul.f32 %v1157_v52, %v393_v16  ;;  %v401_v21 = vmul.f32 %v1161_v54, %v393_v16 }
  0xb5   : > { %v396_v22 = vmul.f32 %v1151_v48, %v394_v17  ;;  %v398_v23 = vmul.f32 %v1155_v51, %v394_v17  ;;  %v400_v24 = vmul.f32 %v1159_v53, %v394_v17  ;;  %v402_v25 = vmul.f32 %v1163_v55, %v394_v17 }
  0xb6   : > { %v403_v26 = vmul.f32 %v1165_v56, %v393_v16  ;;  %v404_v27 = vmul.f32 %v1167_v57, %v394_v17  ;;  %v405_v28 = vmul.f32 %v1169_v58, %v393_v16  ;;  %v406_v29 = vmul.f32 %v1171_v59, %v394_v17 }
  0xb7   : > { %v407_v30 = vmul.f32 %v1173_v60, %v393_v16  ;;  %v408_v31 = vmul.f32 %v1175_v61, %v394_v17  ;;  %v409_v32 = vmul.f32 %v1177_v62, %v393_v16  ;;  %v410_v33 = vmul.f32 %v1179_v63, %v394_v17 }
  0xb8   : > { %v411_v34 = vadd.f32 %v396_v22, %v395_v18  ;;  %v418_v35 = vadd.f32 %v398_v23, %v397_v19  ;;  %v425_v36 = vadd.f32 %v400_v24, %v399_v20  ;;  %v432_v37 = vadd.f32 %v402_v25, %v401_v21 }
  0xb9   : > { %v439_v38 = vadd.f32 %v404_v27, %v403_v26  ;;  %v446_v39 = vadd.f32 %v406_v29, %v405_v28  ;;  %v453_v40 = vadd.f32 %v408_v31, %v407_v30  ;;  %v460_v41 = vadd.f32 %v410_v33, %v409_v32 }
  0xba   : > { %v412_v42 = vrot.slane %v411_v34, 4  ;;  %v419_v43 = vrot.slane %v418_v35, 4  ;;  %v426_v44 = vrot.slane %v425_v36, 4  ;;  %v433_v45 = vrot.slane %v432_v37, 4 }
  0xbb   : > { %v440_v47 = vrot.slane %v439_v38, 4  ;;  %v447_v49 = vrot.slane %v446_v39, 4  ;;  %v454_v0 = vrot.slane %v453_v40, 4  ;;  %v461_v1 = vrot.slane %v460_v41, 4 }
  0xbc   : > { %v413_v2 = vadd.f32 %v412_v42, %v411_v34  ;;  %v420_v3 = vadd.f32 %v419_v43, %v418_v35  ;;  %v427_v4 = vadd.f32 %v426_v44, %v425_v36  ;;  %v434_v5 = vadd.f32 %v433_v45, %v432_v37 }
  0xbd   : > { %v441_v6 = vadd.f32 %v440_v47, %v439_v38  ;;  %v448_v7 = vadd.f32 %v447_v49, %v446_v39  ;;  %v455_v8 = vadd.f32 %v454_v0, %v453_v40  ;;  %v462_v9 = vadd.f32 %v461_v1, %v460_v41 }
  0xbe   : > { %v414_v10 = vrot.slane %v413_v2, 2  ;;  %v421_v11 = vrot.slane %v420_v3, 2  ;;  %v428_v12 = vrot.slane %v427_v4, 2  ;;  %v435_v13 = vrot.slane %v434_v5, 2 }
  0xbf   : > { %v442_v14 = vrot.slane %v441_v6, 2  ;;  %v449_v15 = vrot.slane %v448_v7, 2  ;;  %v456_v16 = vrot.slane %v455_v8, 2  ;;  %v463_v17 = vrot.slane %v462_v9, 2 }
  0xc0   : > { %v415_v18 = vadd.f32 %v414_v10, %v413_v2  ;;  %v422_v19 = vadd.f32 %v421_v11, %v420_v3  ;;  %v429_v20 = vadd.f32 %v428_v12, %v427_v4  ;;  %v436_v21 = vadd.f32 %v435_v13, %v434_v5 }
  0xc1   : > { %v443_v22 = vadd.f32 %v442_v14, %v441_v6  ;;  %v450_v23 = vadd.f32 %v449_v15, %v448_v7  ;;  %v457_v24 = vadd.f32 %v456_v16, %v455_v8  ;;  %v464_v25 = vadd.f32 %v463_v17, %v462_v9 }
  0xc2   : > { %v416_v26 = vrot.slane %v415_v18, 1  ;;  %v423_v27 = vrot.slane %v422_v19, 1  ;;  %v430_v28 = vrot.slane %v429_v20, 1  ;;  %v437_v29 = vrot.slane %v436_v21, 1 }
  0xc3   : > { %v444_v30 = vrot.slane %v443_v22, 1  ;;  %v451_v31 = vrot.slane %v450_v23, 1  ;;  %v458_v35 = vrot.slane %v457_v24, 1  ;;  %v465_v37 = vrot.slane %v464_v25, 1 }
  0xc4   : > { %v417_v32 = vadd.f32 %v416_v26, %v415_v18  ;;  %v424_v33 = vadd.f32 %v423_v27, %v422_v19  ;;  %v431_v34 = vadd.f32 %v430_v28, %v429_v20  ;;  %v438_v36 = vadd.f32 %v437_v29, %v436_v21 }
  0xc5   : > { %v445_v38 = vadd.f32 %v444_v30, %v443_v22  ;;  %v452_v39 = vadd.f32 %v451_v31, %v450_v23  ;;  %v459_v40 = vadd.f32 %v458_v35, %v457_v24  ;;  %v466_v41 = vadd.f32 %v465_v37, %v464_v25 }
  0xc6   : > { %994 = vrcp.f32 %v417_v32 }
  0xc7   : > { %996 = vrcp.f32 %v424_v33 }
  0xc8   : > { %998 = vrcp.f32 %v431_v34 }
  0xc9   : > { %1000 = vrcp.f32 %v438_v36 }
  0xca   : > { %1002 = vrcp.f32 %v445_v38 }
  0xcb   : > { %1004 = vrcp.f32 %v452_v39 }
  0xcc   : > { %1006 = vrcp.f32 %v459_v40 }
  0xcd   : > { %1008 = vrcp.f32 %v466_v41 }
  0xd0   : > { %v995_v42 = vpop.eup %994 }
  0xd1   : > { %v997_v43 = vpop.eup %996  ;;  %v475_v44 = vmul.f32 %v995_v42, %v417_v32 }
  0xd2   : > { %v999_v45 = vpop.eup %998  ;;  %v476_v47 = vmul.f32 %v997_v43, %v424_v33 }
  0xd3   : > { %v1001_v49 = vpop.eup %1000  ;;  %v477_v0 = vmul.f32 %v999_v45, %v431_v34  ;;  %v483_v1 = vsub.f32 2.0, %v475_v44 }
  0xd4   : > { %v1003_v2 = vpop.eup %1002  ;;  %v478_v3 = vmul.f32 %v1001_v49, %v438_v36  ;;  %v484_v4 = vsub.f32 2.0, %v476_v47 }
  0xd5   : > { %v1005_v5 = vpop.eup %1004  ;;  %v479_v6 = vmul.f32 %v1003_v2, %v445_v38  ;;  %v485_v7 = vsub.f32 2.0, %v477_v0  ;;  %v491_v8 = vmul.f32 %v995_v42, %v483_v1 }
  0xd6   : > { %v1007_v9 = vpop.eup %1006  ;;  %v480_v10 = vmul.f32 %v1005_v5, %v452_v39  ;;  %v486_v11 = vsub.f32 2.0, %v478_v3  ;;  %v492_v12 = vmul.f32 %v997_v43, %v484_v4 }
  0xd7   : > { %v1009_v13 = vpop.eup %1008  ;;  %v481_v14 = vmul.f32 %v1007_v9, %v459_v40  ;;  %v487_v15 = vsub.f32 2.0, %v479_v6  ;;  %v493_v16 = vmul.f32 %v999_v45, %v485_v7  ;;  %v499_v17 = vmul.f32 0.125, %v491_v8 }
  0xd8   : > { %v482_v18 = vmul.f32 %v1009_v13, %v466_v41  ;;  %v488_v19 = vsub.f32 2.0, %v480_v10  ;;  %v494_v20 = vmul.f32 %v1001_v49, %v486_v11  ;;  %v500_v21 = vmul.f32 0.125, %v492_v12 }
  0xd9   : > { %v489_v22 = vsub.f32 2.0, %v481_v14  ;;  %v495_v23 = vmul.f32 %v1003_v2, %v487_v15  ;;  %v501_v24 = vmul.f32 0.125, %v493_v16  ;;  %v507_v27 = vmul.f32 %v1149_v46, %v499_v17 }
  0xda   : > { %v490_v25 = vsub.f32 2.0, %v482_v18  ;;  %v496_v26 = vmul.f32 %v1005_v5, %v488_v19  ;;  %v502_v28 = vmul.f32 0.125, %v494_v20  ;;  %v508_v29 = vmul.f32 %v1151_v48, %v499_v17 }
  0xdb   : > { %v509_v30 = vmul.f32 %v1153_v50, %v500_v21  ;;  %v510_v31 = vmul.f32 %v1155_v51, %v500_v21  ;;  %v497_v32 = vmul.f32 %v1007_v9, %v489_v22  ;;  %v503_v33 = vmul.f32 0.125, %v495_v23 }
  0xdc   : > { %v511_v34 = vmul.f32 %v1157_v52, %v501_v24  ;;  %v512_v35 = vmul.f32 %v1159_v53, %v501_v24  ;;  %v498_v36 = vmul.f32 %v1009_v13, %v490_v25  ;;  %v504_v37 = vmul.f32 0.125, %v496_v26 }
  0xdd   : > { %v513_v38 = vmul.f32 %v1161_v54, %v502_v28  ;;  %v514_v39 = vmul.f32 %v1163_v55, %v502_v28  ;;  %v523_v40 = vadd.f32 %v509_v30, %v507_v27  ;;  %v530_v41 = vadd.f32 %v510_v31, %v508_v29 }
  0xde   : > { %v505_v42 = vmul.f32 0.125, %v497_v32  ;;  %v515_v43 = vmul.f32 %v1165_v56, %v503_v33  ;;  %v516_v44 = vmul.f32 %v1167_v57, %v503_v33  ;;  %v506_v49 = vmul.f32 0.125, %v498_v36 }
  0xdf   : > { %v524_v45 = vadd.f32 %v523_v40, %v511_v34  ;;  %v531_v47 = vadd.f32 %v530_v41, %v512_v35  ;;  %v517_v0 = vmul.f32 %v1169_v58, %v504_v37  ;;  %v518_v1 = vmul.f32 %v1171_v59, %v504_v37 }
  0xe0   : > { %v519_v4 = vmul.f32 %v1173_v60, %v505_v42  ;;  %v520_v5 = vmul.f32 %v1175_v61, %v505_v42  ;;  %v521_v8 = vmul.f32 %v1177_v62, %v506_v49  ;;  %v522_v9 = vmul.f32 %v1179_v63, %v506_v49 }
  0xe1   : > { %v525_v2 = vadd.f32 %v524_v45, %v513_v38  ;;  %v532_v3 = vadd.f32 %v531_v47, %v514_v39 }
  0xe3   : > { %v526_v6 = vadd.f32 %v525_v2, %v515_v43  ;;  %v533_v7 = vadd.f32 %v532_v3, %v516_v44 }
  0xe5   : > { %v527_v10 = vadd.f32 %v526_v6, %v517_v0  ;;  %v534_v11 = vadd.f32 %v533_v7, %v518_v1 }
  0xe7   : > { %v528_v12 = vadd.f32 %v527_v10, %v519_v4  ;;  %v535_v13 = vadd.f32 %v534_v11, %v520_v5 }
  0xe9   : > { %v529_v14 = vadd.f32 %v528_v12, %v521_v8  ;;  %v536_v15 = vadd.f32 %v535_v13, %v522_v9 }
  0xeb   : > { %1010 = vrcp.f32 %v529_v14 }
  0xec   : > { %1012 = vrcp.f32 %v536_v15 }
  0xf5   : > { %v1011_v16 = vpop.eup %1010 }
  0xf6   : > { %v1013_v17 = vpop.eup %1012  ;;  %v539_v18 = vmul.f32 %v1011_v16, %v529_v14 }
  0xf7   : > { %v540_v19 = vmul.f32 %v1013_v17, %v536_v15 }
  0xf8   : > { %v541_v20 = vsub.f32 2.0, %v539_v18 }
  0xf9   : > { %v542_v21 = vsub.f32 2.0, %v540_v19 }
  0xfa   : > { %v543_v22 = vmul.f32 %v1011_v16, %v541_v20 }
  0xfb   : > { %v544_v23 = vmul.f32 %v1013_v17, %v542_v21 }
  0xfc   : > { %v545_v24 = vmul.f32 0.0625, %v543_v22 }
  0xfd   : > { %v546_v25 = vmul.f32 0.0625, %v544_v23 }
  0xfe   : > { %v547_v26 = vmul.f32 %v1149_v46, %v545_v24  ;;  %v549_v27 = vmul.f32 %v1153_v50, %v545_v24  ;;  %v551_v28 = vmul.f32 %v1157_v52, %v545_v24  ;;  %v553_v29 = vmul.f32 %v1161_v54, %v545_v24 }
  0xff   : > { %v548_v30 = vmul.f32 %v1151_v48, %v546_v25  ;;  %v550_v31 = vmul.f32 %v1155_v51, %v546_v25  ;;  %v552_v32 = vmul.f32 %v1159_v53, %v546_v25  ;;  %v554_v33 = vmul.f32 %v1163_v55, %v546_v25 }
 0x100   : > { %v555_v34 = vmul.f32 %v1165_v56, %v545_v24  ;;  %v556_v35 = vmul.f32 %v1167_v57, %v546_v25  ;;  %v557_v36 = vmul.f32 %v1169_v58, %v545_v24  ;;  %v558_v37 = vmul.f32 %v1171_v59, %v546_v25 }
 0x101   : > { %v559_v38 = vmul.f32 %v1173_v60, %v545_v24  ;;  %v560_v39 = vmul.f32 %v1175_v61, %v546_v25  ;;  %v561_v40 = vmul.f32 %v1177_v62, %v545_v24  ;;  %v562_v41 = vmul.f32 %v1179_v63, %v546_v25 }
 0x102   : > { %v563_v42 = vadd.f32 %v548_v30, %v547_v26  ;;  %v570_v43 = vadd.f32 %v550_v31, %v549_v27  ;;  %v577_v44 = vadd.f32 %v552_v32, %v551_v28  ;;  %v584_v45 = vadd.f32 %v554_v33, %v553_v29 }
 0x103   : > { %v591_v47 = vadd.f32 %v556_v35, %v555_v34  ;;  %v598_v49 = vadd.f32 %v558_v37, %v557_v36  ;;  %v605_v0 = vadd.f32 %v560_v39, %v559_v38  ;;  %v612_v1 = vadd.f32 %v562_v41, %v561_v40 }
 0x104   : > { %v564_v2 = vrot.slane %v563_v42, 4  ;;  %v571_v3 = vrot.slane %v570_v43, 4  ;;  %v578_v4 = vrot.slane %v577_v44, 4  ;;  %v585_v5 = vrot.slane %v584_v45, 4 }
 0x105   : > { %v592_v6 = vrot.slane %v591_v47, 4  ;;  %v599_v7 = vrot.slane %v598_v49, 4  ;;  %v606_v8 = vrot.slane %v605_v0, 4  ;;  %v613_v9 = vrot.slane %v612_v1, 4 }
 0x106   : > { %v565_v10 = vadd.f32 %v564_v2, %v563_v42  ;;  %v572_v11 = vadd.f32 %v571_v3, %v570_v43  ;;  %v579_v12 = vadd.f32 %v578_v4, %v577_v44  ;;  %v586_v13 = vadd.f32 %v585_v5, %v584_v45 }
 0x107   : > { %v593_v14 = vadd.f32 %v592_v6, %v591_v47  ;;  %v600_v15 = vadd.f32 %v599_v7, %v598_v49  ;;  %v607_v16 = vadd.f32 %v606_v8, %v605_v0  ;;  %v614_v17 = vadd.f32 %v613_v9, %v612_v1 }
 0x108   : > { %v566_v18 = vrot.slane %v565_v10, 2  ;;  %v573_v19 = vrot.slane %v572_v11, 2  ;;  %v580_v20 = vrot.slane %v579_v12, 2  ;;  %v587_v21 = vrot.slane %v586_v13, 2 }
 0x109   : > { %v594_v22 = vrot.slane %v593_v14, 2  ;;  %v601_v23 = vrot.slane %v600_v15, 2  ;;  %v608_v24 = vrot.slane %v607_v16, 2  ;;  %v615_v25 = vrot.slane %v614_v17, 2 }
 0x10a   : > { %v567_v26 = vadd.f32 %v566_v18, %v565_v10  ;;  %v574_v27 = vadd.f32 %v573_v19, %v572_v11  ;;  %v581_v28 = vadd.f32 %v580_v20, %v579_v12  ;;  %v588_v29 = vadd.f32 %v587_v21, %v586_v13 }
 0x10b   : > { %v595_v30 = vadd.f32 %v594_v22, %v593_v14  ;;  %v602_v31 = vadd.f32 %v601_v23, %v600_v15  ;;  %v609_v32 = vadd.f32 %v608_v24, %v607_v16  ;;  %v616_v33 = vadd.f32 %v615_v25, %v614_v17 }
 0x10c   : > { %v568_v34 = vrot.slane %v567_v26, 1  ;;  %v575_v35 = vrot.slane %v574_v27, 1  ;;  %v582_v36 = vrot.slane %v581_v28, 1  ;;  %v589_v37 = vrot.slane %v588_v29, 1 }
 0x10d   : > { %v596_v38 = vrot.slane %v595_v30, 1  ;;  %v603_v39 = vrot.slane %v602_v31, 1  ;;  %v610_v43 = vrot.slane %v609_v32, 1  ;;  %v617_v45 = vrot.slane %v616_v33, 1 }
 0x10e   : > { %v569_v40 = vadd.f32 %v568_v34, %v567_v26  ;;  %v576_v41 = vadd.f32 %v575_v35, %v574_v27  ;;  %v583_v42 = vadd.f32 %v582_v36, %v581_v28  ;;  %v590_v44 = vadd.f32 %v589_v37, %v588_v29 }
 0x10f   : > { %v597_v47 = vadd.f32 %v596_v38, %v595_v30  ;;  %v604_v49 = vadd.f32 %v603_v39, %v602_v31  ;;  %v611_v0 = vadd.f32 %v610_v43, %v609_v32  ;;  %v618_v1 = vadd.f32 %v617_v45, %v616_v33 }
 0x110   : > { %1014 = vrcp.f32 %v569_v40 }
 0x111   : > { %1016 = vrcp.f32 %v576_v41 }
 0x112   : > { %1018 = vrcp.f32 %v583_v42 }
 0x113   : > { %1020 = vrcp.f32 %v590_v44 }
 0x114   : > { %1022 = vrcp.f32 %v597_v47 }
 0x115   : > { %1024 = vrcp.f32 %v604_v49 }
 0x116   : > { %1026 = vrcp.f32 %v611_v0 }
 0x117   : > { %1028 = vrcp.f32 %v618_v1 }
 0x11a   : > { %v1015_v2 = vpop.eup %1014 }
 0x11b   : > { %v1017_v3 = vpop.eup %1016  ;;  %v627_v4 = vmul.f32 %v1015_v2, %v569_v40 }
 0x11c   : > { %v1019_v5 = vpop.eup %1018  ;;  %v628_v6 = vmul.f32 %v1017_v3, %v576_v41 }
 0x11d   : > { %v1021_v7 = vpop.eup %1020  ;;  %v629_v8 = vmul.f32 %v1019_v5, %v583_v42  ;;  %v635_v9 = vsub.f32 2.0, %v627_v4 }
 0x11e   : > { %v1023_v10 = vpop.eup %1022  ;;  %v630_v11 = vmul.f32 %v1021_v7, %v590_v44  ;;  %v636_v12 = vsub.f32 2.0, %v628_v6 }
 0x11f   : > { %v1025_v13 = vpop.eup %1024  ;;  %v631_v14 = vmul.f32 %v1023_v10, %v597_v47  ;;  %v637_v15 = vsub.f32 2.0, %v629_v8  ;;  %v643_v16 = vmul.f32 %v1015_v2, %v635_v9 }
 0x120   : > { %v1027_v17 = vpop.eup %1026  ;;  %v632_v18 = vmul.f32 %v1025_v13, %v604_v49  ;;  %v638_v19 = vsub.f32 2.0, %v630_v11  ;;  %v644_v20 = vmul.f32 %v1017_v3, %v636_v12 }
 0x121   : > { %v1029_v21 = vpop.eup %1028  ;;  %v633_v22 = vmul.f32 %v1027_v17, %v611_v0  ;;  %v639_v23 = vsub.f32 2.0, %v631_v14  ;;  %v645_v24 = vmul.f32 %v1019_v5, %v637_v15  ;;  %v651_v25 = vmul.f32 0.125, %v643_v16 }
 0x122   : > { %v634_v26 = vmul.f32 %v1029_v21, %v618_v1  ;;  %v640_v27 = vsub.f32 2.0, %v632_v18  ;;  %v646_v28 = vmul.f32 %v1021_v7, %v638_v19  ;;  %v652_v29 = vmul.f32 0.125, %v644_v20 }
 0x123   : > { %v641_v30 = vsub.f32 2.0, %v633_v22  ;;  %v647_v31 = vmul.f32 %v1023_v10, %v639_v23  ;;  %v653_v32 = vmul.f32 0.125, %v645_v24  ;;  %v659_v35 = vmul.f32 %v1149_v46, %v651_v25 }
 0x124   : > { %v642_v33 = vsub.f32 2.0, %v634_v26  ;;  %v648_v34 = vmul.f32 %v1025_v13, %v640_v27  ;;  %v654_v36 = vmul.f32 0.125, %v646_v28  ;;  %v660_v37 = vmul.f32 %v1151_v48, %v651_v25 }
 0x125   : > { %v661_v38 = vmul.f32 %v1153_v50, %v652_v29  ;;  %v662_v39 = vmul.f32 %v1155_v51, %v652_v29  ;;  %v649_v40 = vmul.f32 %v1027_v17, %v641_v30  ;;  %v655_v41 = vmul.f32 0.125, %v647_v31 }
 0x126   : > { %v663_v42 = vmul.f32 %v1157_v52, %v653_v32  ;;  %v664_v43 = vmul.f32 %v1159_v53, %v653_v32  ;;  %v650_v44 = vmul.f32 %v1029_v21, %v642_v33  ;;  %v656_v45 = vmul.f32 0.125, %v648_v34 }
 0x127   : > { %v665_v47 = vmul.f32 %v1161_v54, %v654_v36  ;;  %v666_v49 = vmul.f32 %v1163_v55, %v654_v36  ;;  %v675_v0 = vadd.f32 %v661_v38, %v659_v35  ;;  %v682_v1 = vadd.f32 %v662_v39, %v660_v37 }
 0x128   : > { %v657_v2 = vmul.f32 0.125, %v649_v40  ;;  %v667_v3 = vmul.f32 %v1165_v56, %v655_v41  ;;  %v668_v4 = vmul.f32 %v1167_v57, %v655_v41  ;;  %v658_v7 = vmul.f32 0.125, %v650_v44 }
 0x129   : > { %v676_v5 = vadd.f32 %v675_v0, %v663_v42  ;;  %v683_v6 = vadd.f32 %v682_v1, %v664_v43  ;;  %v669_v8 = vmul.f32 %v1169_v58, %v656_v45  ;;  %v670_v9 = vmul.f32 %v1171_v59, %v656_v45 }
 0x12a   : > { %v671_v12 = vmul.f32 %v1173_v60, %v657_v2  ;;  %v672_v13 = vmul.f32 %v1175_v61, %v657_v2  ;;  %v673_v16 = vmul.f32 %v1177_v62, %v658_v7  ;;  %v674_v17 = vmul.f32 %v1179_v63, %v658_v7 }
 0x12b   : > { %v677_v10 = vadd.f32 %v676_v5, %v665_v47  ;;  %v684_v11 = vadd.f32 %v683_v6, %v666_v49  ;;  %v1082_v46 = vmov (%p77_p0), 0.0  }
 0x12d   : > { %v678_v14 = vadd.f32 %v677_v10, %v667_v3  ;;  %v685_v15 = vadd.f32 %v684_v11, %v668_v4 }
 0x12f   : > { %v679_v18 = vadd.f32 %v678_v14, %v669_v8  ;;  %v686_v19 = vadd.f32 %v685_v15, %v670_v9 }
 0x131   : > { %v680_v20 = vadd.f32 %v679_v18, %v671_v12  ;;  %v687_v21 = vadd.f32 %v686_v19, %v672_v13 }
 0x133   : > { %v681_v22 = vadd.f32 %v680_v20, %v673_v16  ;;  %v688_v23 = vadd.f32 %v687_v21, %v674_v17 }
 0x135   : > { %1030 = vrcp.f32 %v681_v22 }
 0x136   : > { %1032 = vrcp.f32 %v688_v23 }
 0x13f   : > { %v1031_v24 = vpop.eup %1030 }
 0x140   : > { %v1033_v25 = vpop.eup %1032  ;;  %v691_v26 = vmul.f32 %v1031_v24, %v681_v22 }
 0x141   : > { %v692_v27 = vmul.f32 %v1033_v25, %v688_v23 }
 0x142   : > { %v693_v28 = vsub.f32 2.0, %v691_v26 }
 0x143   : > { %v694_v29 = vsub.f32 2.0, %v692_v27  ;;  %79 = sbr.rel (!%p77_p0) target bundleno = 32 (0x20), region = 39 }
 0x144   : > { %v695_v30 = vmul.f32 %v1031_v24, %v693_v28 }
 0x145   : > { %v696_v31 = vmul.f32 %v1033_v25, %v694_v29 }
 0x146   : > { %v697_v32 = vmul.f32 0.0625, %v695_v30  }
 0x147   : > { %v698_v33 = vmul.f32 0.0625, %v696_v31  }
 0x148   : > { %v1350_v1 = vmov %v697_v32  ;;  %v715_v34 = vmul.f32 (%p77_p0), %v697_v32, %v659_v35  ;;  %v717_v40 = vmul.f32 (%p77_p0), %v697_v32, %v661_v38  ;;  %v719_v44 = vmul.f32 (%p77_p0), %v697_v32, %v663_v42 }
 0x149   : > { %v1349_v0 = vmov %v698_v33  ;;  %v716_v36 = vmul.f32 (%p77_p0), %v698_v33, %v660_v37  ;;  %v718_v41 = vmul.f32 (%p77_p0), %v698_v33, %v662_v39  ;;  %v720_v45 = vmul.f32 (%p77_p0), %v698_v33, %v664_v43 }
 0x14a   :  { %v721_v1 = vmul.f32 %v697_v32, %v665_v47  ;;  %v722_v2 = vmul.f32 %v698_v33, %v666_v49  ;;  %v723_v5 = vmul.f32 %v697_v32, %v667_v3  ;;  %v724_v6 = vmul.f32 %v698_v33, %v668_v4  ;;  %731 = vst [vmem:[#allocation2] sm:$0xff] %v715_v34 }
 0x14b   :  { %v725_v7 = vmul.f32 %v697_v32, %v669_v8  ;;  %v726_v10 = vmul.f32 %v698_v33, %v670_v9  ;;  %732 = vst [vmem:[#allocation2 + $0x8] sm:$0xff] %v716_v36  ;;  %733 = vst [vmem:[#allocation2 + $0x10] sm:$0xff] %v717_v40  ;;  %v727_v11 = vmul.f32 %v697_v32, %v671_v12  ;;  %vm747_vm0 = vweird.f32 %v715_v34 }
 0x14c   :  { %734 = vst [vmem:[#allocation2 + $0x18] sm:$0xff] %v718_v41  ;;  %v728_v14 = vmul.f32 %v698_v33, %v672_v13  ;;  %v729_v15 = vmul.f32 %v697_v32, %v673_v16  ;;  %v730_v18 = vmul.f32 %v698_v33, %v674_v17  ;;  %735 = vst [vmem:[#allocation2 + $0x20] sm:$0xff] %v719_v44  ;;  %vm748_vm1 = vweird.f32 %v716_v36 }
 0x14d   :  { %736 = vst [vmem:[#allocation2 + $0x28] sm:$0xff] %v720_v45  ;;  %737 = vst [vmem:[#allocation2 + $0x30] sm:$0xff] %v721_v1  ;;  %vm749_vm2 = vweird.f32 %v717_v40  ;;  %vm750_vm3 = vweird.f32 %v718_v41  ;;  %vm751_vm4 = vweird.f32 %v719_v44  ;;  %vm752_vm5 = vweird.f32 %v720_v45 }
 0x14e   :  { %738 = vst [vmem:[#allocation2 + $0x38] sm:$0xff] %v722_v2  ;;  %739 = vst [vmem:[#allocation2 + $0x40] sm:$0xff] %v723_v5  ;;  %vm753_vm6 = vweird.f32 %v721_v1  ;;  %vm754_vm7 = vweird.f32 %v722_v2  ;;  %vm755_vm8 = vweird.f32 %v723_v5  ;;  %vm756_vm9 = vweird.f32 %v724_v6 }
 0x14f   :  { %740 = vst [vmem:[#allocation2 + $0x48] sm:$0xff] %v724_v6  ;;  %741 = vst [vmem:[#allocation2 + $0x50] sm:$0xff] %v725_v7  ;;  %vm757_vm10 = vweird.f32 %v725_v7  ;;  %vm758_vm11 = vweird.f32 %v726_v10  ;;  %v876_v48 = vsel %vm747_vm0, 1.0, %v1082_v46  ;;  %v877_v50 = vsel %vm748_vm1, 1.0, %v1082_v46 }
 0x150   :  { %742 = vst [vmem:[#allocation2 + $0x58] sm:$0xff] %v726_v10  ;;  %743 = vst [vmem:[#allocation2 + $0x60] sm:$0xff] %v727_v11  ;;  %v878_v51 = vsel %vm749_vm2, 1.0, %v1082_v46  ;;  %v879_v52 = vsel %vm750_vm3, 1.0, %v1082_v46  ;;  %v880_v53 = vsel %vm751_vm4, 1.0, %v1082_v46  ;;  %v881_v54 = vsel %vm752_vm5, 1.0, %v1082_v46 }
 0x151   :  { %744 = vst [vmem:[#allocation2 + $0x68] sm:$0xff] %v728_v14  ;;  %745 = vst [vmem:[#allocation2 + $0x70] sm:$0xff] %v729_v15  ;;  %v882_v55 = vsel %vm753_vm6, 1.0, %v1082_v46  ;;  %v883_v56 = vsel %vm754_vm7, 1.0, %v1082_v46  ;;  %vm759_vm12 = vweird.f32 %v727_v11  ;;  %vm760_vm13 = vweird.f32 %v728_v14 }
 0x152   :  { %746 = vst [vmem:[#allocation2 + $0x78] sm:$0xff] %v730_v18  ;;  %vm761_vm14 = vweird.f32 %v729_v15  ;;  %vm762_vm15 = vweird.f32 %v730_v18  ;;  %v884_v57 = vsel %vm755_vm8, 1.0, %v1082_v46  ;;  %v885_v58 = vsel %vm756_vm9, 1.0, %v1082_v46 }
 0x153   :  { %v886_v59 = vsel %vm757_vm10, 1.0, %v1082_v46  ;;  %v887_v60 = vsel %vm758_vm11, 1.0, %v1082_v46  ;;  %v795_v61 = vmax.f32 %v876_v48, %v880_v53  ;;  %v796_v62 = vmax.f32 %v877_v50, %v881_v54 }
 0x154   :  { %v797_v63 = vmax.f32 %v878_v51, %v882_v55  ;;  %v798_v35 = vmax.f32 %v879_v52, %v883_v56  ;;  %v888_v37 = vsel %vm759_vm12, 1.0, %v1082_v46  ;;  %v889_v38 = vsel %vm760_vm13, 1.0, %v1082_v46 }
 0x155   :  { %v890_v39 = vsel %vm761_vm14, 1.0, %v1082_v46  ;;  %v891_v42 = vsel %vm762_vm15, 1.0, %v1082_v46  ;;  %v799_v43 = vmax.f32 %v795_v61, %v884_v57  ;;  %v800_v47 = vmax.f32 %v796_v62, %v885_v58 }
 0x156   :  { %v801_v49 = vmax.f32 %v797_v63, %v886_v59  ;;  %v802_v0 = vmax.f32 %v798_v35, %v887_v60 }
 0x157   :  { %v803_v3 = vmax.f32 %v799_v43, %v888_v37  ;;  %v804_v4 = vmax.f32 %v800_v47, %v889_v38 }
 0x158   :  { %v805_v8 = vmax.f32 %v801_v49, %v890_v39  ;;  %v806_v9 = vmax.f32 %v802_v0, %v891_v42 }
 0x159   :  { %v807_v12 = vmax.f32 %v803_v3, %v804_v4 }
 0x15a   :  { %v808_v13 = vmax.f32 %v805_v8, %v806_v9 }
 0x15c   :  { %v809_v16 = vmax.f32 %v807_v12, %v808_v13 }
 0x15e   :  { %810 = vmax.xlane.f32.xlu0 %v809_v16 }
 0x15f   :  { %1045 = shalt.err (!%p1042_p5)
}
 0x160   :  { %s1046_s18 = scalar_lea.hbm %s1347_s1, 2048 }
 0x161   :  { %p1047_p6 = scmp.ne.s32.totalorder %s1347_s1, %s1046_s18  ;;  %p1050_p7 = scmp.lt.u32.totalorder %s1046_s18, %s1347_s1 }
 0x163   :  { %p1052_p8 = pnand %p1050_p7, %p1047_p6 }
 0x165   :  { %1055 = shalt.err (!%p1052_p8)
}
 0x166   :  { %s1084_s23 = smov 128   ;;  %s1085_s24 = smov 8  }
 0x167   :  { %832 = dma.vmem_to_hbm [thread:$0]  %s827_s14, 2048, %s1347_s1, [#allocation3], %s1084_s23, %s1084_s23, %s1085_s24  }
 0x1eb   :  { %v811_v17 = vpop.xlane.xlu0 %810 }
 0x1ec   :  { %v812_v19 = vrot.slane %v811_v17, 4 }
 0x1ee   :  { %v813_v20 = vmax.f32 %v811_v17, %v812_v19 }
 0x1f0   :  { %v814_v21 = vrot.slane %v813_v20, 2 }
 0x1f2   :  { %v815_v22 = vmax.f32 %v813_v20, %v814_v21 }
 0x1f4   :  { %v816_v23 = vrot.slane %v815_v22, 1 }
 0x1f6   :  { %v817_v24 = vmax.f32 %v815_v22, %v816_v23 }
 0x1f8   :  { %892 = vpush %v817_v24 }
 0x229   :  { %s893_s27 = spop %892 }
 0x22a   :  { %v819_v25 = vstv %s893_s27 }
 0x22b   :  { %820 = vst [vmem:[%s1348_s2] sm:$0xff] %v819_v25 }
 0x22c   :  { %1068 = dma.done.wait [#allocation3], 2048  }
 0x22d   :  { %1069 = vsyncadd [#allocation3], 4294965248 }
 0x22e   :  { %840 = vsyncpa [#allocation3], 1 }

</bundles_post_ra>
